<compile_context>
chip_gen: v7x
topology: tpu7x:2x2x1
jax: 0.10.0
libtpu: 0.0.40
codegen_flags: <defaults>
</compile_context>

<pallas_src>
import functools

import jax
import jax.numpy as jnp
from jax import lax
from jax.experimental import pallas as pl
from jax.experimental.pallas import tpu as pltpu

ALPHA = 1.5      # entmax alpha (module default)
N_ITER = 24      # bisection iterations; bracket shrinks to ~4e-8 << f32 eps of
                 # tau, matching the 50-iteration reference to f32 precision.
SUB = 8          # f32 sublanes per vreg


def _fold_fields(x, ncross, op):
    """Finish a per-cross reduction over fields.

    `x` is (8, TB) holding partial per-field reductions at rows fi*ncross + n;
    after folding, EVERY row r carries the full reduction for cross r % ncross
    (replicated).  One XLU sublane roll per doubling step."""
    step = ncross
    while step < SUB:
        x = op(x, pltpu.roll(x, shift=step, axis=0))
        step *= 2
    return x


def cross_feature_kernel(xt_ref, w_ref, v_ref, o_ref, *, nfield, nemb, ncross):
    """One grid step = TB batch columns.

    xt_ref: (F*E, TB)   x, flattened and transposed (batch on lanes)
    w_ref:  (F*N, F*E)  block-diag (query @ bilinear_w) * scale * (alpha-1)
    v_ref:  (F*N, 1)    value permuted to row order f*N + n
    o_ref:  (N*E, TB)   exp cross features, transposed (lane-dense store)
    """
    F, E, N = nfield, nemb, ncross
    TB = xt_ref.shape[1]
    fpg = SUB // N               # fields per 8-sublane group
    ngrp = (F * N) // SUB        # number of 8-row groups of logits

    # ---- attention logits: one K = F*E MXU matmul, batch on lanes ----------
    att = lax.dot_general(w_ref[...], xt_ref[...],
                          (((1,), (0,)), ((), ())),
                          preferred_element_type=jnp.float32)      # (F*N, TB)
    att_g = [att[SUB * g:SUB * (g + 1), :] for g in range(ngrp)]   # vreg-aligned

    # ---- 1.5-entmax over the field axis via bisection ----------------------
    # All loop state is (8, TB): full sublane/lane occupancy.  The F-reduction
    # is an unrolled sum over the ngrp groups plus one sublane roll.
    m = att_g[0]
    for g in range(1, ngrp):
        m = jnp.maximum(m, att_g[g])
    max_val = _fold_fields(m, N, jnp.maximum)          # per-cross max (rep.)

    tau_lo = max_val - 1.0                             # gp(1, 1.5)   = 1
    tau_hi = max_val - (1.0 / F) ** (ALPHA - 1.0)      # gp(1/d, 1.5) = (1/d)^0.5
    dm = tau_hi - tau_lo

    s = jnp.zeros_like(max_val)
    for g in range(ngrp):
        r = jnp.maximum(att_g[g] - tau_lo, 0.0)
        s = s + r * r
    s_lo = _fold_fields(s, N, jnp.add)
    lo_pos = s_lo >= 1.0                               # sign of f(tau_lo)

    tau_m = tau_lo
    total = s_lo
    p_g = att_g
    for _ in range(N_ITER):
        dm = dm * 0.5
        tau_m = tau_lo + dm
        s = jnp.zeros_like(max_val)
        p_g = []
        for g in range(ngrp):
            r = jnp.maximum(att_g[g] - tau_m, 0.0)
            r2 = r * r
            p_g.append(r2)
            s = s + r2
        total = _fold_fields(s, N, jnp.add)
        keep = (total >= 1.0) == lo_pos                # sign(f_m) == sign(f_lo)
        tau_lo = jnp.where(keep, tau_m, tau_lo)

    # p_g holds relu(att - tau_m)^2 from the final iteration; `total` is its
    # per-cross sum (normalizer, ensure_sum_one).  Exact divide on purpose:
    # approx reciprocal error would propagate through exp near the tolerance.
    inv_total = 1.0 / total

    # gate * value  (value already permuted to rows f*N + n by the wrapper)
    vcol = v_ref[...]                                   # (F*N, 1)
    aw_g = [p_g[g] * (vcol[SUB * g:SUB * (g + 1), :] * inv_total)
            for g in range(ngrp)]                       # each (8, TB)

    # ---- cross features: outT[n*E+e, b] = exp(sum_f aw[f,n,b] * x[b,f,e]) --
    # Batch stays on lanes.  x slabs are re-read per cross so the live
    # accumulator is a single (E, TB) slab; per-cross stores are lane-dense
    # and let the exp (EUP slot) overlap the next cross's MACs.
    for n in range(N):
        acc = jnp.zeros((E, TB), jnp.float32)
        for f in range(F):
            g, fi = divmod(f, fpg)
            row = fi * N + n
            w_fn = aw_g[g][row:row + 1, :]              # (1, TB) sublane bcast
            acc = acc + w_fn * xt_ref[f * E:(f + 1) * E, :]
        o_ref[n * E:(n + 1) * E, :] = jnp.exp(acc).astype(o_ref.dtype)


def cross_feature(x, bilinear_w, query, value, *, block_b=256):
    B, F, E = x.shape
    N = query.shape[0]
    assert SUB % N == 0 and (N & (N - 1)) == 0, "ncross must be a power of 2 <= 8"
    assert F % (SUB // N) == 0, "nfield must fill whole 8-sublane groups"

    scale = float(E) ** -0.5
    # Fold bilinear_w, query, 1/sqrt(E) and the entmax (alpha-1) prescale into
    # one block-diagonal weight:  W[f*N + n, f*E + e] = (q @ W_b * c)[n, e].
    qws = (query @ bilinear_w) * (scale * (ALPHA - 1.0))           # (N, E)
    w_blk = jnp.kron(jnp.eye(F, dtype=qws.dtype), qws)             # (F*N, F*E)
    # value in matching row order, as a lane-broadcastable column
    v_col = value.T.reshape(F * N, 1)                              # [f*N+n] = v[n,f]

    # batch on the lane axis: (F*E, B); layout plumbing done outside the kernel
    xt = x.reshape(B, F * E).T

    tb = min(block_b, B)
    tb = ((tb + 127) // 128) * 128            # lane-dense tiles
    nb = pl.cdiv(B, tb)
    bp = nb * tb
    if bp != B:
        xt = jnp.pad(xt, ((0, 0), (0, bp - B)))   # pad cols: exp(0)=1, sliced off

    kernel = functools.partial(cross_feature_kernel, nfield=F, nemb=E, ncross=N)
    out_t = pl.pallas_call(
        kernel,
        out_shape=jax.ShapeDtypeStruct((N * E, bp), jnp.float32),
        grid_spec=pltpu.PrefetchScalarGridSpec(
            num_scalar_prefetch=0,
            grid=(nb,),
            in_specs=[
                pl.BlockSpec((F * E, tb), lambda b: (0, b)),
                pl.BlockSpec((F * N, F * E), lambda b: (0, 0)),
                pl.BlockSpec((F * N, 1), lambda b: (0, 0)),
            ],
            out_specs=pl.BlockSpec((N * E, tb), lambda b: (0, b)),
        ),
        compiler_params=pltpu.CompilerParams(
            dimension_semantics=("parallel",)),
    )(xt, w_blk, v_col)

    return out_t[:, :B].T.reshape(B, N, E).astype(x.dtype)


# ---- pure-JAX reference (original op order, 50-iteration bisection) ---------
def _entmax_bisect_15_ref(z, n_iter=50):
    am1 = ALPHA - 1.0
    d = z.shape[-1]
    xh = z * am1
    max_val = jnp.max(xh, axis=-1, keepdims=True)
    tau_lo = max_val - 1.0
    tau_hi = max_val - (1.0 / d) ** am1
    r_lo = jnp.maximum(xh - tau_lo, 0.0)
    f_lo = jnp.sum(r_lo * r_lo, axis=-1, keepdims=True) - 1.0
    dm = tau_hi - tau_lo
    tau_m = tau_lo

    def body(_, carry):
        tau_lo, dm, _tau_m = carry
        dm = dm * 0.5
        tau_m = tau_lo + dm
        r = jnp.maximum(xh - tau_m, 0.0)
        f_m = jnp.sum(r * r, axis=-1, keepdims=True) - 1.0
        keep = (f_m * f_lo) >= 0.0
        tau_lo = jnp.where(keep, tau_m, tau_lo)
        return (tau_lo, dm, tau_m)

    tau_lo, dm, tau_m = lax.fori_loop(0, n_iter, body, (tau_lo, dm, tau_m))
    r = jnp.maximum(xh - tau_m, 0.0)
    p = r * r
    return p / jnp.sum(p, axis=-1, keepdims=True)


def cross_feature_ref(x, w, q, v):
    scale = x.shape[-1] ** -0.5
    key = jnp.einsum('bfe,de->bfd', x, w)
    att = jnp.einsum('bfd,nd->bnf', key, q) * scale
    gate = _entmax_bisect_15_ref(att)
    attn_w = gate * v[None, :, :]
    return jnp.exp(jnp.einsum('bfe,bnf->bne', x, attn_w))


def xavier_uniform(key, shape, gain=1.414):
    fan_out, fan_in = shape                  # torch convention for 2-D params
    limit = gain * (6.0 / (fan_in + fan_out)) ** 0.5
    return jax.random.uniform(key, shape, jnp.float32, -limit, limit)


if __name__ == "__main__":
    B, F, E, N = 512, 8, 32, 4               # batch, nfield, nemb, ncross

    root = jax.random.PRNGKey(0)
    kx, kw, kq, kv = jax.random.split(root, 4)

    x = jax.random.normal(kx, (B, F, E), jnp.float32)
    bilinear_w = xavier_uniform(kw, (E, E))
    query = xavier_uniform(kq, (N, E))
    value = xavier_uniform(kv, (N, F))

    out = jax.block_until_ready(cross_feature(x, bilinear_w, query, value))
    ref = jax.block_until_ready(cross_feature_ref(x, bilinear_w, query, value))

    assert out.shape == (B, N, E), out.shape
    max_err = float(jnp.max(jnp.abs(out - ref)))
    assert jnp.allclose(out, ref, rtol=1e-4, atol=1e-5), max_err
    print("KERNEL_OK")
</pallas_src>

<mosaic_0001>
module attributes {stable_mosaic.version = 11 : i64} {
  func.func @cross_feature_kernel(%arg0: i32, %arg1: memref<256x256xf32, #tpu.memory_space<vmem>>, %arg2: memref<32x256xf32, #tpu.memory_space<vmem>>, %arg3: memref<32x1xf32, #tpu.memory_space<vmem>>, %arg4: memref<128x256xf32, #tpu.memory_space<vmem>>) attributes {dimension_semantics = [#tpu.dimension_semantics<parallel>], iteration_bounds = array<i64: 2>, scalar_prefetch = 0 : i64, scratch_operands = 0 : i64, tpu.core_type = #tpu.core_type<tc>, window_params = [{transform_indices = @transform_0, window_bounds = array<i64: 256, 256>}, {pipeline_mode = #tpu.pipeline_mode<synchronous>, transform_indices = @transform_1, window_bounds = array<i64: 32, 256>}, {pipeline_mode = #tpu.pipeline_mode<synchronous>, transform_indices = @transform_2, window_bounds = array<i64: 32, 1>}, {transform_indices = @transform_3, window_bounds = array<i64: 128, 256>}]} {
    %c0 = arith.constant 0 : index
    %c0_0 = arith.constant 0 : index
    %0 = vector.load %arg2[%c0, %c0_0] : memref<32x256xf32, #tpu.memory_space<vmem>>, vector<32x256xf32>
    %c0_1 = arith.constant 0 : index
    %c0_2 = arith.constant 0 : index
    %1 = vector.load %arg1[%c0_1, %c0_2] : memref<256x256xf32, #tpu.memory_space<vmem>>, vector<256x256xf32>
    %cst = arith.constant dense<0.000000e+00> : vector<32x256xf32>
    %2 = tpu.matmul %0, %1, %cst {dimension_numbers = #tpu.dot_dimension_numbers<[1], [0], [0], [1], [0, 0, 1, 1], [], []>} : vector<32x256xf32>, vector<256x256xf32>, vector<32x256xf32> -> vector<32x256xf32>
    %3 = vector.extract_strided_slice %2 {offsets = [0, 0], sizes = [8, 256], strides = [1, 1]} : vector<32x256xf32> to vector<8x256xf32>
    %4 = vector.extract_strided_slice %2 {offsets = [8, 0], sizes = [8, 256], strides = [1, 1]} : vector<32x256xf32> to vector<8x256xf32>
    %5 = vector.extract_strided_slice %2 {offsets = [16, 0], sizes = [8, 256], strides = [1, 1]} : vector<32x256xf32> to vector<8x256xf32>
    %6 = vector.extract_strided_slice %2 {offsets = [24, 0], sizes = [8, 256], strides = [1, 1]} : vector<32x256xf32> to vector<8x256xf32>
    %7 = arith.maximumf %3, %4 : vector<8x256xf32>
    %8 = arith.maximumf %7, %5 : vector<8x256xf32>
    %9 = arith.maximumf %8, %6 : vector<8x256xf32>
    %c4_i32 = arith.constant 4 : i32
    %10 = tpu.dynamic_rotate %9 by %c4_i32 dim 0 : vector<8x256xf32>, i32 -> vector<8x256xf32>
    %11 = arith.maximumf %9, %10 : vector<8x256xf32>
    %cst_3 = arith.constant 1.000000e+00 : f32
    %12 = vector.broadcast %cst_3 : f32 to vector<8x256xf32>
    %13 = arith.subf %11, %12 : vector<8x256xf32>
    %cst_4 = arith.constant 0.353553385 : f32
    %14 = vector.broadcast %cst_4 : f32 to vector<8x256xf32>
    %15 = arith.subf %11, %14 : vector<8x256xf32>
    %16 = arith.subf %15, %13 : vector<8x256xf32>
    %cst_5 = arith.constant 0.000000e+00 : f32
    %17 = vector.broadcast %cst_5 : f32 to vector<8x256xf32>
    %18 = arith.subf %3, %13 : vector<8x256xf32>
    %cst_6 = arith.constant 0.000000e+00 : f32
    %19 = vector.broadcast %cst_6 : f32 to vector<8x256xf32>
    %20 = arith.maximumf %18, %19 : vector<8x256xf32>
    %21 = arith.mulf %20, %20 : vector<8x256xf32>
    %22 = arith.addf %17, %21 : vector<8x256xf32>
    %23 = arith.subf %4, %13 : vector<8x256xf32>
    %cst_7 = arith.constant 0.000000e+00 : f32
    %24 = vector.broadcast %cst_7 : f32 to vector<8x256xf32>
    %25 = arith.maximumf %23, %24 : vector<8x256xf32>
    %26 = arith.mulf %25, %25 : vector<8x256xf32>
    %27 = arith.addf %22, %26 : vector<8x256xf32>
    %28 = arith.subf %5, %13 : vector<8x256xf32>
    %cst_8 = arith.constant 0.000000e+00 : f32
    %29 = vector.broadcast %cst_8 : f32 to vector<8x256xf32>
    %30 = arith.maximumf %28, %29 : vector<8x256xf32>
    %31 = arith.mulf %30, %30 : vector<8x256xf32>
    %32 = arith.addf %27, %31 : vector<8x256xf32>
    %33 = arith.subf %6, %13 : vector<8x256xf32>
    %cst_9 = arith.constant 0.000000e+00 : f32
    %34 = vector.broadcast %cst_9 : f32 to vector<8x256xf32>
    %35 = arith.maximumf %33, %34 : vector<8x256xf32>
    %36 = arith.mulf %35, %35 : vector<8x256xf32>
    %37 = arith.addf %32, %36 : vector<8x256xf32>
    %c4_i32_10 = arith.constant 4 : i32
    %38 = tpu.dynamic_rotate %37 by %c4_i32_10 dim 0 : vector<8x256xf32>, i32 -> vector<8x256xf32>
    %39 = arith.addf %37, %38 : vector<8x256xf32>
    %cst_11 = arith.constant 1.000000e+00 : f32
    %40 = vector.broadcast %cst_11 : f32 to vector<8x256xf32>
    %41 = arith.cmpf oge, %39, %40 : vector<8x256xf32>
    %cst_12 = arith.constant 5.000000e-01 : f32
    %42 = vector.broadcast %cst_12 : f32 to vector<8x256xf32>
    %43 = arith.mulf %16, %42 : vector<8x256xf32>
    %44 = arith.addf %13, %43 : vector<8x256xf32>
    %cst_13 = arith.constant 0.000000e+00 : f32
    %45 = vector.broadcast %cst_13 : f32 to vector<8x256xf32>
    %46 = arith.subf %3, %44 : vector<8x256xf32>
    %cst_14 = arith.constant 0.000000e+00 : f32
    %47 = vector.broadcast %cst_14 : f32 to vector<8x256xf32>
    %48 = arith.maximumf %46, %47 : vector<8x256xf32>
    %49 = arith.mulf %48, %48 : vector<8x256xf32>
    %50 = arith.addf %45, %49 : vector<8x256xf32>
    %51 = arith.subf %4, %44 : vector<8x256xf32>
    %cst_15 = arith.constant 0.000000e+00 : f32
    %52 = vector.broadcast %cst_15 : f32 to vector<8x256xf32>
    %53 = arith.maximumf %51, %52 : vector<8x256xf32>
    %54 = arith.mulf %53, %53 : vector<8x256xf32>
    %55 = arith.addf %50, %54 : vector<8x256xf32>
    %56 = arith.subf %5, %44 : vector<8x256xf32>
    %cst_16 = arith.constant 0.000000e+00 : f32
    %57 = vector.broadcast %cst_16 : f32 to vector<8x256xf32>
    %58 = arith.maximumf %56, %57 : vector<8x256xf32>
    %59 = arith.mulf %58, %58 : vector<8x256xf32>
    %60 = arith.addf %55, %59 : vector<8x256xf32>
    %61 = arith.subf %6, %44 : vector<8x256xf32>
    %cst_17 = arith.constant 0.000000e+00 : f32
    %62 = vector.broadcast %cst_17 : f32 to vector<8x256xf32>
    %63 = arith.maximumf %61, %62 : vector<8x256xf32>
    %64 = arith.mulf %63, %63 : vector<8x256xf32>
    %65 = arith.addf %60, %64 : vector<8x256xf32>
    %c4_i32_18 = arith.constant 4 : i32
    %66 = tpu.dynamic_rotate %65 by %c4_i32_18 dim 0 : vector<8x256xf32>, i32 -> vector<8x256xf32>
    %67 = arith.addf %65, %66 : vector<8x256xf32>
    %cst_19 = arith.constant 1.000000e+00 : f32
    %68 = vector.broadcast %cst_19 : f32 to vector<8x256xf32>
    %69 = arith.cmpf oge, %67, %68 : vector<8x256xf32>
    %70 = arith.xori %69, %41 : vector<8x256xi1>
    %cst_20 = arith.constant dense<true> : vector<8x256xi1>
    %71 = arith.xori %70, %cst_20 : vector<8x256xi1>
    %72 = arith.select %71, %44, %13 : vector<8x256xi1>, vector<8x256xf32>
    %cst_21 = arith.constant 5.000000e-01 : f32
    %73 = vector.broadcast %cst_21 : f32 to vector<8x256xf32>
    %74 = arith.mulf %43, %73 : vector<8x256xf32>
    %75 = arith.addf %72, %74 : vector<8x256xf32>
    %cst_22 = arith.constant 0.000000e+00 : f32
    %76 = vector.broadcast %cst_22 : f32 to vector<8x256xf32>
    %77 = arith.subf %3, %75 : vector<8x256xf32>
    %cst_23 = arith.constant 0.000000e+00 : f32
    %78 = vector.broadcast %cst_23 : f32 to vector<8x256xf32>
    %79 = arith.maximumf %77, %78 : vector<8x256xf32>
    %80 = arith.mulf %79, %79 : vector<8x256xf32>
    %81 = arith.addf %76, %80 : vector<8x256xf32>
    %82 = arith.subf %4, %75 : vector<8x256xf32>
    %cst_24 = arith.constant 0.000000e+00 : f32
    %83 = vector.broadcast %cst_24 : f32 to vector<8x256xf32>
    %84 = arith.maximumf %82, %83 : vector<8x256xf32>
    %85 = arith.mulf %84, %84 : vector<8x256xf32>
    %86 = arith.addf %81, %85 : vector<8x256xf32>
    %87 = arith.subf %5, %75 : vector<8x256xf32>
    %cst_25 = arith.constant 0.000000e+00 : f32
    %88 = vector.broadcast %cst_25 : f32 to vector<8x256xf32>
    %89 = arith.maximumf %87, %88 : vector<8x256xf32>
    %90 = arith.mulf %89, %89 : vector<8x256xf32>
    %91 = arith.addf %86, %90 : vector<8x256xf32>
    %92 = arith.subf %6, %75 : vector<8x256xf32>
    %cst_26 = arith.constant 0.000000e+00 : f32
    %93 = vector.broadcast %cst_26 : f32 to vector<8x256xf32>
    %94 = arith.maximumf %92, %93 : vector<8x256xf32>
    %95 = arith.mulf %94, %94 : vector<8x256xf32>
    %96 = arith.addf %91, %95 : vector<8x256xf32>
    %c4_i32_27 = arith.constant 4 : i32
    %97 = tpu.dynamic_rotate %96 by %c4_i32_27 dim 0 : vector<8x256xf32>, i32 -> vector<8x256xf32>
    %98 = arith.addf %96, %97 : vector<8x256xf32>
    %cst_28 = arith.constant 1.000000e+00 : f32
    %99 = vector.broadcast %cst_28 : f32 to vector<8x256xf32>
    %100 = arith.cmpf oge, %98, %99 : vector<8x256xf32>
    %101 = arith.xori %100, %41 : vector<8x256xi1>
    %cst_29 = arith.constant dense<true> : vector<8x256xi1>
    %102 = arith.xori %101, %cst_29 : vector<8x256xi1>
    %103 = arith.select %102, %75, %72 : vector<8x256xi1>, vector<8x256xf32>
    %cst_30 = arith.constant 5.000000e-01 : f32
    %104 = vector.broadcast %cst_30 : f32 to vector<8x256xf32>
    %105 = arith.mulf %74, %104 : vector<8x256xf32>
    %106 = arith.addf %103, %105 : vector<8x256xf32>
    %cst_31 = arith.constant 0.000000e+00 : f32
    %107 = vector.broadcast %cst_31 : f32 to vector<8x256xf32>
    %108 = arith.subf %3, %106 : vector<8x256xf32>
    %cst_32 = arith.constant 0.000000e+00 : f32
    %109 = vector.broadcast %cst_32 : f32 to vector<8x256xf32>
    %110 = arith.maximumf %108, %109 : vector<8x256xf32>
    %111 = arith.mulf %110, %110 : vector<8x256xf32>
    %112 = arith.addf %107, %111 : vector<8x256xf32>
    %113 = arith.subf %4, %106 : vector<8x256xf32>
    %cst_33 = arith.constant 0.000000e+00 : f32
    %114 = vector.broadcast %cst_33 : f32 to vector<8x256xf32>
    %115 = arith.maximumf %113, %114 : vector<8x256xf32>
    %116 = arith.mulf %115, %115 : vector<8x256xf32>
    %117 = arith.addf %112, %116 : vector<8x256xf32>
    %118 = arith.subf %5, %106 : vector<8x256xf32>
    %cst_34 = arith.constant 0.000000e+00 : f32
    %119 = vector.broadcast %cst_34 : f32 to vector<8x256xf32>
    %120 = arith.maximumf %118, %119 : vector<8x256xf32>
    %121 = arith.mulf %120, %120 : vector<8x256xf32>
    %122 = arith.addf %117, %121 : vector<8x256xf32>
    %123 = arith.subf %6, %106 : vector<8x256xf32>
    %cst_35 = arith.constant 0.000000e+00 : f32
    %124 = vector.broadcast %cst_35 : f32 to vector<8x256xf32>
    %125 = arith.maximumf %123, %124 : vector<8x256xf32>
    %126 = arith.mulf %125, %125 : vector<8x256xf32>
    %127 = arith.addf %122, %126 : vector<8x256xf32>
    %c4_i32_36 = arith.constant 4 : i32
    %128 = tpu.dynamic_rotate %127 by %c4_i32_36 dim 0 : vector<8x256xf32>, i32 -> vector<8x256xf32>
    %129 = arith.addf %127, %128 : vector<8x256xf32>
    %cst_37 = arith.constant 1.000000e+00 : f32
    %130 = vector.broadcast %cst_37 : f32 to vector<8x256xf32>
    %131 = arith.cmpf oge, %129, %130 : vector<8x256xf32>
    %132 = arith.xori %131, %41 : vector<8x256xi1>
    %cst_38 = arith.constant dense<true> : vector<8x256xi1>
    %133 = arith.xori %132, %cst_38 : vector<8x256xi1>
    %134 = arith.select %133, %106, %103 : vector<8x256xi1>, vector<8x256xf32>
    %cst_39 = arith.constant 5.000000e-01 : f32
    %135 = vector.broadcast %cst_39 : f32 to vector<8x256xf32>
    %136 = arith.mulf %105, %135 : vector<8x256xf32>
    %137 = arith.addf %134, %136 : vector<8x256xf32>
    %cst_40 = arith.constant 0.000000e+00 : f32
    %138 = vector.broadcast %cst_40 : f32 to vector<8x256xf32>
    %139 = arith.subf %3, %137 : vector<8x256xf32>
    %cst_41 = arith.constant 0.000000e+00 : f32
    %140 = vector.broadcast %cst_41 : f32 to vector<8x256xf32>
    %141 = arith.maximumf %139, %140 : vector<8x256xf32>
    %142 = arith.mulf %141, %141 : vector<8x256xf32>
    %143 = arith.addf %138, %142 : vector<8x256xf32>
    %144 = arith.subf %4, %137 : vector<8x256xf32>
    %cst_42 = arith.constant 0.000000e+00 : f32
    %145 = vector.broadcast %cst_42 : f32 to vector<8x256xf32>
    %146 = arith.maximumf %144, %145 : vector<8x256xf32>
    %147 = arith.mulf %146, %146 : vector<8x256xf32>
    %148 = arith.addf %143, %147 : vector<8x256xf32>
    %149 = arith.subf %5, %137 : vector<8x256xf32>
    %cst_43 = arith.constant 0.000000e+00 : f32
    %150 = vector.broadcast %cst_43 : f32 to vector<8x256xf32>
    %151 = arith.maximumf %149, %150 : vector<8x256xf32>
    %152 = arith.mulf %151, %151 : vector<8x256xf32>
    %153 = arith.addf %148, %152 : vector<8x256xf32>
    %154 = arith.subf %6, %137 : vector<8x256xf32>
    %cst_44 = arith.constant 0.000000e+00 : f32
    %155 = vector.broadcast %cst_44 : f32 to vector<8x256xf32>
    %156 = arith.maximumf %154, %155 : vector<8x256xf32>
    %157 = arith.mulf %156, %156 : vector<8x256xf32>
    %158 = arith.addf %153, %157 : vector<8x256xf32>
    %c4_i32_45 = arith.constant 4 : i32
    %159 = tpu.dynamic_rotate %158 by %c4_i32_45 dim 0 : vector<8x256xf32>, i32 -> vector<8x256xf32>
    %160 = arith.addf %158, %159 : vector<8x256xf32>
    %cst_46 = arith.constant 1.000000e+00 : f32
    %161 = vector.broadcast %cst_46 : f32 to vector<8x256xf32>
    %162 = arith.cmpf oge, %160, %161 : vector<8x256xf32>
    %163 = arith.xori %162, %41 : vector<8x256xi1>
    %cst_47 = arith.constant dense<true> : vector<8x256xi1>
    %164 = arith.xori %163, %cst_47 : vector<8x256xi1>
    %165 = arith.select %164, %137, %134 : vector<8x256xi1>, vector<8x256xf32>
    %cst_48 = arith.constant 5.000000e-01 : f32
    %166 = vector.broadcast %cst_48 : f32 to vector<8x256xf32>
    %167 = arith.mulf %136, %166 : vector<8x256xf32>
    %168 = arith.addf %165, %167 : vector<8x256xf32>
    %cst_49 = arith.constant 0.000000e+00 : f32
    %169 = vector.broadcast %cst_49 : f32 to vector<8x256xf32>
    %170 = arith.subf %3, %168 : vector<8x256xf32>
    %cst_50 = arith.constant 0.000000e+00 : f32
    %171 = vector.broadcast %cst_50 : f32 to vector<8x256xf32>
    %172 = arith.maximumf %170, %171 : vector<8x256xf32>
    %173 = arith.mulf %172, %172 : vector<8x256xf32>
    %174 = arith.addf %169, %173 : vector<8x256xf32>
    %175 = arith.subf %4, %168 : vector<8x256xf32>
    %cst_51 = arith.constant 0.000000e+00 : f32
    %176 = vector.broadcast %cst_51 : f32 to vector<8x256xf32>
    %177 = arith.maximumf %175, %176 : vector<8x256xf32>
    %178 = arith.mulf %177, %177 : vector<8x256xf32>
    %179 = arith.addf %174, %178 : vector<8x256xf32>
    %180 = arith.subf %5, %168 : vector<8x256xf32>
    %cst_52 = arith.constant 0.000000e+00 : f32
    %181 = vector.broadcast %cst_52 : f32 to vector<8x256xf32>
    %182 = arith.maximumf %180, %181 : vector<8x256xf32>
    %183 = arith.mulf %182, %182 : vector<8x256xf32>
    %184 = arith.addf %179, %183 : vector<8x256xf32>
    %185 = arith.subf %6, %168 : vector<8x256xf32>
    %cst_53 = arith.constant 0.000000e+00 : f32
    %186 = vector.broadcast %cst_53 : f32 to vector<8x256xf32>
    %187 = arith.maximumf %185, %186 : vector<8x256xf32>
    %188 = arith.mulf %187, %187 : vector<8x256xf32>
    %189 = arith.addf %184, %188 : vector<8x256xf32>
    %c4_i32_54 = arith.constant 4 : i32
    %190 = tpu.dynamic_rotate %189 by %c4_i32_54 dim 0 : vector<8x256xf32>, i32 -> vector<8x256xf32>
    %191 = arith.addf %189, %190 : vector<8x256xf32>
    %cst_55 = arith.constant 1.000000e+00 : f32
    %192 = vector.broadcast %cst_55 : f32 to vector<8x256xf32>
    %193 = arith.cmpf oge, %191, %192 : vector<8x256xf32>
    %194 = arith.xori %193, %41 : vector<8x256xi1>
    %cst_56 = arith.constant dense<true> : vector<8x256xi1>
    %195 = arith.xori %194, %cst_56 : vector<8x256xi1>
    %196 = arith.select %195, %168, %165 : vector<8x256xi1>, vector<8x256xf32>
    %cst_57 = arith.constant 5.000000e-01 : f32
    %197 = vector.broadcast %cst_57 : f32 to vector<8x256xf32>
    %198 = arith.mulf %167, %197 : vector<8x256xf32>
    %199 = arith.addf %196, %198 : vector<8x256xf32>
    %cst_58 = arith.constant 0.000000e+00 : f32
    %200 = vector.broadcast %cst_58 : f32 to vector<8x256xf32>
    %201 = arith.subf %3, %199 : vector<8x256xf32>
    %cst_59 = arith.constant 0.000000e+00 : f32
    %202 = vector.broadcast %cst_59 : f32 to vector<8x256xf32>
    %203 = arith.maximumf %201, %202 : vector<8x256xf32>
    %204 = arith.mulf %203, %203 : vector<8x256xf32>
    %205 = arith.addf %200, %204 : vector<8x256xf32>
    %206 = arith.subf %4, %199 : vector<8x256xf32>
    %cst_60 = arith.constant 0.000000e+00 : f32
    %207 = vector.broadcast %cst_60 : f32 to vector<8x256xf32>
    %208 = arith.maximumf %206, %207 : vector<8x256xf32>
    %209 = arith.mulf %208, %208 : vector<8x256xf32>
    %210 = arith.addf %205, %209 : vector<8x256xf32>
    %211 = arith.subf %5, %199 : vector<8x256xf32>
    %cst_61 = arith.constant 0.000000e+00 : f32
    %212 = vector.broadcast %cst_61 : f32 to vector<8x256xf32>
    %213 = arith.maximumf %211, %212 : vector<8x256xf32>
    %214 = arith.mulf %213, %213 : vector<8x256xf32>
    %215 = arith.addf %210, %214 : vector<8x256xf32>
    %216 = arith.subf %6, %199 : vector<8x256xf32>
    %cst_62 = arith.constant 0.000000e+00 : f32
    %217 = vector.broadcast %cst_62 : f32 to vector<8x256xf32>
    %218 = arith.maximumf %216, %217 : vector<8x256xf32>
    %219 = arith.mulf %218, %218 : vector<8x256xf32>
    %220 = arith.addf %215, %219 : vector<8x256xf32>
    %c4_i32_63 = arith.constant 4 : i32
    %221 = tpu.dynamic_rotate %220 by %c4_i32_63 dim 0 : vector<8x256xf32>, i32 -> vector<8x256xf32>
    %222 = arith.addf %220, %221 : vector<8x256xf32>
    %cst_64 = arith.constant 1.000000e+00 : f32
    %223 = vector.broadcast %cst_64 : f32 to vector<8x256xf32>
    %224 = arith.cmpf oge, %222, %223 : vector<8x256xf32>
    %225 = arith.xori %224, %41 : vector<8x256xi1>
    %cst_65 = arith.constant dense<true> : vector<8x256xi1>
    %226 = arith.xori %225, %cst_65 : vector<8x256xi1>
    %227 = arith.select %226, %199, %196 : vector<8x256xi1>, vector<8x256xf32>
    %cst_66 = arith.constant 5.000000e-01 : f32
    %228 = vector.broadcast %cst_66 : f32 to vector<8x256xf32>
    %229 = arith.mulf %198, %228 : vector<8x256xf32>
    %230 = arith.addf %227, %229 : vector<8x256xf32>
    %cst_67 = arith.constant 0.000000e+00 : f32
    %231 = vector.broadcast %cst_67 : f32 to vector<8x256xf32>
    %232 = arith.subf %3, %230 : vector<8x256xf32>
    %cst_68 = arith.constant 0.000000e+00 : f32
    %233 = vector.broadcast %cst_68 : f32 to vector<8x256xf32>
    %234 = arith.maximumf %232, %233 : vector<8x256xf32>
    %235 = arith.mulf %234, %234 : vector<8x256xf32>
    %236 = arith.addf %231, %235 : vector<8x256xf32>
    %237 = arith.subf %4, %230 : vector<8x256xf32>
    %cst_69 = arith.constant 0.000000e+00 : f32
    %238 = vector.broadcast %cst_69 : f32 to vector<8x256xf32>
    %239 = arith.maximumf %237, %238 : vector<8x256xf32>
    %240 = arith.mulf %239, %239 : vector<8x256xf32>
    %241 = arith.addf %236, %240 : vector<8x256xf32>
    %242 = arith.subf %5, %230 : vector<8x256xf32>
    %cst_70 = arith.constant 0.000000e+00 : f32
    %243 = vector.broadcast %cst_70 : f32 to vector<8x256xf32>
    %244 = arith.maximumf %242, %243 : vector<8x256xf32>
    %245 = arith.mulf %244, %244 : vector<8x256xf32>
    %246 = arith.addf %241, %245 : vector<8x256xf32>
    %247 = arith.subf %6, %230 : vector<8x256xf32>
    %cst_71 = arith.constant 0.000000e+00 : f32
    %248 = vector.broadcast %cst_71 : f32 to vector<8x256xf32>
    %249 = arith.maximumf %247, %248 : vector<8x256xf32>
    %250 = arith.mulf %249, %249 : vector<8x256xf32>
    %251 = arith.addf %246, %250 : vector<8x256xf32>
    %c4_i32_72 = arith.constant 4 : i32
    %252 = tpu.dynamic_rotate %251 by %c4_i32_72 dim 0 : vector<8x256xf32>, i32 -> vector<8x256xf32>
    %253 = arith.addf %251, %252 : vector<8x256xf32>
    %cst_73 = arith.constant 1.000000e+00 : f32
    %254 = vector.broadcast %cst_73 : f32 to vector<8x256xf32>
    %255 = arith.cmpf oge, %253, %254 : vector<8x256xf32>
    %256 = arith.xori %255, %41 : vector<8x256xi1>
    %cst_74 = arith.constant dense<true> : vector<8x256xi1>
    %257 = arith.xori %256, %cst_74 : vector<8x256xi1>
    %258 = arith.select %257, %230, %227 : vector<8x256xi1>, vector<8x256xf32>
    %cst_75 = arith.constant 5.000000e-01 : f32
    %259 = vector.broadcast %cst_75 : f32 to vector<8x256xf32>
    %260 = arith.mulf %229, %259 : vector<8x256xf32>
    %261 = arith.addf %258, %260 : vector<8x256xf32>
    %cst_76 = arith.constant 0.000000e+00 : f32
    %262 = vector.broadcast %cst_76 : f32 to vector<8x256xf32>
    %263 = arith.subf %3, %261 : vector<8x256xf32>
    %cst_77 = arith.constant 0.000000e+00 : f32
    %264 = vector.broadcast %cst_77 : f32 to vector<8x256xf32>
    %265 = arith.maximumf %263, %264 : vector<8x256xf32>
    %266 = arith.mulf %265, %265 : vector<8x256xf32>
    %267 = arith.addf %262, %266 : vector<8x256xf32>
    %268 = arith.subf %4, %261 : vector<8x256xf32>
    %cst_78 = arith.constant 0.000000e+00 : f32
    %269 = vector.broadcast %cst_78 : f32 to vector<8x256xf32>
    %270 = arith.maximumf %268, %269 : vector<8x256xf32>
    %271 = arith.mulf %270, %270 : vector<8x256xf32>
    %272 = arith.addf %267, %271 : vector<8x256xf32>
    %273 = arith.subf %5, %261 : vector<8x256xf32>
    %cst_79 = arith.constant 0.000000e+00 : f32
    %274 = vector.broadcast %cst_79 : f32 to vector<8x256xf32>
    %275 = arith.maximumf %273, %274 : vector<8x256xf32>
    %276 = arith.mulf %275, %275 : vector<8x256xf32>
    %277 = arith.addf %272, %276 : vector<8x256xf32>
    %278 = arith.subf %6, %261 : vector<8x256xf32>
    %cst_80 = arith.constant 0.000000e+00 : f32
    %279 = vector.broadcast %cst_80 : f32 to vector<8x256xf32>
    %280 = arith.maximumf %278, %279 : vector<8x256xf32>
    %281 = arith.mulf %280, %280 : vector<8x256xf32>
    %282 = arith.addf %277, %281 : vector<8x256xf32>
    %c4_i32_81 = arith.constant 4 : i32
    %283 = tpu.dynamic_rotate %282 by %c4_i32_81 dim 0 : vector<8x256xf32>, i32 -> vector<8x256xf32>
    %284 = arith.addf %282, %283 : vector<8x256xf32>
    %cst_82 = arith.constant 1.000000e+00 : f32
    %285 = vector.broadcast %cst_82 : f32 to vector<8x256xf32>
    %286 = arith.cmpf oge, %284, %285 : vector<8x256xf32>
    %287 = arith.xori %286, %41 : vector<8x256xi1>
    %cst_83 = arith.constant dense<true> : vector<8x256xi1>
    %288 = arith.xori %287, %cst_83 : vector<8x256xi1>
    %289 = arith.select %288, %261, %258 : vector<8x256xi1>, vector<8x256xf32>
    %cst_84 = arith.constant 5.000000e-01 : f32
    %290 = vector.broadcast %cst_84 : f32 to vector<8x256xf32>
    %291 = arith.mulf %260, %290 : vector<8x256xf32>
    %292 = arith.addf %289, %291 : vector<8x256xf32>
    %cst_85 = arith.constant 0.000000e+00 : f32
    %293 = vector.broadcast %cst_85 : f32 to vector<8x256xf32>
    %294 = arith.subf %3, %292 : vector<8x256xf32>
    %cst_86 = arith.constant 0.000000e+00 : f32
    %295 = vector.broadcast %cst_86 : f32 to vector<8x256xf32>
    %296 = arith.maximumf %294, %295 : vector<8x256xf32>
    %297 = arith.mulf %296, %296 : vector<8x256xf32>
    %298 = arith.addf %293, %297 : vector<8x256xf32>
    %299 = arith.subf %4, %292 : vector<8x256xf32>
    %cst_87 = arith.constant 0.000000e+00 : f32
    %300 = vector.broadcast %cst_87 : f32 to vector<8x256xf32>
    %301 = arith.maximumf %299, %300 : vector<8x256xf32>
    %302 = arith.mulf %301, %301 : vector<8x256xf32>
    %303 = arith.addf %298, %302 : vector<8x256xf32>
    %304 = arith.subf %5, %292 : vector<8x256xf32>
    %cst_88 = arith.constant 0.000000e+00 : f32
    %305 = vector.broadcast %cst_88 : f32 to vector<8x256xf32>
    %306 = arith.maximumf %304, %305 : vector<8x256xf32>
    %307 = arith.mulf %306, %306 : vector<8x256xf32>
    %308 = arith.addf %303, %307 : vector<8x256xf32>
    %309 = arith.subf %6, %292 : vector<8x256xf32>
    %cst_89 = arith.constant 0.000000e+00 : f32
    %310 = vector.broadcast %cst_89 : f32 to vector<8x256xf32>
    %311 = arith.maximumf %309, %310 : vector<8x256xf32>
    %312 = arith.mulf %311, %311 : vector<8x256xf32>
    %313 = arith.addf %308, %312 : vector<8x256xf32>
    %c4_i32_90 = arith.constant 4 : i32
    %314 = tpu.dynamic_rotate %313 by %c4_i32_90 dim 0 : vector<8x256xf32>, i32 -> vector<8x256xf32>
    %315 = arith.addf %313, %314 : vector<8x256xf32>
    %cst_91 = arith.constant 1.000000e+00 : f32
    %316 = vector.broadcast %cst_91 : f32 to vector<8x256xf32>
    %317 = arith.cmpf oge, %315, %316 : vector<8x256xf32>
    %318 = arith.xori %317, %41 : vector<8x256xi1>
    %cst_92 = arith.constant dense<true> : vector<8x256xi1>
    %319 = arith.xori %318, %cst_92 : vector<8x256xi1>
    %320 = arith.select %319, %292, %289 : vector<8x256xi1>, vector<8x256xf32>
    %cst_93 = arith.constant 5.000000e-01 : f32
    %321 = vector.broadcast %cst_93 : f32 to vector<8x256xf32>
    %322 = arith.mulf %291, %321 : vector<8x256xf32>
    %323 = arith.addf %320, %322 : vector<8x256xf32>
    %cst_94 = arith.constant 0.000000e+00 : f32
    %324 = vector.broadcast %cst_94 : f32 to vector<8x256xf32>
    %325 = arith.subf %3, %323 : vector<8x256xf32>
    %cst_95 = arith.constant 0.000000e+00 : f32
    %326 = vector.broadcast %cst_95 : f32 to vector<8x256xf32>
    %327 = arith.maximumf %325, %326 : vector<8x256xf32>
    %328 = arith.mulf %327, %327 : vector<8x256xf32>
    %329 = arith.addf %324, %328 : vector<8x256xf32>
    %330 = arith.subf %4, %323 : vector<8x256xf32>
    %cst_96 = arith.constant 0.000000e+00 : f32
    %331 = vector.broadcast %cst_96 : f32 to vector<8x256xf32>
    %332 = arith.maximumf %330, %331 : vector<8x256xf32>
    %333 = arith.mulf %332, %332 : vector<8x256xf32>
    %334 = arith.addf %329, %333 : vector<8x256xf32>
    %335 = arith.subf %5, %323 : vector<8x256xf32>
    %cst_97 = arith.constant 0.000000e+00 : f32
    %336 = vector.broadcast %cst_97 : f32 to vector<8x256xf32>
    %337 = arith.maximumf %335, %336 : vector<8x256xf32>
    %338 = arith.mulf %337, %337 : vector<8x256xf32>
    %339 = arith.addf %334, %338 : vector<8x256xf32>
    %340 = arith.subf %6, %323 : vector<8x256xf32>
    %cst_98 = arith.constant 0.000000e+00 : f32
    %341 = vector.broadcast %cst_98 : f32 to vector<8x256xf32>
    %342 = arith.maximumf %340, %341 : vector<8x256xf32>
    %343 = arith.mulf %342, %342 : vector<8x256xf32>
    %344 = arith.addf %339, %343 : vector<8x256xf32>
    %c4_i32_99 = arith.constant 4 : i32
    %345 = tpu.dynamic_rotate %344 by %c4_i32_99 dim 0 : vector<8x256xf32>, i32 -> vector<8x256xf32>
    %346 = arith.addf %344, %345 : vector<8x256xf32>
    %cst_100 = arith.constant 1.000000e+00 : f32
    %347 = vector.broadcast %cst_100 : f32 to vector<8x256xf32>
    %348 = arith.cmpf oge, %346, %347 : vector<8x256xf32>
    %349 = arith.xori %348, %41 : vector<8x256xi1>
    %cst_101 = arith.constant dense<true> : vector<8x256xi1>
    %350 = arith.xori %349, %cst_101 : vector<8x256xi1>
    %351 = arith.select %350, %323, %320 : vector<8x256xi1>, vector<8x256xf32>
    %cst_102 = arith.constant 5.000000e-01 : f32
    %352 = vector.broadcast %cst_102 : f32 to vector<8x256xf32>
    %353 = arith.mulf %322, %352 : vector<8x256xf32>
    %354 = arith.addf %351, %353 : vector<8x256xf32>
    %cst_103 = arith.constant 0.000000e+00 : f32
    %355 = vector.broadcast %cst_103 : f32 to vector<8x256xf32>
    %356 = arith.subf %3, %354 : vector<8x256xf32>
    %cst_104 = arith.constant 0.000000e+00 : f32
    %357 = vector.broadcast %cst_104 : f32 to vector<8x256xf32>
    %358 = arith.maximumf %356, %357 : vector<8x256xf32>
    %359 = arith.mulf %358, %358 : vector<8x256xf32>
    %360 = arith.addf %355, %359 : vector<8x256xf32>
    %361 = arith.subf %4, %354 : vector<8x256xf32>
    %cst_105 = arith.constant 0.000000e+00 : f32
    %362 = vector.broadcast %cst_105 : f32 to vector<8x256xf32>
    %363 = arith.maximumf %361, %362 : vector<8x256xf32>
    %364 = arith.mulf %363, %363 : vector<8x256xf32>
    %365 = arith.addf %360, %364 : vector<8x256xf32>
    %366 = arith.subf %5, %354 : vector<8x256xf32>
    %cst_106 = arith.constant 0.000000e+00 : f32
    %367 = vector.broadcast %cst_106 : f32 to vector<8x256xf32>
    %368 = arith.maximumf %366, %367 : vector<8x256xf32>
    %369 = arith.mulf %368, %368 : vector<8x256xf32>
    %370 = arith.addf %365, %369 : vector<8x256xf32>
    %371 = arith.subf %6, %354 : vector<8x256xf32>
    %cst_107 = arith.constant 0.000000e+00 : f32
    %372 = vector.broadcast %cst_107 : f32 to vector<8x256xf32>
    %373 = arith.maximumf %371, %372 : vector<8x256xf32>
    %374 = arith.mulf %373, %373 : vector<8x256xf32>
    %375 = arith.addf %370, %374 : vector<8x256xf32>
    %c4_i32_108 = arith.constant 4 : i32
    %376 = tpu.dynamic_rotate %375 by %c4_i32_108 dim 0 : vector<8x256xf32>, i32 -> vector<8x256xf32>
    %377 = arith.addf %375, %376 : vector<8x256xf32>
    %cst_109 = arith.constant 1.000000e+00 : f32
    %378 = vector.broadcast %cst_109 : f32 to vector<8x256xf32>
    %379 = arith.cmpf oge, %377, %378 : vector<8x256xf32>
    %380 = arith.xori %379, %41 : vector<8x256xi1>
    %cst_110 = arith.constant dense<true> : vector<8x256xi1>
    %381 = arith.xori %380, %cst_110 : vector<8x256xi1>
    %382 = arith.select %381, %354, %351 : vector<8x256xi1>, vector<8x256xf32>
    %cst_111 = arith.constant 5.000000e-01 : f32
    %383 = vector.broadcast %cst_111 : f32 to vector<8x256xf32>
    %384 = arith.mulf %353, %383 : vector<8x256xf32>
    %385 = arith.addf %382, %384 : vector<8x256xf32>
    %cst_112 = arith.constant 0.000000e+00 : f32
    %386 = vector.broadcast %cst_112 : f32 to vector<8x256xf32>
    %387 = arith.subf %3, %385 : vector<8x256xf32>
    %cst_113 = arith.constant 0.000000e+00 : f32
    %388 = vector.broadcast %cst_113 : f32 to vector<8x256xf32>
    %389 = arith.maximumf %387, %388 : vector<8x256xf32>
    %390 = arith.mulf %389, %389 : vector<8x256xf32>
    %391 = arith.addf %386, %390 : vector<8x256xf32>
    %392 = arith.subf %4, %385 : vector<8x256xf32>
    %cst_114 = arith.constant 0.000000e+00 : f32
    %393 = vector.broadcast %cst_114 : f32 to vector<8x256xf32>
    %394 = arith.maximumf %392, %393 : vector<8x256xf32>
    %395 = arith.mulf %394, %394 : vector<8x256xf32>
    %396 = arith.addf %391, %395 : vector<8x256xf32>
    %397 = arith.subf %5, %385 : vector<8x256xf32>
    %cst_115 = arith.constant 0.000000e+00 : f32
    %398 = vector.broadcast %cst_115 : f32 to vector<8x256xf32>
    %399 = arith.maximumf %397, %398 : vector<8x256xf32>
    %400 = arith.mulf %399, %399 : vector<8x256xf32>
    %401 = arith.addf %396, %400 : vector<8x256xf32>
    %402 = arith.subf %6, %385 : vector<8x256xf32>
    %cst_116 = arith.constant 0.000000e+00 : f32
    %403 = vector.broadcast %cst_116 : f32 to vector<8x256xf32>
    %404 = arith.maximumf %402, %403 : vector<8x256xf32>
    %405 = arith.mulf %404, %404 : vector<8x256xf32>
    %406 = arith.addf %401, %405 : vector<8x256xf32>
    %c4_i32_117 = arith.constant 4 : i32
    %407 = tpu.dynamic_rotate %406 by %c4_i32_117 dim 0 : vector<8x256xf32>, i32 -> vector<8x256xf32>
    %408 = arith.addf %406, %407 : vector<8x256xf32>
    %cst_118 = arith.constant 1.000000e+00 : f32
    %409 = vector.broadcast %cst_118 : f32 to vector<8x256xf32>
    %410 = arith.cmpf oge, %408, %409 : vector<8x256xf32>
    %411 = arith.xori %410, %41 : vector<8x256xi1>
    %cst_119 = arith.constant dense<true> : vector<8x256xi1>
    %412 = arith.xori %411, %cst_119 : vector<8x256xi1>
    %413 = arith.select %412, %385, %382 : vector<8x256xi1>, vector<8x256xf32>
    %cst_120 = arith.constant 5.000000e-01 : f32
    %414 = vector.broadcast %cst_120 : f32 to vector<8x256xf32>
    %415 = arith.mulf %384, %414 : vector<8x256xf32>
    %416 = arith.addf %413, %415 : vector<8x256xf32>
    %cst_121 = arith.constant 0.000000e+00 : f32
    %417 = vector.broadcast %cst_121 : f32 to vector<8x256xf32>
    %418 = arith.subf %3, %416 : vector<8x256xf32>
    %cst_122 = arith.constant 0.000000e+00 : f32
    %419 = vector.broadcast %cst_122 : f32 to vector<8x256xf32>
    %420 = arith.maximumf %418, %419 : vector<8x256xf32>
    %421 = arith.mulf %420, %420 : vector<8x256xf32>
    %422 = arith.addf %417, %421 : vector<8x256xf32>
    %423 = arith.subf %4, %416 : vector<8x256xf32>
    %cst_123 = arith.constant 0.000000e+00 : f32
    %424 = vector.broadcast %cst_123 : f32 to vector<8x256xf32>
    %425 = arith.maximumf %423, %424 : vector<8x256xf32>
    %426 = arith.mulf %425, %425 : vector<8x256xf32>
    %427 = arith.addf %422, %426 : vector<8x256xf32>
    %428 = arith.subf %5, %416 : vector<8x256xf32>
    %cst_124 = arith.constant 0.000000e+00 : f32
    %429 = vector.broadcast %cst_124 : f32 to vector<8x256xf32>
    %430 = arith.maximumf %428, %429 : vector<8x256xf32>
    %431 = arith.mulf %430, %430 : vector<8x256xf32>
    %432 = arith.addf %427, %431 : vector<8x256xf32>
    %433 = arith.subf %6, %416 : vector<8x256xf32>
    %cst_125 = arith.constant 0.000000e+00 : f32
    %434 = vector.broadcast %cst_125 : f32 to vector<8x256xf32>
    %435 = arith.maximumf %433, %434 : vector<8x256xf32>
    %436 = arith.mulf %435, %435 : vector<8x256xf32>
    %437 = arith.addf %432, %436 : vector<8x256xf32>
    %c4_i32_126 = arith.constant 4 : i32
    %438 = tpu.dynamic_rotate %437 by %c4_i32_126 dim 0 : vector<8x256xf32>, i32 -> vector<8x256xf32>
    %439 = arith.addf %437, %438 : vector<8x256xf32>
    %cst_127 = arith.constant 1.000000e+00 : f32
    %440 = vector.broadcast %cst_127 : f32 to vector<8x256xf32>
    %441 = arith.cmpf oge, %439, %440 : vector<8x256xf32>
    %442 = arith.xori %441, %41 : vector<8x256xi1>
    %cst_128 = arith.constant dense<true> : vector<8x256xi1>
    %443 = arith.xori %442, %cst_128 : vector<8x256xi1>
    %444 = arith.select %443, %416, %413 : vector<8x256xi1>, vector<8x256xf32>
    %cst_129 = arith.constant 5.000000e-01 : f32
    %445 = vector.broadcast %cst_129 : f32 to vector<8x256xf32>
    %446 = arith.mulf %415, %445 : vector<8x256xf32>
    %447 = arith.addf %444, %446 : vector<8x256xf32>
    %cst_130 = arith.constant 0.000000e+00 : f32
    %448 = vector.broadcast %cst_130 : f32 to vector<8x256xf32>
    %449 = arith.subf %3, %447 : vector<8x256xf32>
    %cst_131 = arith.constant 0.000000e+00 : f32
    %450 = vector.broadcast %cst_131 : f32 to vector<8x256xf32>
    %451 = arith.maximumf %449, %450 : vector<8x256xf32>
    %452 = arith.mulf %451, %451 : vector<8x256xf32>
    %453 = arith.addf %448, %452 : vector<8x256xf32>
    %454 = arith.subf %4, %447 : vector<8x256xf32>
    %cst_132 = arith.constant 0.000000e+00 : f32
    %455 = vector.broadcast %cst_132 : f32 to vector<8x256xf32>
    %456 = arith.maximumf %454, %455 : vector<8x256xf32>
    %457 = arith.mulf %456, %456 : vector<8x256xf32>
    %458 = arith.addf %453, %457 : vector<8x256xf32>
    %459 = arith.subf %5, %447 : vector<8x256xf32>
    %cst_133 = arith.constant 0.000000e+00 : f32
    %460 = vector.broadcast %cst_133 : f32 to vector<8x256xf32>
    %461 = arith.maximumf %459, %460 : vector<8x256xf32>
    %462 = arith.mulf %461, %461 : vector<8x256xf32>
    %463 = arith.addf %458, %462 : vector<8x256xf32>
    %464 = arith.subf %6, %447 : vector<8x256xf32>
    %cst_134 = arith.constant 0.000000e+00 : f32
    %465 = vector.broadcast %cst_134 : f32 to vector<8x256xf32>
    %466 = arith.maximumf %464, %465 : vector<8x256xf32>
    %467 = arith.mulf %466, %466 : vector<8x256xf32>
    %468 = arith.addf %463, %467 : vector<8x256xf32>
    %c4_i32_135 = arith.constant 4 : i32
    %469 = tpu.dynamic_rotate %468 by %c4_i32_135 dim 0 : vector<8x256xf32>, i32 -> vector<8x256xf32>
    %470 = arith.addf %468, %469 : vector<8x256xf32>
    %cst_136 = arith.constant 1.000000e+00 : f32
    %471 = vector.broadcast %cst_136 : f32 to vector<8x256xf32>
    %472 = arith.cmpf oge, %470, %471 : vector<8x256xf32>
    %473 = arith.xori %472, %41 : vector<8x256xi1>
    %cst_137 = arith.constant dense<true> : vector<8x256xi1>
    %474 = arith.xori %473, %cst_137 : vector<8x256xi1>
    %475 = arith.select %474, %447, %444 : vector<8x256xi1>, vector<8x256xf32>
    %cst_138 = arith.constant 5.000000e-01 : f32
    %476 = vector.broadcast %cst_138 : f32 to vector<8x256xf32>
    %477 = arith.mulf %446, %476 : vector<8x256xf32>
    %478 = arith.addf %475, %477 : vector<8x256xf32>
    %cst_139 = arith.constant 0.000000e+00 : f32
    %479 = vector.broadcast %cst_139 : f32 to vector<8x256xf32>
    %480 = arith.subf %3, %478 : vector<8x256xf32>
    %cst_140 = arith.constant 0.000000e+00 : f32
    %481 = vector.broadcast %cst_140 : f32 to vector<8x256xf32>
    %482 = arith.maximumf %480, %481 : vector<8x256xf32>
    %483 = arith.mulf %482, %482 : vector<8x256xf32>
    %484 = arith.addf %479, %483 : vector<8x256xf32>
    %485 = arith.subf %4, %478 : vector<8x256xf32>
    %cst_141 = arith.constant 0.000000e+00 : f32
    %486 = vector.broadcast %cst_141 : f32 to vector<8x256xf32>
    %487 = arith.maximumf %485, %486 : vector<8x256xf32>
    %488 = arith.mulf %487, %487 : vector<8x256xf32>
    %489 = arith.addf %484, %488 : vector<8x256xf32>
    %490 = arith.subf %5, %478 : vector<8x256xf32>
    %cst_142 = arith.constant 0.000000e+00 : f32
    %491 = vector.broadcast %cst_142 : f32 to vector<8x256xf32>
    %492 = arith.maximumf %490, %491 : vector<8x256xf32>
    %493 = arith.mulf %492, %492 : vector<8x256xf32>
    %494 = arith.addf %489, %493 : vector<8x256xf32>
    %495 = arith.subf %6, %478 : vector<8x256xf32>
    %cst_143 = arith.constant 0.000000e+00 : f32
    %496 = vector.broadcast %cst_143 : f32 to vector<8x256xf32>
    %497 = arith.maximumf %495, %496 : vector<8x256xf32>
    %498 = arith.mulf %497, %497 : vector<8x256xf32>
    %499 = arith.addf %494, %498 : vector<8x256xf32>
    %c4_i32_144 = arith.constant 4 : i32
    %500 = tpu.dynamic_rotate %499 by %c4_i32_144 dim 0 : vector<8x256xf32>, i32 -> vector<8x256xf32>
    %501 = arith.addf %499, %500 : vector<8x256xf32>
    %cst_145 = arith.constant 1.000000e+00 : f32
    %502 = vector.broadcast %cst_145 : f32 to vector<8x256xf32>
    %503 = arith.cmpf oge, %501, %502 : vector<8x256xf32>
    %504 = arith.xori %503, %41 : vector<8x256xi1>
    %cst_146 = arith.constant dense<true> : vector<8x256xi1>
    %505 = arith.xori %504, %cst_146 : vector<8x256xi1>
    %506 = arith.select %505, %478, %475 : vector<8x256xi1>, vector<8x256xf32>
    %cst_147 = arith.constant 5.000000e-01 : f32
    %507 = vector.broadcast %cst_147 : f32 to vector<8x256xf32>
    %508 = arith.mulf %477, %507 : vector<8x256xf32>
    %509 = arith.addf %506, %508 : vector<8x256xf32>
    %cst_148 = arith.constant 0.000000e+00 : f32
    %510 = vector.broadcast %cst_148 : f32 to vector<8x256xf32>
    %511 = arith.subf %3, %509 : vector<8x256xf32>
    %cst_149 = arith.constant 0.000000e+00 : f32
    %512 = vector.broadcast %cst_149 : f32 to vector<8x256xf32>
    %513 = arith.maximumf %511, %512 : vector<8x256xf32>
    %514 = arith.mulf %513, %513 : vector<8x256xf32>
    %515 = arith.addf %510, %514 : vector<8x256xf32>
    %516 = arith.subf %4, %509 : vector<8x256xf32>
    %cst_150 = arith.constant 0.000000e+00 : f32
    %517 = vector.broadcast %cst_150 : f32 to vector<8x256xf32>
    %518 = arith.maximumf %516, %517 : vector<8x256xf32>
    %519 = arith.mulf %518, %518 : vector<8x256xf32>
    %520 = arith.addf %515, %519 : vector<8x256xf32>
    %521 = arith.subf %5, %509 : vector<8x256xf32>
    %cst_151 = arith.constant 0.000000e+00 : f32
    %522 = vector.broadcast %cst_151 : f32 to vector<8x256xf32>
    %523 = arith.maximumf %521, %522 : vector<8x256xf32>
    %524 = arith.mulf %523, %523 : vector<8x256xf32>
    %525 = arith.addf %520, %524 : vector<8x256xf32>
    %526 = arith.subf %6, %509 : vector<8x256xf32>
    %cst_152 = arith.constant 0.000000e+00 : f32
    %527 = vector.broadcast %cst_152 : f32 to vector<8x256xf32>
    %528 = arith.maximumf %526, %527 : vector<8x256xf32>
    %529 = arith.mulf %528, %528 : vector<8x256xf32>
    %530 = arith.addf %525, %529 : vector<8x256xf32>
    %c4_i32_153 = arith.constant 4 : i32
    %531 = tpu.dynamic_rotate %530 by %c4_i32_153 dim 0 : vector<8x256xf32>, i32 -> vector<8x256xf32>
    %532 = arith.addf %530, %531 : vector<8x256xf32>
    %cst_154 = arith.constant 1.000000e+00 : f32
    %533 = vector.broadcast %cst_154 : f32 to vector<8x256xf32>
    %534 = arith.cmpf oge, %532, %533 : vector<8x256xf32>
    %535 = arith.xori %534, %41 : vector<8x256xi1>
    %cst_155 = arith.constant dense<true> : vector<8x256xi1>
    %536 = arith.xori %535, %cst_155 : vector<8x256xi1>
    %537 = arith.select %536, %509, %506 : vector<8x256xi1>, vector<8x256xf32>
    %cst_156 = arith.constant 5.000000e-01 : f32
    %538 = vector.broadcast %cst_156 : f32 to vector<8x256xf32>
    %539 = arith.mulf %508, %538 : vector<8x256xf32>
    %540 = arith.addf %537, %539 : vector<8x256xf32>
    %cst_157 = arith.constant 0.000000e+00 : f32
    %541 = vector.broadcast %cst_157 : f32 to vector<8x256xf32>
    %542 = arith.subf %3, %540 : vector<8x256xf32>
    %cst_158 = arith.constant 0.000000e+00 : f32
    %543 = vector.broadcast %cst_158 : f32 to vector<8x256xf32>
    %544 = arith.maximumf %542, %543 : vector<8x256xf32>
    %545 = arith.mulf %544, %544 : vector<8x256xf32>
    %546 = arith.addf %541, %545 : vector<8x256xf32>
    %547 = arith.subf %4, %540 : vector<8x256xf32>
    %cst_159 = arith.constant 0.000000e+00 : f32
    %548 = vector.broadcast %cst_159 : f32 to vector<8x256xf32>
    %549 = arith.maximumf %547, %548 : vector<8x256xf32>
    %550 = arith.mulf %549, %549 : vector<8x256xf32>
    %551 = arith.addf %546, %550 : vector<8x256xf32>
    %552 = arith.subf %5, %540 : vector<8x256xf32>
    %cst_160 = arith.constant 0.000000e+00 : f32
    %553 = vector.broadcast %cst_160 : f32 to vector<8x256xf32>
    %554 = arith.maximumf %552, %553 : vector<8x256xf32>
    %555 = arith.mulf %554, %554 : vector<8x256xf32>
    %556 = arith.addf %551, %555 : vector<8x256xf32>
    %557 = arith.subf %6, %540 : vector<8x256xf32>
    %cst_161 = arith.constant 0.000000e+00 : f32
    %558 = vector.broadcast %cst_161 : f32 to vector<8x256xf32>
    %559 = arith.maximumf %557, %558 : vector<8x256xf32>
    %560 = arith.mulf %559, %559 : vector<8x256xf32>
    %561 = arith.addf %556, %560 : vector<8x256xf32>
    %c4_i32_162 = arith.constant 4 : i32
    %562 = tpu.dynamic_rotate %561 by %c4_i32_162 dim 0 : vector<8x256xf32>, i32 -> vector<8x256xf32>
    %563 = arith.addf %561, %562 : vector<8x256xf32>
    %cst_163 = arith.constant 1.000000e+00 : f32
    %564 = vector.broadcast %cst_163 : f32 to vector<8x256xf32>
    %565 = arith.cmpf oge, %563, %564 : vector<8x256xf32>
    %566 = arith.xori %565, %41 : vector<8x256xi1>
    %cst_164 = arith.constant dense<true> : vector<8x256xi1>
    %567 = arith.xori %566, %cst_164 : vector<8x256xi1>
    %568 = arith.select %567, %540, %537 : vector<8x256xi1>, vector<8x256xf32>
    %cst_165 = arith.constant 5.000000e-01 : f32
    %569 = vector.broadcast %cst_165 : f32 to vector<8x256xf32>
    %570 = arith.mulf %539, %569 : vector<8x256xf32>
    %571 = arith.addf %568, %570 : vector<8x256xf32>
    %cst_166 = arith.constant 0.000000e+00 : f32
    %572 = vector.broadcast %cst_166 : f32 to vector<8x256xf32>
    %573 = arith.subf %3, %571 : vector<8x256xf32>
    %cst_167 = arith.constant 0.000000e+00 : f32
    %574 = vector.broadcast %cst_167 : f32 to vector<8x256xf32>
    %575 = arith.maximumf %573, %574 : vector<8x256xf32>
    %576 = arith.mulf %575, %575 : vector<8x256xf32>
    %577 = arith.addf %572, %576 : vector<8x256xf32>
    %578 = arith.subf %4, %571 : vector<8x256xf32>
    %cst_168 = arith.constant 0.000000e+00 : f32
    %579 = vector.broadcast %cst_168 : f32 to vector<8x256xf32>
    %580 = arith.maximumf %578, %579 : vector<8x256xf32>
    %581 = arith.mulf %580, %580 : vector<8x256xf32>
    %582 = arith.addf %577, %581 : vector<8x256xf32>
    %583 = arith.subf %5, %571 : vector<8x256xf32>
    %cst_169 = arith.constant 0.000000e+00 : f32
    %584 = vector.broadcast %cst_169 : f32 to vector<8x256xf32>
    %585 = arith.maximumf %583, %584 : vector<8x256xf32>
    %586 = arith.mulf %585, %585 : vector<8x256xf32>
    %587 = arith.addf %582, %586 : vector<8x256xf32>
    %588 = arith.subf %6, %571 : vector<8x256xf32>
    %cst_170 = arith.constant 0.000000e+00 : f32
    %589 = vector.broadcast %cst_170 : f32 to vector<8x256xf32>
    %590 = arith.maximumf %588, %589 : vector<8x256xf32>
    %591 = arith.mulf %590, %590 : vector<8x256xf32>
    %592 = arith.addf %587, %591 : vector<8x256xf32>
    %c4_i32_171 = arith.constant 4 : i32
    %593 = tpu.dynamic_rotate %592 by %c4_i32_171 dim 0 : vector<8x256xf32>, i32 -> vector<8x256xf32>
    %594 = arith.addf %592, %593 : vector<8x256xf32>
    %cst_172 = arith.constant 1.000000e+00 : f32
    %595 = vector.broadcast %cst_172 : f32 to vector<8x256xf32>
    %596 = arith.cmpf oge, %594, %595 : vector<8x256xf32>
    %597 = arith.xori %596, %41 : vector<8x256xi1>
    %cst_173 = arith.constant dense<true> : vector<8x256xi1>
    %598 = arith.xori %597, %cst_173 : vector<8x256xi1>
    %599 = arith.select %598, %571, %568 : vector<8x256xi1>, vector<8x256xf32>
    %cst_174 = arith.constant 5.000000e-01 : f32
    %600 = vector.broadcast %cst_174 : f32 to vector<8x256xf32>
    %601 = arith.mulf %570, %600 : vector<8x256xf32>
    %602 = arith.addf %599, %601 : vector<8x256xf32>
    %cst_175 = arith.constant 0.000000e+00 : f32
    %603 = vector.broadcast %cst_175 : f32 to vector<8x256xf32>
    %604 = arith.subf %3, %602 : vector<8x256xf32>
    %cst_176 = arith.constant 0.000000e+00 : f32
    %605 = vector.broadcast %cst_176 : f32 to vector<8x256xf32>
    %606 = arith.maximumf %604, %605 : vector<8x256xf32>
    %607 = arith.mulf %606, %606 : vector<8x256xf32>
    %608 = arith.addf %603, %607 : vector<8x256xf32>
    %609 = arith.subf %4, %602 : vector<8x256xf32>
    %cst_177 = arith.constant 0.000000e+00 : f32
    %610 = vector.broadcast %cst_177 : f32 to vector<8x256xf32>
    %611 = arith.maximumf %609, %610 : vector<8x256xf32>
    %612 = arith.mulf %611, %611 : vector<8x256xf32>
    %613 = arith.addf %608, %612 : vector<8x256xf32>
    %614 = arith.subf %5, %602 : vector<8x256xf32>
    %cst_178 = arith.constant 0.000000e+00 : f32
    %615 = vector.broadcast %cst_178 : f32 to vector<8x256xf32>
    %616 = arith.maximumf %614, %615 : vector<8x256xf32>
    %617 = arith.mulf %616, %616 : vector<8x256xf32>
    %618 = arith.addf %613, %617 : vector<8x256xf32>
    %619 = arith.subf %6, %602 : vector<8x256xf32>
    %cst_179 = arith.constant 0.000000e+00 : f32
    %620 = vector.broadcast %cst_179 : f32 to vector<8x256xf32>
    %621 = arith.maximumf %619, %620 : vector<8x256xf32>
    %622 = arith.mulf %621, %621 : vector<8x256xf32>
    %623 = arith.addf %618, %622 : vector<8x256xf32>
    %c4_i32_180 = arith.constant 4 : i32
    %624 = tpu.dynamic_rotate %623 by %c4_i32_180 dim 0 : vector<8x256xf32>, i32 -> vector<8x256xf32>
    %625 = arith.addf %623, %624 : vector<8x256xf32>
    %cst_181 = arith.constant 1.000000e+00 : f32
    %626 = vector.broadcast %cst_181 : f32 to vector<8x256xf32>
    %627 = arith.cmpf oge, %625, %626 : vector<8x256xf32>
    %628 = arith.xori %627, %41 : vector<8x256xi1>
    %cst_182 = arith.constant dense<true> : vector<8x256xi1>
    %629 = arith.xori %628, %cst_182 : vector<8x256xi1>
    %630 = arith.select %629, %602, %599 : vector<8x256xi1>, vector<8x256xf32>
    %cst_183 = arith.constant 5.000000e-01 : f32
    %631 = vector.broadcast %cst_183 : f32 to vector<8x256xf32>
    %632 = arith.mulf %601, %631 : vector<8x256xf32>
    %633 = arith.addf %630, %632 : vector<8x256xf32>
    %cst_184 = arith.constant 0.000000e+00 : f32
    %634 = vector.broadcast %cst_184 : f32 to vector<8x256xf32>
    %635 = arith.subf %3, %633 : vector<8x256xf32>
    %cst_185 = arith.constant 0.000000e+00 : f32
    %636 = vector.broadcast %cst_185 : f32 to vector<8x256xf32>
    %637 = arith.maximumf %635, %636 : vector<8x256xf32>
    %638 = arith.mulf %637, %637 : vector<8x256xf32>
    %639 = arith.addf %634, %638 : vector<8x256xf32>
    %640 = arith.subf %4, %633 : vector<8x256xf32>
    %cst_186 = arith.constant 0.000000e+00 : f32
    %641 = vector.broadcast %cst_186 : f32 to vector<8x256xf32>
    %642 = arith.maximumf %640, %641 : vector<8x256xf32>
    %643 = arith.mulf %642, %642 : vector<8x256xf32>
    %644 = arith.addf %639, %643 : vector<8x256xf32>
    %645 = arith.subf %5, %633 : vector<8x256xf32>
    %cst_187 = arith.constant 0.000000e+00 : f32
    %646 = vector.broadcast %cst_187 : f32 to vector<8x256xf32>
    %647 = arith.maximumf %645, %646 : vector<8x256xf32>
    %648 = arith.mulf %647, %647 : vector<8x256xf32>
    %649 = arith.addf %644, %648 : vector<8x256xf32>
    %650 = arith.subf %6, %633 : vector<8x256xf32>
    %cst_188 = arith.constant 0.000000e+00 : f32
    %651 = vector.broadcast %cst_188 : f32 to vector<8x256xf32>
    %652 = arith.maximumf %650, %651 : vector<8x256xf32>
    %653 = arith.mulf %652, %652 : vector<8x256xf32>
    %654 = arith.addf %649, %653 : vector<8x256xf32>
    %c4_i32_189 = arith.constant 4 : i32
    %655 = tpu.dynamic_rotate %654 by %c4_i32_189 dim 0 : vector<8x256xf32>, i32 -> vector<8x256xf32>
    %656 = arith.addf %654, %655 : vector<8x256xf32>
    %cst_190 = arith.constant 1.000000e+00 : f32
    %657 = vector.broadcast %cst_190 : f32 to vector<8x256xf32>
    %658 = arith.cmpf oge, %656, %657 : vector<8x256xf32>
    %659 = arith.xori %658, %41 : vector<8x256xi1>
    %cst_191 = arith.constant dense<true> : vector<8x256xi1>
    %660 = arith.xori %659, %cst_191 : vector<8x256xi1>
    %661 = arith.select %660, %633, %630 : vector<8x256xi1>, vector<8x256xf32>
    %cst_192 = arith.constant 5.000000e-01 : f32
    %662 = vector.broadcast %cst_192 : f32 to vector<8x256xf32>
    %663 = arith.mulf %632, %662 : vector<8x256xf32>
    %664 = arith.addf %661, %663 : vector<8x256xf32>
    %cst_193 = arith.constant 0.000000e+00 : f32
    %665 = vector.broadcast %cst_193 : f32 to vector<8x256xf32>
    %666 = arith.subf %3, %664 : vector<8x256xf32>
    %cst_194 = arith.constant 0.000000e+00 : f32
    %667 = vector.broadcast %cst_194 : f32 to vector<8x256xf32>
    %668 = arith.maximumf %666, %667 : vector<8x256xf32>
    %669 = arith.mulf %668, %668 : vector<8x256xf32>
    %670 = arith.addf %665, %669 : vector<8x256xf32>
    %671 = arith.subf %4, %664 : vector<8x256xf32>
    %cst_195 = arith.constant 0.000000e+00 : f32
    %672 = vector.broadcast %cst_195 : f32 to vector<8x256xf32>
    %673 = arith.maximumf %671, %672 : vector<8x256xf32>
    %674 = arith.mulf %673, %673 : vector<8x256xf32>
    %675 = arith.addf %670, %674 : vector<8x256xf32>
    %676 = arith.subf %5, %664 : vector<8x256xf32>
    %cst_196 = arith.constant 0.000000e+00 : f32
    %677 = vector.broadcast %cst_196 : f32 to vector<8x256xf32>
    %678 = arith.maximumf %676, %677 : vector<8x256xf32>
    %679 = arith.mulf %678, %678 : vector<8x256xf32>
    %680 = arith.addf %675, %679 : vector<8x256xf32>
    %681 = arith.subf %6, %664 : vector<8x256xf32>
    %cst_197 = arith.constant 0.000000e+00 : f32
    %682 = vector.broadcast %cst_197 : f32 to vector<8x256xf32>
    %683 = arith.maximumf %681, %682 : vector<8x256xf32>
    %684 = arith.mulf %683, %683 : vector<8x256xf32>
    %685 = arith.addf %680, %684 : vector<8x256xf32>
    %c4_i32_198 = arith.constant 4 : i32
    %686 = tpu.dynamic_rotate %685 by %c4_i32_198 dim 0 : vector<8x256xf32>, i32 -> vector<8x256xf32>
    %687 = arith.addf %685, %686 : vector<8x256xf32>
    %cst_199 = arith.constant 1.000000e+00 : f32
    %688 = vector.broadcast %cst_199 : f32 to vector<8x256xf32>
    %689 = arith.cmpf oge, %687, %688 : vector<8x256xf32>
    %690 = arith.xori %689, %41 : vector<8x256xi1>
    %cst_200 = arith.constant dense<true> : vector<8x256xi1>
    %691 = arith.xori %690, %cst_200 : vector<8x256xi1>
    %692 = arith.select %691, %664, %661 : vector<8x256xi1>, vector<8x256xf32>
    %cst_201 = arith.constant 5.000000e-01 : f32
    %693 = vector.broadcast %cst_201 : f32 to vector<8x256xf32>
    %694 = arith.mulf %663, %693 : vector<8x256xf32>
    %695 = arith.addf %692, %694 : vector<8x256xf32>
    %cst_202 = arith.constant 0.000000e+00 : f32
    %696 = vector.broadcast %cst_202 : f32 to vector<8x256xf32>
    %697 = arith.subf %3, %695 : vector<8x256xf32>
    %cst_203 = arith.constant 0.000000e+00 : f32
    %698 = vector.broadcast %cst_203 : f32 to vector<8x256xf32>
    %699 = arith.maximumf %697, %698 : vector<8x256xf32>
    %700 = arith.mulf %699, %699 : vector<8x256xf32>
    %701 = arith.addf %696, %700 : vector<8x256xf32>
    %702 = arith.subf %4, %695 : vector<8x256xf32>
    %cst_204 = arith.constant 0.000000e+00 : f32
    %703 = vector.broadcast %cst_204 : f32 to vector<8x256xf32>
    %704 = arith.maximumf %702, %703 : vector<8x256xf32>
    %705 = arith.mulf %704, %704 : vector<8x256xf32>
    %706 = arith.addf %701, %705 : vector<8x256xf32>
    %707 = arith.subf %5, %695 : vector<8x256xf32>
    %cst_205 = arith.constant 0.000000e+00 : f32
    %708 = vector.broadcast %cst_205 : f32 to vector<8x256xf32>
    %709 = arith.maximumf %707, %708 : vector<8x256xf32>
    %710 = arith.mulf %709, %709 : vector<8x256xf32>
    %711 = arith.addf %706, %710 : vector<8x256xf32>
    %712 = arith.subf %6, %695 : vector<8x256xf32>
    %cst_206 = arith.constant 0.000000e+00 : f32
    %713 = vector.broadcast %cst_206 : f32 to vector<8x256xf32>
    %714 = arith.maximumf %712, %713 : vector<8x256xf32>
    %715 = arith.mulf %714, %714 : vector<8x256xf32>
    %716 = arith.addf %711, %715 : vector<8x256xf32>
    %c4_i32_207 = arith.constant 4 : i32
    %717 = tpu.dynamic_rotate %716 by %c4_i32_207 dim 0 : vector<8x256xf32>, i32 -> vector<8x256xf32>
    %718 = arith.addf %716, %717 : vector<8x256xf32>
    %cst_208 = arith.constant 1.000000e+00 : f32
    %719 = vector.broadcast %cst_208 : f32 to vector<8x256xf32>
    %720 = arith.cmpf oge, %718, %719 : vector<8x256xf32>
    %721 = arith.xori %720, %41 : vector<8x256xi1>
    %cst_209 = arith.constant dense<true> : vector<8x256xi1>
    %722 = arith.xori %721, %cst_209 : vector<8x256xi1>
    %723 = arith.select %722, %695, %692 : vector<8x256xi1>, vector<8x256xf32>
    %cst_210 = arith.constant 5.000000e-01 : f32
    %724 = vector.broadcast %cst_210 : f32 to vector<8x256xf32>
    %725 = arith.mulf %694, %724 : vector<8x256xf32>
    %726 = arith.addf %723, %725 : vector<8x256xf32>
    %cst_211 = arith.constant 0.000000e+00 : f32
    %727 = vector.broadcast %cst_211 : f32 to vector<8x256xf32>
    %728 = arith.subf %3, %726 : vector<8x256xf32>
    %cst_212 = arith.constant 0.000000e+00 : f32
    %729 = vector.broadcast %cst_212 : f32 to vector<8x256xf32>
    %730 = arith.maximumf %728, %729 : vector<8x256xf32>
    %731 = arith.mulf %730, %730 : vector<8x256xf32>
    %732 = arith.addf %727, %731 : vector<8x256xf32>
    %733 = arith.subf %4, %726 : vector<8x256xf32>
    %cst_213 = arith.constant 0.000000e+00 : f32
    %734 = vector.broadcast %cst_213 : f32 to vector<8x256xf32>
    %735 = arith.maximumf %733, %734 : vector<8x256xf32>
    %736 = arith.mulf %735, %735 : vector<8x256xf32>
    %737 = arith.addf %732, %736 : vector<8x256xf32>
    %738 = arith.subf %5, %726 : vector<8x256xf32>
    %cst_214 = arith.constant 0.000000e+00 : f32
    %739 = vector.broadcast %cst_214 : f32 to vector<8x256xf32>
    %740 = arith.maximumf %738, %739 : vector<8x256xf32>
    %741 = arith.mulf %740, %740 : vector<8x256xf32>
    %742 = arith.addf %737, %741 : vector<8x256xf32>
    %743 = arith.subf %6, %726 : vector<8x256xf32>
    %cst_215 = arith.constant 0.000000e+00 : f32
    %744 = vector.broadcast %cst_215 : f32 to vector<8x256xf32>
    %745 = arith.maximumf %743, %744 : vector<8x256xf32>
    %746 = arith.mulf %745, %745 : vector<8x256xf32>
    %747 = arith.addf %742, %746 : vector<8x256xf32>
    %c4_i32_216 = arith.constant 4 : i32
    %748 = tpu.dynamic_rotate %747 by %c4_i32_216 dim 0 : vector<8x256xf32>, i32 -> vector<8x256xf32>
    %749 = arith.addf %747, %748 : vector<8x256xf32>
    %cst_217 = arith.constant 1.000000e+00 : f32
    %750 = vector.broadcast %cst_217 : f32 to vector<8x256xf32>
    %751 = arith.cmpf oge, %749, %750 : vector<8x256xf32>
    %752 = arith.xori %751, %41 : vector<8x256xi1>
    %cst_218 = arith.constant dense<true> : vector<8x256xi1>
    %753 = arith.xori %752, %cst_218 : vector<8x256xi1>
    %754 = arith.select %753, %726, %723 : vector<8x256xi1>, vector<8x256xf32>
    %cst_219 = arith.constant 5.000000e-01 : f32
    %755 = vector.broadcast %cst_219 : f32 to vector<8x256xf32>
    %756 = arith.mulf %725, %755 : vector<8x256xf32>
    %757 = arith.addf %754, %756 : vector<8x256xf32>
    %cst_220 = arith.constant 0.000000e+00 : f32
    %758 = vector.broadcast %cst_220 : f32 to vector<8x256xf32>
    %759 = arith.subf %3, %757 : vector<8x256xf32>
    %cst_221 = arith.constant 0.000000e+00 : f32
    %760 = vector.broadcast %cst_221 : f32 to vector<8x256xf32>
    %761 = arith.maximumf %759, %760 : vector<8x256xf32>
    %762 = arith.mulf %761, %761 : vector<8x256xf32>
    %763 = arith.addf %758, %762 : vector<8x256xf32>
    %764 = arith.subf %4, %757 : vector<8x256xf32>
    %cst_222 = arith.constant 0.000000e+00 : f32
    %765 = vector.broadcast %cst_222 : f32 to vector<8x256xf32>
    %766 = arith.maximumf %764, %765 : vector<8x256xf32>
    %767 = arith.mulf %766, %766 : vector<8x256xf32>
    %768 = arith.addf %763, %767 : vector<8x256xf32>
    %769 = arith.subf %5, %757 : vector<8x256xf32>
    %cst_223 = arith.constant 0.000000e+00 : f32
    %770 = vector.broadcast %cst_223 : f32 to vector<8x256xf32>
    %771 = arith.maximumf %769, %770 : vector<8x256xf32>
    %772 = arith.mulf %771, %771 : vector<8x256xf32>
    %773 = arith.addf %768, %772 : vector<8x256xf32>
    %774 = arith.subf %6, %757 : vector<8x256xf32>
    %cst_224 = arith.constant 0.000000e+00 : f32
    %775 = vector.broadcast %cst_224 : f32 to vector<8x256xf32>
    %776 = arith.maximumf %774, %775 : vector<8x256xf32>
    %777 = arith.mulf %776, %776 : vector<8x256xf32>
    %778 = arith.addf %773, %777 : vector<8x256xf32>
    %c4_i32_225 = arith.constant 4 : i32
    %779 = tpu.dynamic_rotate %778 by %c4_i32_225 dim 0 : vector<8x256xf32>, i32 -> vector<8x256xf32>
    %780 = arith.addf %778, %779 : vector<8x256xf32>
    %cst_226 = arith.constant 1.000000e+00 : f32
    %781 = vector.broadcast %cst_226 : f32 to vector<8x256xf32>
    %782 = arith.divf %781, %780 : vector<8x256xf32>
    %c0_227 = arith.constant 0 : index
    %c0_228 = arith.constant 0 : index
    %783 = vector.load %arg3[%c0_227, %c0_228] : memref<32x1xf32, #tpu.memory_space<vmem>>, vector<32x1xf32>
    %784 = vector.extract_strided_slice %783 {offsets = [0, 0], sizes = [8, 1], strides = [1, 1]} : vector<32x1xf32> to vector<8x1xf32>
    %785 = vector.broadcast %784 : vector<8x1xf32> to vector<8x256xf32>
    %786 = arith.mulf %785, %782 : vector<8x256xf32>
    %787 = arith.mulf %762, %786 : vector<8x256xf32>
    %788 = vector.extract_strided_slice %783 {offsets = [8, 0], sizes = [8, 1], strides = [1, 1]} : vector<32x1xf32> to vector<8x1xf32>
    %789 = vector.broadcast %788 : vector<8x1xf32> to vector<8x256xf32>
    %790 = arith.mulf %789, %782 : vector<8x256xf32>
    %791 = arith.mulf %767, %790 : vector<8x256xf32>
    %792 = vector.extract_strided_slice %783 {offsets = [16, 0], sizes = [8, 1], strides = [1, 1]} : vector<32x1xf32> to vector<8x1xf32>
    %793 = vector.broadcast %792 : vector<8x1xf32> to vector<8x256xf32>
    %794 = arith.mulf %793, %782 : vector<8x256xf32>
    %795 = arith.mulf %772, %794 : vector<8x256xf32>
    %796 = vector.extract_strided_slice %783 {offsets = [24, 0], sizes = [8, 1], strides = [1, 1]} : vector<32x1xf32> to vector<8x1xf32>
    %797 = vector.broadcast %796 : vector<8x1xf32> to vector<8x256xf32>
    %798 = arith.mulf %797, %782 : vector<8x256xf32>
    %799 = arith.mulf %777, %798 : vector<8x256xf32>
    %cst_229 = arith.constant 0.000000e+00 : f32
    %800 = vector.broadcast %cst_229 : f32 to vector<32x256xf32>
    %801 = vector.extract_strided_slice %787 {offsets = [0, 0], sizes = [1, 256], strides = [1, 1]} : vector<8x256xf32> to vector<1x256xf32>
    %c0_230 = arith.constant 0 : index
    %c0_231 = arith.constant 0 : index
    %802 = vector.load %arg1[%c0_230, %c0_231] : memref<256x256xf32, #tpu.memory_space<vmem>>, vector<32x256xf32>
    %803 = vector.broadcast %801 : vector<1x256xf32> to vector<32x256xf32>
    %804 = arith.mulf %803, %802 : vector<32x256xf32>
    %805 = arith.addf %800, %804 : vector<32x256xf32>
    %806 = vector.extract_strided_slice %787 {offsets = [4, 0], sizes = [1, 256], strides = [1, 1]} : vector<8x256xf32> to vector<1x256xf32>
    %c32 = arith.constant 32 : index
    %c0_232 = arith.constant 0 : index
    %807 = vector.load %arg1[%c32, %c0_232] : memref<256x256xf32, #tpu.memory_space<vmem>>, vector<32x256xf32>
    %808 = vector.broadcast %806 : vector<1x256xf32> to vector<32x256xf32>
    %809 = arith.mulf %808, %807 : vector<32x256xf32>
    %810 = arith.addf %805, %809 : vector<32x256xf32>
    %811 = vector.extract_strided_slice %791 {offsets = [0, 0], sizes = [1, 256], strides = [1, 1]} : vector<8x256xf32> to vector<1x256xf32>
    %c64 = arith.constant 64 : index
    %c0_233 = arith.constant 0 : index
    %812 = vector.load %arg1[%c64, %c0_233] : memref<256x256xf32, #tpu.memory_space<vmem>>, vector<32x256xf32>
    %813 = vector.broadcast %811 : vector<1x256xf32> to vector<32x256xf32>
    %814 = arith.mulf %813, %812 : vector<32x256xf32>
    %815 = arith.addf %810, %814 : vector<32x256xf32>
    %816 = vector.extract_strided_slice %791 {offsets = [4, 0], sizes = [1, 256], strides = [1, 1]} : vector<8x256xf32> to vector<1x256xf32>
    %c96 = arith.constant 96 : index
    %c0_234 = arith.constant 0 : index
    %817 = vector.load %arg1[%c96, %c0_234] : memref<256x256xf32, #tpu.memory_space<vmem>>, vector<32x256xf32>
    %818 = vector.broadcast %816 : vector<1x256xf32> to vector<32x256xf32>
    %819 = arith.mulf %818, %817 : vector<32x256xf32>
    %820 = arith.addf %815, %819 : vector<32x256xf32>
    %821 = vector.extract_strided_slice %795 {offsets = [0, 0], sizes = [1, 256], strides = [1, 1]} : vector<8x256xf32> to vector<1x256xf32>
    %c128 = arith.constant 128 : index
    %c0_235 = arith.constant 0 : index
    %822 = vector.load %arg1[%c128, %c0_235] : memref<256x256xf32, #tpu.memory_space<vmem>>, vector<32x256xf32>
    %823 = vector.broadcast %821 : vector<1x256xf32> to vector<32x256xf32>
    %824 = arith.mulf %823, %822 : vector<32x256xf32>
    %825 = arith.addf %820, %824 : vector<32x256xf32>
    %826 = vector.extract_strided_slice %795 {offsets = [4, 0], sizes = [1, 256], strides = [1, 1]} : vector<8x256xf32> to vector<1x256xf32>
    %c160 = arith.constant 160 : index
    %c0_236 = arith.constant 0 : index
    %827 = vector.load %arg1[%c160, %c0_236] : memref<256x256xf32, #tpu.memory_space<vmem>>, vector<32x256xf32>
    %828 = vector.broadcast %826 : vector<1x256xf32> to vector<32x256xf32>
    %829 = arith.mulf %828, %827 : vector<32x256xf32>
    %830 = arith.addf %825, %829 : vector<32x256xf32>
    %831 = vector.extract_strided_slice %799 {offsets = [0, 0], sizes = [1, 256], strides = [1, 1]} : vector<8x256xf32> to vector<1x256xf32>
    %c192 = arith.constant 192 : index
    %c0_237 = arith.constant 0 : index
    %832 = vector.load %arg1[%c192, %c0_237] : memref<256x256xf32, #tpu.memory_space<vmem>>, vector<32x256xf32>
    %833 = vector.broadcast %831 : vector<1x256xf32> to vector<32x256xf32>
    %834 = arith.mulf %833, %832 : vector<32x256xf32>
    %835 = arith.addf %830, %834 : vector<32x256xf32>
    %836 = vector.extract_strided_slice %799 {offsets = [4, 0], sizes = [1, 256], strides = [1, 1]} : vector<8x256xf32> to vector<1x256xf32>
    %c224 = arith.constant 224 : index
    %c0_238 = arith.constant 0 : index
    %837 = vector.load %arg1[%c224, %c0_238] : memref<256x256xf32, #tpu.memory_space<vmem>>, vector<32x256xf32>
    %838 = vector.broadcast %836 : vector<1x256xf32> to vector<32x256xf32>
    %839 = arith.mulf %838, %837 : vector<32x256xf32>
    %840 = arith.addf %835, %839 : vector<32x256xf32>
    %841 = math.exp %840 : vector<32x256xf32>
    %c0_239 = arith.constant 0 : index
    %c0_240 = arith.constant 0 : index
    %842 = vector.load %arg4[%c0_239, %c0_240] : memref<128x256xf32, #tpu.memory_space<vmem>>, vector<32x256xf32>
    tpu.vector_store %arg4[%c0_239, %c0_240], %841 {strides = array<i32>} : memref<128x256xf32, #tpu.memory_space<vmem>>, vector<32x256xf32>,
    %cst_241 = arith.constant 0.000000e+00 : f32
    %843 = vector.broadcast %cst_241 : f32 to vector<32x256xf32>
    %844 = vector.extract_strided_slice %787 {offsets = [1, 0], sizes = [1, 256], strides = [1, 1]} : vector<8x256xf32> to vector<1x256xf32>
    %c0_242 = arith.constant 0 : index
    %c0_243 = arith.constant 0 : index
    %845 = vector.load %arg1[%c0_242, %c0_243] : memref<256x256xf32, #tpu.memory_space<vmem>>, vector<32x256xf32>
    %846 = vector.broadcast %844 : vector<1x256xf32> to vector<32x256xf32>
    %847 = arith.mulf %846, %845 : vector<32x256xf32>
    %848 = arith.addf %843, %847 : vector<32x256xf32>
    %849 = vector.extract_strided_slice %787 {offsets = [5, 0], sizes = [1, 256], strides = [1, 1]} : vector<8x256xf32> to vector<1x256xf32>
    %c32_244 = arith.constant 32 : index
    %c0_245 = arith.constant 0 : index
    %850 = vector.load %arg1[%c32_244, %c0_245] : memref<256x256xf32, #tpu.memory_space<vmem>>, vector<32x256xf32>
    %851 = vector.broadcast %849 : vector<1x256xf32> to vector<32x256xf32>
    %852 = arith.mulf %851, %850 : vector<32x256xf32>
    %853 = arith.addf %848, %852 : vector<32x256xf32>
    %854 = vector.extract_strided_slice %791 {offsets = [1, 0], sizes = [1, 256], strides = [1, 1]} : vector<8x256xf32> to vector<1x256xf32>
    %c64_246 = arith.constant 64 : index
    %c0_247 = arith.constant 0 : index
    %855 = vector.load %arg1[%c64_246, %c0_247] : memref<256x256xf32, #tpu.memory_space<vmem>>, vector<32x256xf32>
    %856 = vector.broadcast %854 : vector<1x256xf32> to vector<32x256xf32>
    %857 = arith.mulf %856, %855 : vector<32x256xf32>
    %858 = arith.addf %853, %857 : vector<32x256xf32>
    %859 = vector.extract_strided_slice %791 {offsets = [5, 0], sizes = [1, 256], strides = [1, 1]} : vector<8x256xf32> to vector<1x256xf32>
    %c96_248 = arith.constant 96 : index
    %c0_249 = arith.constant 0 : index
    %860 = vector.load %arg1[%c96_248, %c0_249] : memref<256x256xf32, #tpu.memory_space<vmem>>, vector<32x256xf32>
    %861 = vector.broadcast %859 : vector<1x256xf32> to vector<32x256xf32>
    %862 = arith.mulf %861, %860 : vector<32x256xf32>
    %863 = arith.addf %858, %862 : vector<32x256xf32>
    %864 = vector.extract_strided_slice %795 {offsets = [1, 0], sizes = [1, 256], strides = [1, 1]} : vector<8x256xf32> to vector<1x256xf32>
    %c128_250 = arith.constant 128 : index
    %c0_251 = arith.constant 0 : index
    %865 = vector.load %arg1[%c128_250, %c0_251] : memref<256x256xf32, #tpu.memory_space<vmem>>, vector<32x256xf32>
    %866 = vector.broadcast %864 : vector<1x256xf32> to vector<32x256xf32>
    %867 = arith.mulf %866, %865 : vector<32x256xf32>
    %868 = arith.addf %863, %867 : vector<32x256xf32>
    %869 = vector.extract_strided_slice %795 {offsets = [5, 0], sizes = [1, 256], strides = [1, 1]} : vector<8x256xf32> to vector<1x256xf32>
    %c160_252 = arith.constant 160 : index
    %c0_253 = arith.constant 0 : index
    %870 = vector.load %arg1[%c160_252, %c0_253] : memref<256x256xf32, #tpu.memory_space<vmem>>, vector<32x256xf32>
    %871 = vector.broadcast %869 : vector<1x256xf32> to vector<32x256xf32>
    %872 = arith.mulf %871, %870 : vector<32x256xf32>
    %873 = arith.addf %868, %872 : vector<32x256xf32>
    %874 = vector.extract_strided_slice %799 {offsets = [1, 0], sizes = [1, 256], strides = [1, 1]} : vector<8x256xf32> to vector<1x256xf32>
    %c192_254 = arith.constant 192 : index
    %c0_255 = arith.constant 0 : index
    %875 = vector.load %arg1[%c192_254, %c0_255] : memref<256x256xf32, #tpu.memory_space<vmem>>, vector<32x256xf32>
    %876 = vector.broadcast %874 : vector<1x256xf32> to vector<32x256xf32>
    %877 = arith.mulf %876, %875 : vector<32x256xf32>
    %878 = arith.addf %873, %877 : vector<32x256xf32>
    %879 = vector.extract_strided_slice %799 {offsets = [5, 0], sizes = [1, 256], strides = [1, 1]} : vector<8x256xf32> to vector<1x256xf32>
    %c224_256 = arith.constant 224 : index
    %c0_257 = arith.constant 0 : index
    %880 = vector.load %arg1[%c224_256, %c0_257] : memref<256x256xf32, #tpu.memory_space<vmem>>, vector<32x256xf32>
    %881 = vector.broadcast %879 : vector<1x256xf32> to vector<32x256xf32>
    %882 = arith.mulf %881, %880 : vector<32x256xf32>
    %883 = arith.addf %878, %882 : vector<32x256xf32>
    %884 = math.exp %883 : vector<32x256xf32>
    %c32_258 = arith.constant 32 : index
    %c0_259 = arith.constant 0 : index
    %885 = vector.load %arg4[%c32_258, %c0_259] : memref<128x256xf32, #tpu.memory_space<vmem>>, vector<32x256xf32>
    tpu.vector_store %arg4[%c32_258, %c0_259], %884 {strides = array<i32>} : memref<128x256xf32, #tpu.memory_space<vmem>>, vector<32x256xf32>,
    %cst_260 = arith.constant 0.000000e+00 : f32
    %886 = vector.broadcast %cst_260 : f32 to vector<32x256xf32>
    %887 = vector.extract_strided_slice %787 {offsets = [2, 0], sizes = [1, 256], strides = [1, 1]} : vector<8x256xf32> to vector<1x256xf32>
    %c0_261 = arith.constant 0 : index
    %c0_262 = arith.constant 0 : index
    %888 = vector.load %arg1[%c0_261, %c0_262] : memref<256x256xf32, #tpu.memory_space<vmem>>, vector<32x256xf32>
    %889 = vector.broadcast %887 : vector<1x256xf32> to vector<32x256xf32>
    %890 = arith.mulf %889, %888 : vector<32x256xf32>
    %891 = arith.addf %886, %890 : vector<32x256xf32>
    %892 = vector.extract_strided_slice %787 {offsets = [6, 0], sizes = [1, 256], strides = [1, 1]} : vector<8x256xf32> to vector<1x256xf32>
    %c32_263 = arith.constant 32 : index
    %c0_264 = arith.constant 0 : index
    %893 = vector.load %arg1[%c32_263, %c0_264] : memref<256x256xf32, #tpu.memory_space<vmem>>, vector<32x256xf32>
    %894 = vector.broadcast %892 : vector<1x256xf32> to vector<32x256xf32>
    %895 = arith.mulf %894, %893 : vector<32x256xf32>
    %896 = arith.addf %891, %895 : vector<32x256xf32>
    %897 = vector.extract_strided_slice %791 {offsets = [2, 0], sizes = [1, 256], strides = [1, 1]} : vector<8x256xf32> to vector<1x256xf32>
    %c64_265 = arith.constant 64 : index
    %c0_266 = arith.constant 0 : index
    %898 = vector.load %arg1[%c64_265, %c0_266] : memref<256x256xf32, #tpu.memory_space<vmem>>, vector<32x256xf32>
    %899 = vector.broadcast %897 : vector<1x256xf32> to vector<32x256xf32>
    %900 = arith.mulf %899, %898 : vector<32x256xf32>
    %901 = arith.addf %896, %900 : vector<32x256xf32>
    %902 = vector.extract_strided_slice %791 {offsets = [6, 0], sizes = [1, 256], strides = [1, 1]} : vector<8x256xf32> to vector<1x256xf32>
    %c96_267 = arith.constant 96 : index
    %c0_268 = arith.constant 0 : index
    %903 = vector.load %arg1[%c96_267, %c0_268] : memref<256x256xf32, #tpu.memory_space<vmem>>, vector<32x256xf32>
    %904 = vector.broadcast %902 : vector<1x256xf32> to vector<32x256xf32>
    %905 = arith.mulf %904, %903 : vector<32x256xf32>
    %906 = arith.addf %901, %905 : vector<32x256xf32>
    %907 = vector.extract_strided_slice %795 {offsets = [2, 0], sizes = [1, 256], strides = [1, 1]} : vector<8x256xf32> to vector<1x256xf32>
    %c128_269 = arith.constant 128 : index
    %c0_270 = arith.constant 0 : index
    %908 = vector.load %arg1[%c128_269, %c0_270] : memref<256x256xf32, #tpu.memory_space<vmem>>, vector<32x256xf32>
    %909 = vector.broadcast %907 : vector<1x256xf32> to vector<32x256xf32>
    %910 = arith.mulf %909, %908 : vector<32x256xf32>
    %911 = arith.addf %906, %910 : vector<32x256xf32>
    %912 = vector.extract_strided_slice %795 {offsets = [6, 0], sizes = [1, 256], strides = [1, 1]} : vector<8x256xf32> to vector<1x256xf32>
    %c160_271 = arith.constant 160 : index
    %c0_272 = arith.constant 0 : index
    %913 = vector.load %arg1[%c160_271, %c0_272] : memref<256x256xf32, #tpu.memory_space<vmem>>, vector<32x256xf32>
    %914 = vector.broadcast %912 : vector<1x256xf32> to vector<32x256xf32>
    %915 = arith.mulf %914, %913 : vector<32x256xf32>
    %916 = arith.addf %911, %915 : vector<32x256xf32>
    %917 = vector.extract_strided_slice %799 {offsets = [2, 0], sizes = [1, 256], strides = [1, 1]} : vector<8x256xf32> to vector<1x256xf32>
    %c192_273 = arith.constant 192 : index
    %c0_274 = arith.constant 0 : index
    %918 = vector.load %arg1[%c192_273, %c0_274] : memref<256x256xf32, #tpu.memory_space<vmem>>, vector<32x256xf32>
    %919 = vector.broadcast %917 : vector<1x256xf32> to vector<32x256xf32>
    %920 = arith.mulf %919, %918 : vector<32x256xf32>
    %921 = arith.addf %916, %920 : vector<32x256xf32>
    %922 = vector.extract_strided_slice %799 {offsets = [6, 0], sizes = [1, 256], strides = [1, 1]} : vector<8x256xf32> to vector<1x256xf32>
    %c224_275 = arith.constant 224 : index
    %c0_276 = arith.constant 0 : index
    %923 = vector.load %arg1[%c224_275, %c0_276] : memref<256x256xf32, #tpu.memory_space<vmem>>, vector<32x256xf32>
    %924 = vector.broadcast %922 : vector<1x256xf32> to vector<32x256xf32>
    %925 = arith.mulf %924, %923 : vector<32x256xf32>
    %926 = arith.addf %921, %925 : vector<32x256xf32>
    %927 = math.exp %926 : vector<32x256xf32>
    %c64_277 = arith.constant 64 : index
    %c0_278 = arith.constant 0 : index
    %928 = vector.load %arg4[%c64_277, %c0_278] : memref<128x256xf32, #tpu.memory_space<vmem>>, vector<32x256xf32>
    tpu.vector_store %arg4[%c64_277, %c0_278], %927 {strides = array<i32>} : memref<128x256xf32, #tpu.memory_space<vmem>>, vector<32x256xf32>,
    %cst_279 = arith.constant 0.000000e+00 : f32
    %929 = vector.broadcast %cst_279 : f32 to vector<32x256xf32>
    %930 = vector.extract_strided_slice %787 {offsets = [3, 0], sizes = [1, 256], strides = [1, 1]} : vector<8x256xf32> to vector<1x256xf32>
    %c0_280 = arith.constant 0 : index
    %c0_281 = arith.constant 0 : index
    %931 = vector.load %arg1[%c0_280, %c0_281] : memref<256x256xf32, #tpu.memory_space<vmem>>, vector<32x256xf32>
    %932 = vector.broadcast %930 : vector<1x256xf32> to vector<32x256xf32>
    %933 = arith.mulf %932, %931 : vector<32x256xf32>
    %934 = arith.addf %929, %933 : vector<32x256xf32>
    %935 = vector.extract_strided_slice %787 {offsets = [7, 0], sizes = [1, 256], strides = [1, 1]} : vector<8x256xf32> to vector<1x256xf32>
    %c32_282 = arith.constant 32 : index
    %c0_283 = arith.constant 0 : index
    %936 = vector.load %arg1[%c32_282, %c0_283] : memref<256x256xf32, #tpu.memory_space<vmem>>, vector<32x256xf32>
    %937 = vector.broadcast %935 : vector<1x256xf32> to vector<32x256xf32>
    %938 = arith.mulf %937, %936 : vector<32x256xf32>
    %939 = arith.addf %934, %938 : vector<32x256xf32>
    %940 = vector.extract_strided_slice %791 {offsets = [3, 0], sizes = [1, 256], strides = [1, 1]} : vector<8x256xf32> to vector<1x256xf32>
    %c64_284 = arith.constant 64 : index
    %c0_285 = arith.constant 0 : index
    %941 = vector.load %arg1[%c64_284, %c0_285] : memref<256x256xf32, #tpu.memory_space<vmem>>, vector<32x256xf32>
    %942 = vector.broadcast %940 : vector<1x256xf32> to vector<32x256xf32>
    %943 = arith.mulf %942, %941 : vector<32x256xf32>
    %944 = arith.addf %939, %943 : vector<32x256xf32>
    %945 = vector.extract_strided_slice %791 {offsets = [7, 0], sizes = [1, 256], strides = [1, 1]} : vector<8x256xf32> to vector<1x256xf32>
    %c96_286 = arith.constant 96 : index
    %c0_287 = arith.constant 0 : index
    %946 = vector.load %arg1[%c96_286, %c0_287] : memref<256x256xf32, #tpu.memory_space<vmem>>, vector<32x256xf32>
    %947 = vector.broadcast %945 : vector<1x256xf32> to vector<32x256xf32>
    %948 = arith.mulf %947, %946 : vector<32x256xf32>
    %949 = arith.addf %944, %948 : vector<32x256xf32>
    %950 = vector.extract_strided_slice %795 {offsets = [3, 0], sizes = [1, 256], strides = [1, 1]} : vector<8x256xf32> to vector<1x256xf32>
    %c128_288 = arith.constant 128 : index
    %c0_289 = arith.constant 0 : index
    %951 = vector.load %arg1[%c128_288, %c0_289] : memref<256x256xf32, #tpu.memory_space<vmem>>, vector<32x256xf32>
    %952 = vector.broadcast %950 : vector<1x256xf32> to vector<32x256xf32>
    %953 = arith.mulf %952, %951 : vector<32x256xf32>
    %954 = arith.addf %949, %953 : vector<32x256xf32>
    %955 = vector.extract_strided_slice %795 {offsets = [7, 0], sizes = [1, 256], strides = [1, 1]} : vector<8x256xf32> to vector<1x256xf32>
    %c160_290 = arith.constant 160 : index
    %c0_291 = arith.constant 0 : index
    %956 = vector.load %arg1[%c160_290, %c0_291] : memref<256x256xf32, #tpu.memory_space<vmem>>, vector<32x256xf32>
    %957 = vector.broadcast %955 : vector<1x256xf32> to vector<32x256xf32>
    %958 = arith.mulf %957, %956 : vector<32x256xf32>
    %959 = arith.addf %954, %958 : vector<32x256xf32>
    %960 = vector.extract_strided_slice %799 {offsets = [3, 0], sizes = [1, 256], strides = [1, 1]} : vector<8x256xf32> to vector<1x256xf32>
    %c192_292 = arith.constant 192 : index
    %c0_293 = arith.constant 0 : index
    %961 = vector.load %arg1[%c192_292, %c0_293] : memref<256x256xf32, #tpu.memory_space<vmem>>, vector<32x256xf32>
    %962 = vector.broadcast %960 : vector<1x256xf32> to vector<32x256xf32>
    %963 = arith.mulf %962, %961 : vector<32x256xf32>
    %964 = arith.addf %959, %963 : vector<32x256xf32>
    %965 = vector.extract_strided_slice %799 {offsets = [7, 0], sizes = [1, 256], strides = [1, 1]} : vector<8x256xf32> to vector<1x256xf32>
    %c224_294 = arith.constant 224 : index
    %c0_295 = arith.constant 0 : index
    %966 = vector.load %arg1[%c224_294, %c0_295] : memref<256x256xf32, #tpu.memory_space<vmem>>, vector<32x256xf32>
    %967 = vector.broadcast %965 : vector<1x256xf32> to vector<32x256xf32>
    %968 = arith.mulf %967, %966 : vector<32x256xf32>
    %969 = arith.addf %964, %968 : vector<32x256xf32>
    %970 = math.exp %969 : vector<32x256xf32>
    %c96_296 = arith.constant 96 : index
    %c0_297 = arith.constant 0 : index
    %971 = vector.load %arg4[%c96_296, %c0_297] : memref<128x256xf32, #tpu.memory_space<vmem>>, vector<32x256xf32>
    tpu.vector_store %arg4[%c96_296, %c0_297], %970 {strides = array<i32>} : memref<128x256xf32, #tpu.memory_space<vmem>>, vector<32x256xf32>,
    return
  }
  func.func @transform_0(%arg0: i32) -> (i32, i32) {
    %c0_i32 = arith.constant 0 : i32
    %c0_i32_0 = arith.constant 0 : i32
    return %c0_i32, %arg0 : i32, i32
  }
  func.func @transform_1(%arg0: i32) -> (i32, i32) {
    %c0_i32 = arith.constant 0 : i32
    %c0_i32_0 = arith.constant 0 : i32
    %c0_i32_1 = arith.constant 0 : i32
    return %c0_i32, %c0_i32_0 : i32, i32
  }
  func.func @transform_2(%arg0: i32) -> (i32, i32) {
    %c0_i32 = arith.constant 0 : i32
    %c0_i32_0 = arith.constant 0 : i32
    %c0_i32_1 = arith.constant 0 : i32
    return %c0_i32, %c0_i32_0 : i32, i32
  }
  func.func @transform_3(%arg0: i32) -> (i32, i32) {
    %c0_i32 = arith.constant 0 : i32
    %c0_i32_0 = arith.constant 0 : i32
    return %c0_i32, %arg0 : i32, i32
  }
}

</mosaic_0001>

<bundles_post_ra>
// kernel: tpu_custom_call.1
= control target key start
LH: loop header
LB: loop body
LE: loop exit
PB: predicated region body
PF: predicated region fallthrough
CT: control target
= control target key end

     0   :  { %8 = vsyncpa [#allocation3], 0  ;;  %s4994_s0 = inlined_call_operand.hbm [shape: f32[256,512], index: 0, kind: input, shape index: {}]   ;;  %s4995_s1 = inlined_call_operand.hbm [shape: f32[32,256], index: 1, kind: input, shape index: {}]   ;;  %s4996_s2 = inlined_call_operand.vmem [shape: f32[32,1], index: 2, kind: input, shape index: {}]   ;;  %s4997_s3 = inlined_call_operand.hbm [shape: f32[128,512], index: 3, kind: output, shape index: {}]  }
   0x1   :  { %10 = vsyncpa [#allocation3 + $0x1], 0 }
   0x2   :  { %11 = vsyncpa [#allocation6], 0 }
   0x3   :  { %12 = vsyncpa [#allocation4], 0 }
   0x4   :  { %14 = vsyncpa [#allocation4 + $0x1], 0  ;;  %s3256_s12 = smov 0   ;;  %s3258_s13 = smov 0  }
   0x5   :  { %s3260_s14 = smov 0   ;;  %s3262_s15 = smov 0  }
   0x6 LB: > { %s3277_s16 = sadd.s32 4294967295, %s3223_s15   ;;  %s2818_s17 = sadd.s32 4294967294, %s3223_s15   ;;  %s3223_s15 = sphi %s3262_s15, %s5241_s15   ;;  %s3219_s14 = sphi %s3260_s14, %s5240_s14   ;;  %s3215_s13 = sphi %s3258_s13, %s5239_s13   ;;  %s3211_s12 = sphi %s3256_s12, %s5238_s12  }
   0x7   : > { %s3281_s18 = sadd.s32 1, %s3223_s15   ;;  %s27_s19 = sadd.s32 1, %s3219_s14 }
   0x8   : > { %s24_s20 = ssub.s32 %s3223_s15, %s3281_s18  ;;  %p34_p0 = scmp.ne.s32.totalorder %s3219_s14, %s3215_s13 }
   0x9   : > { %p25_p1 = scmp.eq.s32.totalorder %s24_s20, 0  ;;  %p35_p2 = scmp.eq.s32.totalorder %s3223_s15, 0 }
   0xa   : > { %p40_p3 = scmp.ne.s32.totalorder %s3215_s13, %s3211_s12  ;;  %p4998_p4 = scmp.eq.s32.totalorder %s3277_s16, 0 }
   0xb   : > { %s3293_s21 = scalar_select %p25_p1, %s3219_s14, %s27_s19  }
   0xc   : > { %p3295_p5 = por %p35_p2, %p34_p0  ;;  %p3301_p6 = por %p4998_p4, %p40_p3 }
   0xd   : > { %p106_p7 = scmp.eq.s32.totalorder %s3277_s16, 1  ;;  %p112_p8 = scmp.eq.s32.totalorder %s2818_s17, 1 }
   0xe   : > { %s5028_s22 = scalar_select %p3295_p5, 1, 0 }
   0xf   : > { %s5029_s23 = scalar_select %p3301_p6, 1, 0 }
  0x10   : > { %p2819_p9 = scmp.ge.s32.totalorder %s3223_s15, 1  ;;  %p119_p10 = scmp.lt.s32.totalorder %s3223_s15, 3 }
  0x11   : > { %p3308_p11 = por %p106_p7, %p34_p0  ;;  %p3312_p12 = por %p112_p8, %p40_p3 }
  0x12   : > { %p3316_p13 = pnand %p2819_p9, %p119_p10  ;;  %s3225_s27 = smov [#allocation5]  }
  0x13   : > { %s5030_s24 = scalar_select %p3308_p11, 1, 0 }
  0x14   : > { %s5031_s25 = scalar_select %p3312_p12, 1, 0 }
  0x15   : > { %s5032_s26 = scalar_select %p3316_p13, 1, 0 }
  0x16   : > { %p2944_p1 = pneg %p3316_p13  ;;  %s131_s28 = sshll.u32 %s3225_s27, 4  ;;  %s132_s28 = int_to_ptr.vmem [resolvable:$true] %s131_s28 }
  0x17   : > { %s148_s30 = sand.u32 1, %s3219_s14   ;;  %s3095_s6 = scalar_lea.hbm %s4995_s1, 1024 }
  0x18   : > { %p3324_p2 = pnand %p2944_p1, %p4998_p4  ;;  %p3096_p7 = scmp.ne.s32.totalorder %s4995_s1, %s3095_s6 }
  0x19   : > { %p3102_p1 = scmp.lt.u32.totalorder %s3095_s6, %s4995_s1 }
  0x1a   : > { %p3097_p8 = pneg %p3324_p2 }
  0x1c   : > { %p3098_p9 = pnand %p3097_p8, %p3096_p7 }
  0x1e   : > { %p3099_p10 = pneg %p3098_p9 }
  0x20   : > { %p3104_p4 = pnand %p3102_p1, %p3099_p10 }
  0x22   : > { %3107 = shalt.err (!%p3104_p4)
}
  0x23   : > { %s3108_s11 = scalar_lea.vmem %s132_s28, 1024  ;;  %p3116_p11 = scmp.lt.s32.totalorder %s132_s28, %s132_s28 }
  0x24   : > { %p3109_p0 = scmp.ne.s32.totalorder %s132_s28, %s3108_s11  ;;  %p3117_p6 = scmp.lt.s32.totalorder %s3108_s11, %s3108_s11 }
  0x26   : > { %p3111_p3 = pnand %p3109_p0, %p3097_p8  ;;  %p3118_p13 = por %p3117_p6, %p3116_p11 }
  0x28   : > { %p3112_p12 = pneg %p3111_p3 }
  0x2a   : > { %p3119_p5 = pnand %p3118_p13, %p3112_p12 }
  0x2c   : > { %3122 = shalt.err (!%p3119_p5)
}
  0x2d   : > { %s3226_s17 = smov 256   ;;  %s3227_s19 = smov 16  }
  0x2e   : > { %2947 = dma.hbm_to_vmem [thread:$0]  (!%p3324_p2), %s4995_s1, 1024, %s132_s28, [#allocation6], %s3226_s17, %s3226_s17, %s3227_s19  }
  0x2f   : > { %p5034_p4 = scmp.ne.s32.totalorder %s5028_s22, 0  ;;  %p5035_p0 = scmp.lt.s32.totalorder %s3223_s15, 2 }
  0x30   : > { %s2822_s5 = sshll.u32 %s148_s30, 9  ;;  %s2838_s6 = sshll.u32 %s3223_s15, 8 }
  0x31   : > { %p3354_p3 = pnand %p5035_p0, %p5034_p4  ;;  %s3362_s29 = scalar_lea.hbm %s4994_s0, %s2838_s6 }
  0x32   : > { %s152_s28 = scalar_lea.vmem [#allocation2], %s2822_s5  ;;  %s3366_s9 = scalar_lea.sflag [#allocation3], %s148_s30 }
  0x33   : > { %s159_s22 = sshll.u32 %s152_s28, 4  ;;  %s3123_s10 = scalar_lea.hbm %s3362_s29, 8192  ;;  %s3364_s22 = int_to_ptr.vmem [resolvable:$true] %s159_s22 }
  0x34   : > { %p3124_p5 = scmp.ne.s32.totalorder %s3362_s29, %s3123_s10  ;;  %p3125_p6 = pneg %p3354_p3 }
  0x35   : > { %s3128_s27 = scalar_lea.hbm %s4994_s0, 16384  ;;  %p3129_p13 = scmp.lt.u32.totalorder %s3362_s29, %s4994_s0 }
  0x36   : > { %p3126_p11 = pnand %p3125_p6, %p3124_p5  ;;  %p3130_p2 = scmp.lt.u32.totalorder %s3128_s27, %s3123_s10 }
  0x37   : > { %p3132_p8 = scmp.lt.u32.totalorder %s3123_s10, %s3362_s29 }
  0x38   : > { %p3127_p12 = pneg %p3126_p11  ;;  %p3131_p7 = por %p3130_p2, %p3129_p13 }
  0x3a   : > { %p3133_p9 = por %p3132_p8, %p3131_p7 }
  0x3c   : > { %p3134_p10 = pnand %p3133_p9, %p3127_p12 }
  0x3e   : > { %3137 = shalt.err (!%p3134_p10)
}
  0x3f   : > { %s3138_s30 = scalar_lea.vmem %s3364_s22, 8192  ;;  %s3228_s5 = smov [#allocation2]  }
  0x40   : > { %p3139_p1 = scmp.ne.s32.totalorder %s3364_s22, %s3138_s30  ;;  %s3143_s8 = sshll.u32 %s3228_s5, 4  ;;  %s3144_s8 = int_to_ptr.vmem [resolvable:$false] %s3143_s8 }
  0x41   : > { %s3145_s28 = scalar_lea.vmem %s3144_s8, 16384  ;;  %p3146_p5 = scmp.lt.s32.totalorder %s3364_s22, %s3144_s8 }
  0x42   : > { %p3141_p4 = pnand %p3139_p1, %p3125_p6  ;;  %p3147_p11 = scmp.lt.s32.totalorder %s3145_s28, %s3138_s30 }
  0x44   : > { %p3142_p0 = pneg %p3141_p4  ;;  %p3148_p13 = por %p3147_p11, %p3146_p5 }
  0x46   : > { %p3149_p2 = pnand %p3148_p13, %p3142_p0 }
  0x48   : > { %3152 = shalt.err (!%p3149_p2)
}
  0x49   : > { %s3229_s10 = smov 512   ;;  %p5037_p6 = scmp.ne.s32.totalorder %s5032_s26, 0 }
  0x4a   : > { %2951 = dma.hbm_to_vmem [thread:$0]  (!%p3354_p3), %s3362_s29, 8192, %s3364_s22, %s3366_s9, %s3229_s10, %s3226_s17, %s3227_s19  }
  0x4b   : > { %171 = sbr.rel (%p5037_p6) target bundleno = 1149 (0x47d), region = 32 }
  0x52   : > { %s3399_s11 = sand.u32 1, %s3215_s13   ;;  %p5038_p12 = scmp.ne.s32.totalorder %s5029_s23, 0 }
  0x53   : > { %s2826_s20 = sshll.u32 %s3399_s11, 9  ;;  %s174_s27 = scalar_lea.sflag [#allocation3], %s3399_s11 }
  0x54   : > { %s3403_s6 = scalar_lea.vmem [#allocation2], %s2826_s20 }
  0x55   : > { %3198 = dma.done.wait (%p5038_p12), %s174_s27, 8192  }
  0x56   : > { %3200 = vsyncadd (%p5038_p12), %s174_s27, 4294959104  ;;  %p5039_p3 = scmp.eq.s32.totalorder %s3277_s16, 0 }
  0x58   : > { %3202 = dma.done.wait (%p5039_p3), [#allocation6], 1024   ;;  %p5040_p7 = pmov %p5039_p3 }
  0x59   : > { %v215_v0 = vld [vmem:[%s3403_s6 + $0x8] sm:$0xff]  ;;  %v217_v1 = vld [vmem:[%s3403_s6 + $0x18] sm:$0xff]  ;;  %v214_v2 = vld [vmem:[%s3403_s6] sm:$0xff]  ;;  %vm3231_vm6 = vmmov 1   ;;  %s2828_s7 = sshll.u32 %s3399_s11, 8  ;;  %s2839_s5 = sshll.u32 %s3277_s16, 8 }
  0x5a   : > { %3204 = vsyncadd (%p5040_p7), [#allocation6], 4294966272  ;;  %v2840_v3 = vpack.c.bf16 %v217_v1, %v215_v0  ;;  %v216_v4 = vld [vmem:[%s3403_s6 + $0x10] sm:$0xff]  ;;  %v219_v5 = vld [vmem:[%s3403_s6 + $0x28] sm:$0xff]  ;;  %s4830_s30 = scalar_lea.vmem [#allocation7], %s2828_s7  ;;  %s4944_s20 = scalar_lea.hbm %s4997_s3, %s2839_s5 }
  0x5b   : > { %v221_v6 = vld [vmem:[%s3403_s6 + $0x38] sm:$0xff]  ;;  %v2842_v7 = vpack.c.bf16 %v216_v4, %v214_v2  ;;  %v218_v9 = vld [vmem:[%s3403_s6 + $0x20] sm:$0xff]  ;;  %v220_v10 = vld [vmem:[%s3403_s6 + $0x30] sm:$0xff]  ;;  %s2735_s8 = sshll.u32 %s4830_s30, 4  ;;  %s2722_s16 = scalar_lea.sflag [#allocation4], %s3399_s11  ;;  %s4947_s8 = int_to_ptr.vmem [resolvable:$true] %s2735_s8 }
  0x5c   : > { %v2844_v8 = vpack.c.bf16 %v221_v6, %v219_v5  ;;  %v223_v11 = vld [vmem:[%s3403_s6 + $0x48] sm:$0xff]  ;;  %2841 = vmatprep.subr.bf16.mxu0 %v2840_v3  ;;  %2904 = vmatprep.subr.bf16.mxu1 %v2840_v3  ;;  %v225_v12 = vld [vmem:[%s3403_s6 + $0x58] sm:$0xff]  ;;  %v2846_v13 = vpack.c.bf16 %v220_v10, %v218_v9  ;;  %v222_v15 = vld [vmem:[%s3403_s6 + $0x40] sm:$0xff]  ;;  %s3153_s27 = scalar_lea.vmem %s4947_s8, 4096  ;;  %p5235_p9 = scmp.ne.s32.totalorder %s5030_s24, 0 }
  0x5d   : > { %2843 = vmatpush1.bf16.msra.mxu0 %v2842_v7  ;;  %2920 = vmatpush1.bf16.msra.mxu1 %v2842_v7  ;;  %v2848_v14 = vpack.c.bf16 %v225_v12, %v223_v11  ;;  %v224_v16 = vld [vmem:[%s3403_s6 + $0x50] sm:$0xff]  ;;  %v227_v17 = vld [vmem:[%s3403_s6 + $0x68] sm:$0xff]  ;;  %v229_v18 = vld [vmem:[%s3403_s6 + $0x78] sm:$0xff]  ;;  %p3154_p8 = scmp.ne.s32.totalorder %s4947_s8, %s3153_s27 }
  0x5e   : > { %2845 = vmatprep.subr.bf16.mxu0 %v2844_v8  ;;  %2905 = vmatprep.subr.bf16.mxu1 %v2844_v8  ;;  %v2850_v19 = vpack.c.bf16 %v224_v16, %v222_v15  ;;  %v2852_v20 = vpack.c.bf16 %v229_v18, %v227_v17  ;;  %v226_v21 = vld [vmem:[%s3403_s6 + $0x60] sm:$0xff]  ;;  %v228_v22 = vld [vmem:[%s3403_s6 + $0x70] sm:$0xff]  ;;  %v231_v23 = vld [vmem:[%s3403_s6 + $0x88] sm:$0xff] }
  0x5f   : > { %v233_v24 = vld [vmem:[%s3403_s6 + $0x98] sm:$0xff]  ;;  %v2854_v25 = vpack.c.bf16 %v228_v22, %v226_v21  ;;  %v230_v27 = vld [vmem:[%s3403_s6 + $0x80] sm:$0xff]  ;;  %v232_v28 = vld [vmem:[%s3403_s6 + $0x90] sm:$0xff]  ;;  %p3155_p10 = pnand %p3154_p8, %p5235_p9 }
  0x60   : > { %v2856_v26 = vpack.c.bf16 %v233_v24, %v231_v23  ;;  %v235_v29 = vld [vmem:[%s3403_s6 + $0xa8] sm:$0xff]  ;;  %v237_v30 = vld [vmem:[%s3403_s6 + $0xb8] sm:$0xff]  ;;  %v2858_v31 = vpack.c.bf16 %v232_v28, %v230_v27  ;;  %v234_v33 = vld [vmem:[%s3403_s6 + $0xa0] sm:$0xff] }
  0x61   : > { %2847 = vmatpush1.bf16.msra.mxu0 %v2846_v13  ;;  %2921 = vmatpush1.bf16.msra.mxu1 %v2846_v13  ;;  %v2860_v32 = vpack.c.bf16 %v237_v30, %v235_v29  ;;  %v236_v34 = vld [vmem:[%s3403_s6 + $0xb0] sm:$0xff]  ;;  %v239_v35 = vld [vmem:[%s3403_s6 + $0xc8] sm:$0xff]  ;;  %v241_v36 = vld [vmem:[%s3403_s6 + $0xd8] sm:$0xff]  ;;  %p3156_p1 = pneg %p3155_p10 }
  0x62   : > { %2849 = vmatprep.subr.bf16.mxu0 %v2848_v14  ;;  %2906 = vmatprep.subr.bf16.mxu1 %v2848_v14  ;;  %v2862_v37 = vpack.c.bf16 %v236_v34, %v234_v33  ;;  %v2864_v38 = vpack.c.bf16 %v241_v36, %v239_v35  ;;  %v238_v39 = vld [vmem:[%s3403_s6 + $0xc0] sm:$0xff]  ;;  %v240_v40 = vld [vmem:[%s3403_s6 + $0xd0] sm:$0xff]  ;;  %v207_v41 = vld [vmem:[#allocation5 + $0x8] sm:$0xff] }
  0x63   : > { %v243_v42 = vld [vmem:[%s3403_s6 + $0xe8] sm:$0xff]  ;;  %v245_v43 = vld [vmem:[%s3403_s6 + $0xf8] sm:$0xff]  ;;  %342 = vmatprep.mubr.f32.mxu0 %v207_v41  ;;  %v2866_v45 = vpack.c.bf16 %v240_v40, %v238_v39  ;;  %v242_v47 = vld [vmem:[%s3403_s6 + $0xe0] sm:$0xff] }
  0x64   : > { %v211_v44 = vld [vmem:[#allocation5 + $0x28] sm:$0xff]  ;;  %v2868_v46 = vpack.c.bf16 %v245_v43, %v243_v42  ;;  %v244_v48 = vld [vmem:[%s3403_s6 + $0xf0] sm:$0xff]  ;;  %v249_v50 = vld [vmem:[%s3403_s6 + $0x118] sm:$0xff]  ;;  %v3230_v42 = vmov 0  }
  0x65   : > { %2851 = vmatpush1.bf16.msra.mxu0 %v2850_v19  ;;  %2922 = vmatpush1.bf16.msra.mxu1 %v2850_v19  ;;  %v247_v49 = vld [vmem:[%s3403_s6 + $0x108] sm:$0xff]  ;;  %v2870_v51 = vpack.c.bf16 %v244_v48, %v242_v47  ;;  %v246_v53 = vld [vmem:[%s3403_s6 + $0x100] sm:$0xff]  ;;  %v248_v54 = vld [vmem:[%s3403_s6 + $0x110] sm:$0xff] }
  0x66   : > { %2853 = vmatprep.subr.bf16.mxu0 %v2852_v20  ;;  %2907 = vmatprep.subr.bf16.mxu1 %v2852_v20  ;;  %v2872_v52 = vpack.c.bf16 %v249_v50, %v247_v49  ;;  %v251_v55 = vld [vmem:[%s3403_s6 + $0x128] sm:$0xff]  ;;  %v253_v56 = vld [vmem:[%s3403_s6 + $0x138] sm:$0xff]  ;;  %v2874_v57 = vpack.c.bf16 %v248_v54, %v246_v53  ;;  %v250_v59 = vld [vmem:[%s3403_s6 + $0x120] sm:$0xff] }
  0x67   : > { %354 = vmatprep.mubr.f32.mxu1 %v211_v44  ;;  %v2876_v58 = vpack.c.bf16 %v253_v56, %v251_v55  ;;  %v252_v60 = vld [vmem:[%s3403_s6 + $0x130] sm:$0xff]  ;;  %v255_v61 = vld [vmem:[%s3403_s6 + $0x148] sm:$0xff]  ;;  %v257_v62 = vld [vmem:[%s3403_s6 + $0x158] sm:$0xff]  ;;  %3001 = vset.pattern.permute.xlu0 %v3230_v42 }
  0x68   : > { %v2878_v63 = vpack.c.bf16 %v252_v60, %v250_v59  ;;  %v2880_v0 = vpack.c.bf16 %v257_v62, %v255_v61  ;;  %v254_v1 = vld [vmem:[%s3403_s6 + $0x140] sm:$0xff]  ;;  %v256_v2 = vld [vmem:[%s3403_s6 + $0x150] sm:$0xff]  ;;  %v259_v3 = vld [vmem:[%s3403_s6 + $0x168] sm:$0xff]  ;;  %3002 = vset.pattern.permute.xlu1 %v3230_v42 }
  0x69   : > { %2855 = vmatpush1.bf16.msra.mxu0 %v2854_v25  ;;  %2923 = vmatpush1.bf16.msra.mxu1 %v2854_v25  ;;  %v261_v4 = vld [vmem:[%s3403_s6 + $0x178] sm:$0xff]  ;;  %v2882_v5 = vpack.c.bf16 %v256_v2, %v254_v1  ;;  %v258_v7 = vld [vmem:[%s3403_s6 + $0x160] sm:$0xff]  ;;  %v260_v8 = vld [vmem:[%s3403_s6 + $0x170] sm:$0xff] }
  0x6a   : > { %2857 = vmatprep.subr.bf16.mxu0 %v2856_v26  ;;  %2908 = vmatprep.subr.bf16.mxu1 %v2856_v26  ;;  %v2884_v6 = vpack.c.bf16 %v261_v4, %v259_v3  ;;  %v263_v9 = vld [vmem:[%s3403_s6 + $0x188] sm:$0xff]  ;;  %v265_v10 = vld [vmem:[%s3403_s6 + $0x198] sm:$0xff]  ;;  %v2886_v11 = vpack.c.bf16 %v260_v8, %v258_v7  ;;  %v262_v13 = vld [vmem:[%s3403_s6 + $0x180] sm:$0xff] }
  0x6b   : > { %v2888_v12 = vpack.c.bf16 %v265_v10, %v263_v9  ;;  %v264_v14 = vld [vmem:[%s3403_s6 + $0x190] sm:$0xff]  ;;  %v267_v15 = vld [vmem:[%s3403_s6 + $0x1a8] sm:$0xff]  ;;  %v269_v16 = vld [vmem:[%s3403_s6 + $0x1b8] sm:$0xff] }
  0x6c   : > { %v2890_v17 = vpack.c.bf16 %v264_v14, %v262_v13  ;;  %v2892_v18 = vpack.c.bf16 %v269_v16, %v267_v15  ;;  %v266_v19 = vld [vmem:[%s3403_s6 + $0x1a0] sm:$0xff]  ;;  %v268_v20 = vld [vmem:[%s3403_s6 + $0x1b0] sm:$0xff]  ;;  %v271_v21 = vld [vmem:[%s3403_s6 + $0x1c8] sm:$0xff] }
  0x6d   : > { %2859 = vmatpush1.bf16.msra.mxu0 %v2858_v31  ;;  %2924 = vmatpush1.bf16.msra.mxu1 %v2858_v31  ;;  %v273_v22 = vld [vmem:[%s3403_s6 + $0x1d8] sm:$0xff]  ;;  %v2894_v23 = vpack.c.bf16 %v268_v20, %v266_v19  ;;  %v270_v25 = vld [vmem:[%s3403_s6 + $0x1c0] sm:$0xff]  ;;  %v272_v26 = vld [vmem:[%s3403_s6 + $0x1d0] sm:$0xff] }
  0x6e   : > { %2861 = vmatprep.subr.bf16.mxu0 %v2860_v32  ;;  %2909 = vmatprep.subr.bf16.mxu1 %v2860_v32  ;;  %v2896_v24 = vpack.c.bf16 %v273_v22, %v271_v21  ;;  %v275_v27 = vld [vmem:[%s3403_s6 + $0x1e8] sm:$0xff]  ;;  %v277_v28 = vld [vmem:[%s3403_s6 + $0x1f8] sm:$0xff]  ;;  %v2898_v29 = vpack.c.bf16 %v272_v26, %v270_v25  ;;  %v274_v31 = vld [vmem:[%s3403_s6 + $0x1e0] sm:$0xff] }
  0x6f   : > { %v2900_v30 = vpack.c.bf16 %v277_v28, %v275_v27  ;;  %v276_v32 = vld [vmem:[%s3403_s6 + $0x1f0] sm:$0xff]  ;;  %v206_v34 = vld [vmem:[#allocation5] sm:$0xff]  ;;  %v209_v36 = vld [vmem:[#allocation5 + $0x18] sm:$0xff] }
  0x70   : > { %v2902_v33 = vpack.c.bf16 %v276_v32, %v274_v31  ;;  %v210_v35 = vld [vmem:[#allocation5 + $0x20] sm:$0xff]  ;;  %v212_v39 = vld [vmem:[#allocation5 + $0x30] sm:$0xff]  ;;  %v1570_v43 = vld [vmem:[%s4996_s2 + $0x8] sm:$0xff] }
  0x71   : > { %2863 = vmatpush1.bf16.msra.mxu0 %v2862_v37  ;;  %2925 = vmatpush1.bf16.msra.mxu1 %v2862_v37  ;;  %v213_v37 = vld [vmem:[#allocation5 + $0x38] sm:$0xff]  ;;  %v1569_v40 = vld [vmem:[%s4996_s2] sm:$0xff]  ;;  %v1571_v41 = vld [vmem:[%s4996_s2 + $0x10] sm:$0xff] }
  0x72   : > { %2865 = vmatprep.subr.bf16.mxu0 %v2864_v38  ;;  %2910 = vmatprep.subr.bf16.mxu1 %v2864_v38  ;;  %v208_v38 = vld [vmem:[#allocation5 + $0x10] sm:$0xff]  ;;  %v1572_v44 = vld [vmem:[%s4996_s2 + $0x18] sm:$0xff] }
  0x73   : > { %1575 = vperm.xlu0 %3001, %v1569_v40   ;;  %1593 = vperm.xlu1 %3002, %v1571_v41  }
  0x75   : > { %2867 = vmatpush1.bf16.msra.mxu0 %v2866_v45  ;;  %2926 = vmatpush1.bf16.msra.mxu1 %v2866_v45 }
  0x76   : > { %2869 = vmatprep.subr.bf16.mxu0 %v2868_v46  ;;  %2911 = vmatprep.subr.bf16.mxu1 %v2868_v46 }
  0x77   : > { %1584 = vperm.xlu0 %3001, %v1570_v43   ;;  %1602 = vperm.xlu1 %3002, %v1572_v44  }
  0x79   : > { %2871 = vmatpush1.bf16.msra.mxu0 %v2870_v51  ;;  %2927 = vmatpush1.bf16.msra.mxu1 %v2870_v51 }
  0x7a   : > { %2873 = vmatprep.subr.bf16.mxu0 %v2872_v52  ;;  %2912 = vmatprep.subr.bf16.mxu1 %v2872_v52 }
  0x7d   : > { %2875 = vmatpush1.bf16.msra.mxu0 %v2874_v57  ;;  %2928 = vmatpush1.bf16.msra.mxu1 %v2874_v57 }
  0x7e   : > { %2877 = vmatprep.subr.bf16.mxu0 %v2876_v58  ;;  %2913 = vmatprep.subr.bf16.mxu1 %v2876_v58 }
  0x81   : > { %2879 = vmatpush1.bf16.msra.mxu0 %v2878_v63  ;;  %2929 = vmatpush1.bf16.msra.mxu1 %v2878_v63 }
  0x82   : > { %2881 = vmatprep.subr.bf16.mxu0 %v2880_v0  ;;  %2914 = vmatprep.subr.bf16.mxu1 %v2880_v0 }
  0x85   : > { %2883 = vmatpush1.bf16.msra.mxu0 %v2882_v5  ;;  %2930 = vmatpush1.bf16.msra.mxu1 %v2882_v5 }
  0x86   : > { %2885 = vmatprep.subr.bf16.mxu0 %v2884_v6  ;;  %2915 = vmatprep.subr.bf16.mxu1 %v2884_v6 }
  0x89   : > { %2887 = vmatpush1.bf16.msra.mxu0 %v2886_v11  ;;  %2931 = vmatpush1.bf16.msra.mxu1 %v2886_v11 }
  0x8a   : > { %2889 = vmatprep.subr.bf16.mxu0 %v2888_v12  ;;  %2916 = vmatprep.subr.bf16.mxu1 %v2888_v12 }
  0x8d   : > { %2891 = vmatpush1.bf16.msra.mxu0 %v2890_v17  ;;  %2932 = vmatpush1.bf16.msra.mxu1 %v2890_v17 }
  0x8e   : > { %2893 = vmatprep.subr.bf16.mxu0 %v2892_v18  ;;  %2917 = vmatprep.subr.bf16.mxu1 %v2892_v18 }
  0x91   : > { %2895 = vmatpush1.bf16.msra.mxu0 %v2894_v23  ;;  %2933 = vmatpush1.bf16.msra.mxu1 %v2894_v23 }
  0x92   : > { %2897 = vmatprep.subr.bf16.mxu0 %v2896_v24  ;;  %2918 = vmatprep.subr.bf16.mxu1 %v2896_v24 }
  0x95   : > { %2899 = vmatpush1.bf16.msra.mxu0 %v2898_v29  ;;  %2934 = vmatpush1.bf16.msra.mxu1 %v2898_v29 }
  0x96   : > { %2901 = vmatprep.subr.bf16.mxu0 %v2900_v30  ;;  %2919 = vmatprep.subr.bf16.mxu1 %v2900_v30 }
  0x99   : > { %2903 = vmatpush1.bf16.msra.mxu0 %v2902_v33  ;;  %2935 = vmatpush1.bf16.msra.mxu1 %v2902_v33 }
  0x9c   : > { %343 = vmatmul.mubr.f32.vlgmr.msra.gmra.mrb[0].mxu0 %v206_v34  ;;  %355 = vmatmul.mubr.f32.vlgmr.msra.gmra.mrb[0].mxu1 %v210_v35 }
  0x9d   : > { %348 = vmatprep.mubr.f32.mxu0 %v209_v36  ;;  %360 = vmatprep.mubr.f32.mxu1 %v213_v37 }
  0xa0   : > { %349 = vmatmul.mubr.f32.gmra.mrb[2].mxu0 %v208_v38  ;;  %361 = vmatmul.mubr.f32.gmra.mrb[2].mxu1 %v212_v39 }
 0x16f   : > { %v3489_v45 = vpop.f32.mrb[0].mxu0  ;;  %v3491_v46 = vpop.f32.mrb[0].mxu1 }
 0x170   : > { %v3493_v47 = vpop.f32.mrb[1].mxu0  ;;  %v3495_v48 = vpop.f32.mrb[1].mxu1 }
 0x173   : > { %v3497_v49 = vpop.f32.mrb[2].mxu0  ;;  %v3499_v50 = vpop.f32.mrb[2].mxu1 }
 0x174   : > { %v3501_v51 = vpop.f32.mrb[3].mxu0  ;;  %v3503_v52 = vpop.f32.mrb[3].mxu1  ;;  %v367_v53 = vmax.f32 %v3489_v45, %v3497_v49 }
 0x175   : > { %v368_v54 = vmax.f32 %v3493_v47, %v3501_v51 }
 0x176   : > { %v369_v55 = vmax.f32 %v367_v53, %v3491_v46 }
 0x177   : > { %v370_v56 = vmax.f32 %v368_v54, %v3495_v48 }
 0x178   : > { %v371_v57 = vmax.f32 %v369_v55, %v3499_v50 }
 0x179   : > { %v372_v58 = vmax.f32 %v370_v56, %v3503_v52 }
 0x17a   : > { %v373_v59 = vrot.slane %v371_v57, 4 }
 0x17b   : > { %v374_v60 = vrot.slane %v372_v58, 4 }
 0x17c   : > { %v375_v61 = vmax.f32 %v371_v57, %v373_v59 }
 0x17d   : > { %v376_v62 = vmax.f32 %v372_v58, %v374_v60 }
 0x17e   : > { %v3513_v63 = vadd.f32 -1.0, %v375_v61  ;;  %v2831_v0 = vadd.f32 -0.35355338, %v375_v61 }
 0x17f   : > { %v3515_v1 = vadd.f32 -1.0, %v376_v62  ;;  %v2832_v2 = vadd.f32 -0.35355338, %v376_v62 }
 0x180   : > { %v381_v3 = vsub.f32 %v2831_v0, %v3513_v63  ;;  %v383_v4 = vsub.f32 %v3489_v45, %v3513_v63  ;;  %v391_v5 = vsub.f32 %v3497_v49, %v3513_v63  ;;  %v399_v6 = vsub.f32 %v3491_v46, %v3513_v63 }
 0x181   : > { %v382_v7 = vsub.f32 %v2832_v2, %v3515_v1  ;;  %v384_v8 = vsub.f32 %v3493_v47, %v3515_v1  ;;  %v392_v9 = vsub.f32 %v3501_v51, %v3515_v1  ;;  %v400_v10 = vsub.f32 %v3495_v48, %v3515_v1 }
 0x182   : > { %v385_v11 = vmax.f32 %v383_v4, 0.0  ;;  %v393_v12 = vmax.f32 %v391_v5, 0.0  ;;  %v401_v13 = vmax.f32 %v399_v6, 0.0  ;;  %v407_v14 = vsub.f32 %v3499_v50, %v3513_v63 }
 0x183   : > { %v386_v15 = vmax.f32 %v384_v8, 0.0  ;;  %v394_v16 = vmax.f32 %v392_v9, 0.0  ;;  %v402_v17 = vmax.f32 %v400_v10, 0.0  ;;  %v408_v18 = vsub.f32 %v3503_v52, %v3515_v1 }
 0x184   : > { %v387_v19 = vmul.f32 %v385_v11, %v385_v11  ;;  %v395_v20 = vmul.f32 %v393_v12, %v393_v12  ;;  %v409_v21 = vmax.f32 %v407_v14, 0.0  ;;  %v403_v26 = vmul.f32 %v401_v13, %v401_v13 }
 0x185   : > { %v388_v22 = vmul.f32 %v386_v15, %v386_v15  ;;  %v396_v23 = vmul.f32 %v394_v16, %v394_v16  ;;  %v410_v24 = vmax.f32 %v408_v18, 0.0  ;;  %v421_v27 = vmul.f32 0.5, %v381_v3 }
 0x186   : > { %v397_v25 = vadd.f32 %v395_v20, %v387_v19  ;;  %v422_v28 = vmul.f32 0.5, %v382_v7  ;;  %v404_v30 = vmul.f32 %v402_v17, %v402_v17  ;;  %v411_v32 = vmul.f32 %v409_v21, %v409_v21 }
 0x187   : > { %v398_v29 = vadd.f32 %v396_v23, %v388_v22  ;;  %v423_v33 = vadd.f32 %v3513_v63, %v421_v27  ;;  %v412_v36 = vmul.f32 %v410_v24, %v410_v24  ;;  %v469_v23 = vmul.f32 0.5, %v421_v27 }
 0x188   : > { %v405_v31 = vadd.f32 %v403_v26, %v397_v25  ;;  %v424_v34 = vadd.f32 %v3515_v1, %v422_v28  ;;  %v470_v25 = vmul.f32 0.5, %v422_v28 }
 0x189   : > { %v406_v35 = vadd.f32 %v404_v30, %v398_v29  ;;  %v425_v38 = vsub.f32 %v3489_v45, %v423_v33  ;;  %v433_v40 = vsub.f32 %v3497_v49, %v423_v33  ;;  %v441_v43 = vsub.f32 %v3491_v46, %v423_v33 }
 0x18a   : > { %v413_v37 = vadd.f32 %v411_v32, %v405_v31  ;;  %v426_v39 = vsub.f32 %v3493_v47, %v424_v34  ;;  %v434_v42 = vsub.f32 %v3501_v51, %v424_v34  ;;  %v442_v44 = vsub.f32 %v3495_v48, %v424_v34 }
 0x18b   : > { %v414_v41 = vadd.f32 %v412_v36, %v406_v35  ;;  %v427_v53 = vmax.f32 %v425_v38, 0.0  ;;  %v435_v55 = vmax.f32 %v433_v40, 0.0  ;;  %v443_v57 = vmax.f32 %v441_v43, 0.0 }
 0x18c   : > { %v428_v54 = vmax.f32 %v426_v39, 0.0  ;;  %v436_v56 = vmax.f32 %v434_v42, 0.0  ;;  %v444_v58 = vmax.f32 %v442_v44, 0.0  ;;  %v449_v3 = vsub.f32 %v3499_v50, %v423_v33 }
 0x18d   : > { %v429_v59 = vmul.f32 %v427_v53, %v427_v53  ;;  %v437_v61 = vmul.f32 %v435_v55, %v435_v55  ;;  %v445_v2 = vmul.f32 %v443_v57, %v443_v57  ;;  %v450_v4 = vsub.f32 %v3503_v52, %v424_v34 }
 0x18e   : > { %v430_v60 = vmul.f32 %v428_v54, %v428_v54  ;;  %v438_v62 = vmul.f32 %v436_v56, %v436_v56  ;;  %v446_v6 = vmul.f32 %v444_v58, %v444_v58  ;;  %v451_v8 = vmax.f32 %v449_v3, 0.0 }
 0x18f   : > { %v439_v0 = vadd.f32 %v437_v61, %v429_v59  ;;  %v452_v9 = vmax.f32 %v450_v4, 0.0  ;;  %v415_v11 = vrot.slane %v413_v37, 4  ;;  %v416_v14 = vrot.slane %v414_v41, 4 }
 0x190   : > { %v440_v5 = vadd.f32 %v438_v62, %v430_v60  ;;  %v453_v12 = vmul.f32 %v451_v8, %v451_v8 }
 0x191   : > { %v447_v7 = vadd.f32 %v445_v2, %v439_v0  ;;  %v454_v13 = vmul.f32 %v452_v9, %v452_v9  ;;  %v3545_v17 = vadd.f32 %v415_v11, %v413_v37  ;;  %v3547_v20 = vadd.f32 %v416_v14, %v414_v41 }
 0x192   : > { %v448_v10 = vadd.f32 %v446_v6, %v440_v5  ;;  %v518_v9 = vmul.f32 0.5, %v470_v25 }
 0x193   : > { %v455_v15 = vadd.f32 %v453_v12, %v447_v7  ;;  %vm419_vm0 = vcmp.ge.f32.partialorder %v3545_v17, 1.0  ;;  %vm420_vm3 = vcmp.ge.f32.partialorder %v3547_v20, 1.0  ;;  %v517_v7 = vmul.f32 0.5, %v469_v23 }
 0x194   : > { %v456_v16 = vadd.f32 %v454_v13, %v448_v10 }
 0x195   : > { %v457_v18 = vrot.slane %v455_v15, 4 }
 0x196   : > { %v458_v19 = vrot.slane %v456_v16, 4 }
 0x197   : > { %v459_v21 = vadd.f32 %v457_v18, %v455_v15 }
 0x198   : > { %v460_v22 = vadd.f32 %v458_v19, %v456_v16 }
 0x199   : > { %vm461_vm1 = vcmp.ge.f32.partialorder %v459_v21, 1.0 }
 0x19a   : > { %vm462_vm2 = vcmp.ge.f32.partialorder %v460_v22, 1.0  ;;  %vm463_vm4 = vmxor %vm461_vm1, %vm419_vm0 }
 0x19b   : > { %vm464_vm5 = vmxor %vm462_vm2, %vm420_vm3 }
 0x19c   : > { %vm465_vm7 = vmxor %vm463_vm4, %vm3231_vm6 }
 0x19d   : > { %vm466_vm8 = vmxor %vm464_vm5, %vm3231_vm6  ;;  %v467_v24 = vsel %vm465_vm7, %v423_v33, %v3513_v63 }
 0x19e   : > { %v468_v26 = vsel %vm466_vm8, %v424_v34, %v3515_v1  ;;  %v471_v29 = vadd.f32 %v469_v23, %v467_v24 }
 0x19f   : > { %v472_v30 = vadd.f32 %v470_v25, %v468_v26 }
 0x1a0   : > { %v473_v31 = vsub.f32 %v3489_v45, %v471_v29  ;;  %v481_v32 = vsub.f32 %v3497_v49, %v471_v29  ;;  %v489_v35 = vsub.f32 %v3491_v46, %v471_v29  ;;  %v497_v36 = vsub.f32 %v3499_v50, %v471_v29 }
 0x1a1   : > { %v474_v37 = vsub.f32 %v3493_v47, %v472_v30  ;;  %v482_v27 = vsub.f32 %v3501_v51, %v472_v30  ;;  %v490_v38 = vsub.f32 %v3495_v48, %v472_v30  ;;  %v498_v63 = vsub.f32 %v3503_v52, %v472_v30 }
 0x1a2   : > { %v475_v28 = vmax.f32 %v473_v31, 0.0  ;;  %v483_v1 = vmax.f32 %v481_v32, 0.0  ;;  %v491_v33 = vmax.f32 %v489_v35, 0.0  ;;  %v499_v43 = vmax.f32 %v497_v36, 0.0 }
 0x1a3   : > { %v476_v34 = vmax.f32 %v474_v37, 0.0  ;;  %v484_v39 = vmax.f32 %v482_v27, 0.0  ;;  %v492_v40 = vmax.f32 %v490_v38, 0.0  ;;  %v500_v54 = vmax.f32 %v498_v63, 0.0 }
 0x1a4   : > { %v477_v41 = vmul.f32 %v475_v28, %v475_v28  ;;  %v485_v42 = vmul.f32 %v483_v1, %v483_v1  ;;  %v493_v56 = vmul.f32 %v491_v33, %v491_v33  ;;  %v501_v60 = vmul.f32 %v499_v43, %v499_v43 }
 0x1a5   : > { %v478_v44 = vmul.f32 %v476_v34, %v476_v34  ;;  %v486_v53 = vmul.f32 %v484_v39, %v484_v39  ;;  %v494_v58 = vmul.f32 %v492_v40, %v492_v40  ;;  %v502_v62 = vmul.f32 %v500_v54, %v500_v54 }
 0x1a6   : > { %v487_v55 = vadd.f32 %v485_v42, %v477_v41 }
 0x1a7   : > { %v488_v57 = vadd.f32 %v486_v53, %v478_v44 }
 0x1a8   : > { %v495_v59 = vadd.f32 %v493_v56, %v487_v55  ;;  %v565_v55 = vmul.f32 0.5, %v517_v7 }
 0x1a9   : > { %v496_v61 = vadd.f32 %v494_v58, %v488_v57  ;;  %v566_v57 = vmul.f32 0.5, %v518_v9 }
 0x1aa   : > { %v503_v0 = vadd.f32 %v501_v60, %v495_v59 }
 0x1ab   : > { %v504_v2 = vadd.f32 %v502_v62, %v496_v61 }
 0x1ac   : > { %v505_v3 = vrot.slane %v503_v0, 4 }
 0x1ad   : > { %v506_v4 = vrot.slane %v504_v2, 4 }
 0x1ae   : > { %v507_v5 = vadd.f32 %v505_v3, %v503_v0 }
 0x1af   : > { %v508_v6 = vadd.f32 %v506_v4, %v504_v2 }
 0x1b0   : > { %vm509_vm9 = vcmp.ge.f32.partialorder %v507_v5, 1.0 }
 0x1b1   : > { %vm510_vm10 = vcmp.ge.f32.partialorder %v508_v6, 1.0  ;;  %vm511_vm11 = vmxor %vm509_vm9, %vm419_vm0 }
 0x1b2   : > { %vm512_vm12 = vmxor %vm510_vm10, %vm420_vm3 }
 0x1b3   : > { %vm513_vm13 = vmxor %vm511_vm11, %vm3231_vm6 }
 0x1b4   : > { %vm514_vm14 = vmxor %vm512_vm12, %vm3231_vm6  ;;  %v515_v8 = vsel %vm513_vm13, %v471_v29, %v467_v24 }
 0x1b5   : > { %v516_v10 = vsel %vm514_vm14, %v472_v30, %v468_v26  ;;  %v519_v11 = vadd.f32 %v517_v7, %v515_v8 }
 0x1b6   : > { %v520_v12 = vadd.f32 %v518_v9, %v516_v10 }
 0x1b7   : > { %v521_v13 = vsub.f32 %v3489_v45, %v519_v11  ;;  %v529_v14 = vsub.f32 %v3497_v49, %v519_v11  ;;  %v537_v15 = vsub.f32 %v3491_v46, %v519_v11  ;;  %v545_v16 = vsub.f32 %v3499_v50, %v519_v11 }
 0x1b8   : > { %v522_v18 = vsub.f32 %v3493_v47, %v520_v12  ;;  %v530_v19 = vsub.f32 %v3501_v51, %v520_v12  ;;  %v538_v21 = vsub.f32 %v3495_v48, %v520_v12  ;;  %v546_v22 = vsub.f32 %v3503_v52, %v520_v12 }
 0x1b9   : > { %v523_v23 = vmax.f32 %v521_v13, 0.0  ;;  %v531_v24 = vmax.f32 %v529_v14, 0.0  ;;  %v539_v25 = vmax.f32 %v537_v15, 0.0  ;;  %v547_v35 = vmax.f32 %v545_v16, 0.0 }
 0x1ba   : > { %v524_v26 = vmax.f32 %v522_v18, 0.0  ;;  %v532_v29 = vmax.f32 %v530_v19, 0.0  ;;  %v540_v30 = vmax.f32 %v538_v21, 0.0  ;;  %v548_v27 = vmax.f32 %v546_v22, 0.0 }
 0x1bb   : > { %v525_v31 = vmul.f32 %v523_v23, %v523_v23  ;;  %v533_v32 = vmul.f32 %v531_v24, %v531_v24  ;;  %v541_v63 = vmul.f32 %v539_v25, %v539_v25  ;;  %v549_v34 = vmul.f32 %v547_v35, %v547_v35 }
 0x1bc   : > { %v526_v36 = vmul.f32 %v524_v26, %v524_v26  ;;  %v534_v37 = vmul.f32 %v532_v29, %v532_v29  ;;  %v542_v1 = vmul.f32 %v540_v30, %v540_v30  ;;  %v550_v40 = vmul.f32 %v548_v27, %v548_v27 }
 0x1bd   : > { %v535_v38 = vadd.f32 %v533_v32, %v525_v31 }
 0x1be   : > { %v536_v28 = vadd.f32 %v534_v37, %v526_v36 }
 0x1bf   : > { %v543_v33 = vadd.f32 %v541_v63, %v535_v38  ;;  %v613_v38 = vmul.f32 0.5, %v565_v55 }
 0x1c0   : > { %v544_v39 = vadd.f32 %v542_v1, %v536_v28  ;;  %v614_v28 = vmul.f32 0.5, %v566_v57 }
 0x1c1   : > { %v551_v41 = vadd.f32 %v549_v34, %v543_v33 }
 0x1c2   : > { %v552_v42 = vadd.f32 %v550_v40, %v544_v39 }
 0x1c3   : > { %v553_v43 = vrot.slane %v551_v41, 4 }
 0x1c4   : > { %v554_v44 = vrot.slane %v552_v42, 4 }
 0x1c5   : > { %v555_v53 = vadd.f32 %v553_v43, %v551_v41 }
 0x1c6   : > { %v556_v54 = vadd.f32 %v554_v44, %v552_v42 }
 0x1c7   : > { %vm557_vm15 = vcmp.ge.f32.partialorder %v555_v53, 1.0 }
 0x1c8   : > { %vm558_vm1 = vcmp.ge.f32.partialorder %v556_v54, 1.0  ;;  %vm559_vm2 = vmxor %vm557_vm15, %vm419_vm0 }
 0x1c9   : > { %vm560_vm4 = vmxor %vm558_vm1, %vm420_vm3 }
 0x1ca   : > { %vm561_vm5 = vmxor %vm559_vm2, %vm3231_vm6 }
 0x1cb   : > { %vm562_vm7 = vmxor %vm560_vm4, %vm3231_vm6  ;;  %v563_v56 = vsel %vm561_vm5, %v519_v11, %v515_v8 }
 0x1cc   : > { %v564_v58 = vsel %vm562_vm7, %v520_v12, %v516_v10  ;;  %v567_v59 = vadd.f32 %v565_v55, %v563_v56 }
 0x1cd   : > { %v568_v60 = vadd.f32 %v566_v57, %v564_v58 }
 0x1ce   : > { %v569_v61 = vsub.f32 %v3489_v45, %v567_v59  ;;  %v577_v62 = vsub.f32 %v3497_v49, %v567_v59  ;;  %v585_v0 = vsub.f32 %v3491_v46, %v567_v59  ;;  %v593_v2 = vsub.f32 %v3499_v50, %v567_v59 }
 0x1cf   : > { %v570_v3 = vsub.f32 %v3493_v47, %v568_v60  ;;  %v578_v4 = vsub.f32 %v3501_v51, %v568_v60  ;;  %v586_v5 = vsub.f32 %v3495_v48, %v568_v60  ;;  %v594_v6 = vsub.f32 %v3503_v52, %v568_v60 }
 0x1d0   : > { %v571_v7 = vmax.f32 %v569_v61, 0.0  ;;  %v579_v8 = vmax.f32 %v577_v62, 0.0  ;;  %v587_v9 = vmax.f32 %v585_v0, 0.0  ;;  %v595_v15 = vmax.f32 %v593_v2, 0.0 }
 0x1d1   : > { %v572_v10 = vmax.f32 %v570_v3, 0.0  ;;  %v580_v11 = vmax.f32 %v578_v4, 0.0  ;;  %v588_v12 = vmax.f32 %v586_v5, 0.0  ;;  %v596_v19 = vmax.f32 %v594_v6, 0.0 }
 0x1d2   : > { %v573_v13 = vmul.f32 %v571_v7, %v571_v7  ;;  %v581_v14 = vmul.f32 %v579_v8, %v579_v8  ;;  %v589_v22 = vmul.f32 %v587_v9, %v587_v9  ;;  %v597_v26 = vmul.f32 %v595_v15, %v595_v15 }
 0x1d3   : > { %v574_v16 = vmul.f32 %v572_v10, %v572_v10  ;;  %v582_v18 = vmul.f32 %v580_v11, %v580_v11  ;;  %v590_v24 = vmul.f32 %v588_v12, %v588_v12  ;;  %v598_v30 = vmul.f32 %v596_v19, %v596_v19 }
 0x1d4   : > { %v583_v21 = vadd.f32 %v581_v14, %v573_v13 }
 0x1d5   : > { %v584_v23 = vadd.f32 %v582_v18, %v574_v16 }
 0x1d6   : > { %v591_v25 = vadd.f32 %v589_v22, %v583_v21  ;;  %v661_v21 = vmul.f32 0.5, %v613_v38 }
 0x1d7   : > { %v592_v29 = vadd.f32 %v590_v24, %v584_v23  ;;  %v662_v23 = vmul.f32 0.5, %v614_v28 }
 0x1d8   : > { %v599_v31 = vadd.f32 %v597_v26, %v591_v25 }
 0x1d9   : > { %v600_v32 = vadd.f32 %v598_v30, %v592_v29 }
 0x1da   : > { %v601_v35 = vrot.slane %v599_v31, 4 }
 0x1db   : > { %v602_v36 = vrot.slane %v600_v32, 4 }
 0x1dc   : > { %v603_v37 = vadd.f32 %v601_v35, %v599_v31 }
 0x1dd   : > { %v604_v27 = vadd.f32 %v602_v36, %v600_v32 }
 0x1de   : > { %vm605_vm8 = vcmp.ge.f32.partialorder %v603_v37, 1.0 }
 0x1df   : > { %vm606_vm9 = vcmp.ge.f32.partialorder %v604_v27, 1.0  ;;  %vm607_vm10 = vmxor %vm605_vm8, %vm419_vm0 }
 0x1e0   : > { %vm608_vm11 = vmxor %vm606_vm9, %vm420_vm3 }
 0x1e1   : > { %vm609_vm12 = vmxor %vm607_vm10, %vm3231_vm6 }
 0x1e2   : > { %vm610_vm13 = vmxor %vm608_vm11, %vm3231_vm6  ;;  %v611_v63 = vsel %vm609_vm12, %v567_v59, %v563_v56 }
 0x1e3   : > { %v612_v1 = vsel %vm610_vm13, %v568_v60, %v564_v58  ;;  %v615_v33 = vadd.f32 %v613_v38, %v611_v63 }
 0x1e4   : > { %v616_v34 = vadd.f32 %v614_v28, %v612_v1 }
 0x1e5   : > { %v617_v39 = vsub.f32 %v3489_v45, %v615_v33  ;;  %v625_v40 = vsub.f32 %v3497_v49, %v615_v33  ;;  %v633_v41 = vsub.f32 %v3491_v46, %v615_v33  ;;  %v641_v42 = vsub.f32 %v3499_v50, %v615_v33 }
 0x1e6   : > { %v618_v43 = vsub.f32 %v3493_v47, %v616_v34  ;;  %v626_v44 = vsub.f32 %v3501_v51, %v616_v34  ;;  %v634_v53 = vsub.f32 %v3495_v48, %v616_v34  ;;  %v642_v54 = vsub.f32 %v3503_v52, %v616_v34 }
 0x1e7   : > { %v619_v55 = vmax.f32 %v617_v39, 0.0  ;;  %v627_v56 = vmax.f32 %v625_v40, 0.0  ;;  %v635_v57 = vmax.f32 %v633_v41, 0.0  ;;  %v643_v0 = vmax.f32 %v641_v42, 0.0 }
 0x1e8   : > { %v620_v58 = vmax.f32 %v618_v43, 0.0  ;;  %v628_v59 = vmax.f32 %v626_v44, 0.0  ;;  %v636_v60 = vmax.f32 %v634_v53, 0.0  ;;  %v644_v4 = vmax.f32 %v642_v54, 0.0 }
 0x1e9   : > { %v621_v61 = vmul.f32 %v619_v55, %v619_v55  ;;  %v629_v62 = vmul.f32 %v627_v56, %v627_v56  ;;  %v637_v6 = vmul.f32 %v635_v57, %v635_v57  ;;  %v645_v10 = vmul.f32 %v643_v0, %v643_v0 }
 0x1ea   : > { %v622_v2 = vmul.f32 %v620_v58, %v620_v58  ;;  %v630_v3 = vmul.f32 %v628_v59, %v628_v59  ;;  %v638_v8 = vmul.f32 %v636_v60, %v636_v60  ;;  %v646_v12 = vmul.f32 %v644_v4, %v644_v4 }
 0x1eb   : > { %v631_v5 = vadd.f32 %v629_v62, %v621_v61 }
 0x1ec   : > { %v632_v7 = vadd.f32 %v630_v3, %v622_v2 }
 0x1ed   : > { %v639_v9 = vadd.f32 %v637_v6, %v631_v5  ;;  %v709_v5 = vmul.f32 0.5, %v661_v21 }
 0x1ee   : > { %v640_v11 = vadd.f32 %v638_v8, %v632_v7  ;;  %v710_v7 = vmul.f32 0.5, %v662_v23 }
 0x1ef   : > { %v647_v13 = vadd.f32 %v645_v10, %v639_v9 }
 0x1f0   : > { %v648_v14 = vadd.f32 %v646_v12, %v640_v11 }
 0x1f1   : > { %v649_v15 = vrot.slane %v647_v13, 4 }
 0x1f2   : > { %v650_v16 = vrot.slane %v648_v14, 4 }
 0x1f3   : > { %v651_v18 = vadd.f32 %v649_v15, %v647_v13 }
 0x1f4   : > { %v652_v19 = vadd.f32 %v650_v16, %v648_v14 }
 0x1f5   : > { %vm653_vm14 = vcmp.ge.f32.partialorder %v651_v18, 1.0 }
 0x1f6   : > { %vm654_vm15 = vcmp.ge.f32.partialorder %v652_v19, 1.0  ;;  %vm655_vm1 = vmxor %vm653_vm14, %vm419_vm0 }
 0x1f7   : > { %vm656_vm2 = vmxor %vm654_vm15, %vm420_vm3 }
 0x1f8   : > { %vm657_vm4 = vmxor %vm655_vm1, %vm3231_vm6 }
 0x1f9   : > { %vm658_vm5 = vmxor %vm656_vm2, %vm3231_vm6  ;;  %v659_v22 = vsel %vm657_vm4, %v615_v33, %v611_v63 }
 0x1fa   : > { %v660_v24 = vsel %vm658_vm5, %v616_v34, %v612_v1  ;;  %v663_v25 = vadd.f32 %v661_v21, %v659_v22 }
 0x1fb   : > { %v664_v26 = vadd.f32 %v662_v23, %v660_v24 }
 0x1fc   : > { %v665_v29 = vsub.f32 %v3489_v45, %v663_v25  ;;  %v673_v30 = vsub.f32 %v3497_v49, %v663_v25  ;;  %v681_v31 = vsub.f32 %v3491_v46, %v663_v25  ;;  %v689_v32 = vsub.f32 %v3499_v50, %v663_v25 }
 0x1fd   : > { %v666_v35 = vsub.f32 %v3493_v47, %v664_v26  ;;  %v674_v36 = vsub.f32 %v3501_v51, %v664_v26  ;;  %v682_v37 = vsub.f32 %v3495_v48, %v664_v26  ;;  %v690_v27 = vsub.f32 %v3503_v52, %v664_v26 }
 0x1fe   : > { %v667_v38 = vmax.f32 %v665_v29, 0.0  ;;  %v675_v63 = vmax.f32 %v673_v30, 0.0  ;;  %v683_v28 = vmax.f32 %v681_v31, 0.0  ;;  %v691_v41 = vmax.f32 %v689_v32, 0.0 }
 0x1ff   : > { %v668_v1 = vmax.f32 %v666_v35, 0.0  ;;  %v676_v33 = vmax.f32 %v674_v36, 0.0  ;;  %v684_v34 = vmax.f32 %v682_v37, 0.0  ;;  %v692_v44 = vmax.f32 %v690_v27, 0.0 }
 0x200   : > { %v669_v39 = vmul.f32 %v667_v38, %v667_v38  ;;  %v677_v40 = vmul.f32 %v675_v63, %v675_v63  ;;  %v685_v54 = vmul.f32 %v683_v28, %v683_v28  ;;  %v693_v58 = vmul.f32 %v691_v41, %v691_v41 }
 0x201   : > { %v670_v42 = vmul.f32 %v668_v1, %v668_v1  ;;  %v678_v43 = vmul.f32 %v676_v33, %v676_v33  ;;  %v686_v56 = vmul.f32 %v684_v34, %v684_v34  ;;  %v694_v60 = vmul.f32 %v692_v44, %v692_v44 }
 0x202   : > { %v679_v53 = vadd.f32 %v677_v40, %v669_v39 }
 0x203   : > { %v680_v55 = vadd.f32 %v678_v43, %v670_v42 }
 0x204   : > { %v687_v57 = vadd.f32 %v685_v54, %v679_v53  ;;  %v757_v53 = vmul.f32 0.5, %v709_v5 }
 0x205   : > { %v688_v59 = vadd.f32 %v686_v56, %v680_v55  ;;  %v758_v55 = vmul.f32 0.5, %v710_v7 }
 0x206   : > { %v695_v61 = vadd.f32 %v693_v58, %v687_v57 }
 0x207   : > { %v696_v62 = vadd.f32 %v694_v60, %v688_v59 }
 0x208   : > { %v697_v0 = vrot.slane %v695_v61, 4 }
 0x209   : > { %v698_v2 = vrot.slane %v696_v62, 4 }
 0x20a   : > { %v699_v3 = vadd.f32 %v697_v0, %v695_v61 }
 0x20b   : > { %v700_v4 = vadd.f32 %v698_v2, %v696_v62 }
 0x20c   : > { %vm701_vm7 = vcmp.ge.f32.partialorder %v699_v3, 1.0 }
 0x20d   : > { %vm702_vm8 = vcmp.ge.f32.partialorder %v700_v4, 1.0  ;;  %vm703_vm9 = vmxor %vm701_vm7, %vm419_vm0 }
 0x20e   : > { %vm704_vm10 = vmxor %vm702_vm8, %vm420_vm3 }
 0x20f   : > { %vm705_vm11 = vmxor %vm703_vm9, %vm3231_vm6 }
 0x210   : > { %vm706_vm12 = vmxor %vm704_vm10, %vm3231_vm6  ;;  %v707_v6 = vsel %vm705_vm11, %v663_v25, %v659_v22 }
 0x211   : > { %v708_v8 = vsel %vm706_vm12, %v664_v26, %v660_v24  ;;  %v711_v9 = vadd.f32 %v709_v5, %v707_v6 }
 0x212   : > { %v712_v10 = vadd.f32 %v710_v7, %v708_v8 }
 0x213   : > { %v713_v11 = vsub.f32 %v3489_v45, %v711_v9  ;;  %v721_v12 = vsub.f32 %v3497_v49, %v711_v9  ;;  %v729_v13 = vsub.f32 %v3491_v46, %v711_v9  ;;  %v737_v14 = vsub.f32 %v3499_v50, %v711_v9 }
 0x214   : > { %v714_v15 = vsub.f32 %v3493_v47, %v712_v10  ;;  %v722_v16 = vsub.f32 %v3501_v51, %v712_v10  ;;  %v730_v18 = vsub.f32 %v3495_v48, %v712_v10  ;;  %v738_v19 = vsub.f32 %v3503_v52, %v712_v10 }
 0x215   : > { %v715_v21 = vmax.f32 %v713_v11, 0.0  ;;  %v723_v22 = vmax.f32 %v721_v12, 0.0  ;;  %v731_v23 = vmax.f32 %v729_v13, 0.0  ;;  %v739_v31 = vmax.f32 %v737_v14, 0.0 }
 0x216   : > { %v716_v24 = vmax.f32 %v714_v15, 0.0  ;;  %v724_v25 = vmax.f32 %v722_v16, 0.0  ;;  %v732_v26 = vmax.f32 %v730_v18, 0.0  ;;  %v740_v36 = vmax.f32 %v738_v19, 0.0 }
 0x217   : > { %v717_v29 = vmul.f32 %v715_v21, %v715_v21  ;;  %v725_v30 = vmul.f32 %v723_v22, %v723_v22  ;;  %v733_v27 = vmul.f32 %v731_v23, %v731_v23  ;;  %v741_v1 = vmul.f32 %v739_v31, %v739_v31 }
 0x218   : > { %v718_v32 = vmul.f32 %v716_v24, %v716_v24  ;;  %v726_v35 = vmul.f32 %v724_v25, %v724_v25  ;;  %v734_v63 = vmul.f32 %v732_v26, %v732_v26  ;;  %v742_v34 = vmul.f32 %v740_v36, %v740_v36 }
 0x219   : > { %v727_v37 = vadd.f32 %v725_v30, %v717_v29 }
 0x21a   : > { %v728_v38 = vadd.f32 %v726_v35, %v718_v32 }
 0x21b   : > { %v735_v28 = vadd.f32 %v733_v27, %v727_v37  ;;  %v805_v37 = vmul.f32 0.5, %v757_v53 }
 0x21c   : > { %v736_v33 = vadd.f32 %v734_v63, %v728_v38  ;;  %v806_v38 = vmul.f32 0.5, %v758_v55 }
 0x21d   : > { %v743_v39 = vadd.f32 %v741_v1, %v735_v28 }
 0x21e   : > { %v744_v40 = vadd.f32 %v742_v34, %v736_v33 }
 0x21f   : > { %v745_v41 = vrot.slane %v743_v39, 4 }
 0x220   : > { %v746_v42 = vrot.slane %v744_v40, 4 }
 0x221   : > { %v747_v43 = vadd.f32 %v745_v41, %v743_v39 }
 0x222   : > { %v748_v44 = vadd.f32 %v746_v42, %v744_v40 }
 0x223   : > { %vm749_vm13 = vcmp.ge.f32.partialorder %v747_v43, 1.0 }
 0x224   : > { %vm750_vm14 = vcmp.ge.f32.partialorder %v748_v44, 1.0  ;;  %vm751_vm15 = vmxor %vm749_vm13, %vm419_vm0 }
 0x225   : > { %vm752_vm1 = vmxor %vm750_vm14, %vm420_vm3 }
 0x226   : > { %vm753_vm2 = vmxor %vm751_vm15, %vm3231_vm6 }
 0x227   : > { %vm754_vm4 = vmxor %vm752_vm1, %vm3231_vm6  ;;  %v755_v54 = vsel %vm753_vm2, %v711_v9, %v707_v6 }
 0x228   : > { %v756_v56 = vsel %vm754_vm4, %v712_v10, %v708_v8  ;;  %v759_v57 = vadd.f32 %v757_v53, %v755_v54 }
 0x229   : > { %v760_v58 = vadd.f32 %v758_v55, %v756_v56 }
 0x22a   : > { %v761_v59 = vsub.f32 %v3489_v45, %v759_v57  ;;  %v769_v60 = vsub.f32 %v3497_v49, %v759_v57  ;;  %v777_v61 = vsub.f32 %v3491_v46, %v759_v57  ;;  %v785_v62 = vsub.f32 %v3499_v50, %v759_v57 }
 0x22b   : > { %v762_v0 = vsub.f32 %v3493_v47, %v760_v58  ;;  %v770_v2 = vsub.f32 %v3501_v51, %v760_v58  ;;  %v778_v3 = vsub.f32 %v3495_v48, %v760_v58  ;;  %v786_v4 = vsub.f32 %v3503_v52, %v760_v58 }
 0x22c   : > { %v763_v5 = vmax.f32 %v761_v59, 0.0  ;;  %v771_v6 = vmax.f32 %v769_v60, 0.0  ;;  %v779_v7 = vmax.f32 %v777_v61, 0.0  ;;  %v787_v13 = vmax.f32 %v785_v62, 0.0 }
 0x22d   : > { %v764_v8 = vmax.f32 %v762_v0, 0.0  ;;  %v772_v9 = vmax.f32 %v770_v2, 0.0  ;;  %v780_v10 = vmax.f32 %v778_v3, 0.0  ;;  %v788_v16 = vmax.f32 %v786_v4, 0.0 }
 0x22e   : > { %v765_v11 = vmul.f32 %v763_v5, %v763_v5  ;;  %v773_v12 = vmul.f32 %v771_v6, %v771_v6  ;;  %v781_v19 = vmul.f32 %v779_v7, %v779_v7  ;;  %v789_v24 = vmul.f32 %v787_v13, %v787_v13 }
 0x22f   : > { %v766_v14 = vmul.f32 %v764_v8, %v764_v8  ;;  %v774_v15 = vmul.f32 %v772_v9, %v772_v9  ;;  %v782_v22 = vmul.f32 %v780_v10, %v780_v10  ;;  %v790_v26 = vmul.f32 %v788_v16, %v788_v16 }
 0x230   : > { %v775_v18 = vadd.f32 %v773_v12, %v765_v11 }
 0x231   : > { %v776_v21 = vadd.f32 %v774_v15, %v766_v14 }
 0x232   : > { %v783_v23 = vadd.f32 %v781_v19, %v775_v18  ;;  %v853_v18 = vmul.f32 0.5, %v805_v37 }
 0x233   : > { %v784_v25 = vadd.f32 %v782_v22, %v776_v21  ;;  %v854_v21 = vmul.f32 0.5, %v806_v38 }
 0x234   : > { %v791_v29 = vadd.f32 %v789_v24, %v783_v23 }
 0x235   : > { %v792_v30 = vadd.f32 %v790_v26, %v784_v25 }
 0x236   : > { %v793_v31 = vrot.slane %v791_v29, 4 }
 0x237   : > { %v794_v32 = vrot.slane %v792_v30, 4 }
 0x238   : > { %v795_v35 = vadd.f32 %v793_v31, %v791_v29 }
 0x239   : > { %v796_v36 = vadd.f32 %v794_v32, %v792_v30 }
 0x23a   : > { %vm797_vm5 = vcmp.ge.f32.partialorder %v795_v35, 1.0 }
 0x23b   : > { %vm798_vm7 = vcmp.ge.f32.partialorder %v796_v36, 1.0  ;;  %vm799_vm8 = vmxor %vm797_vm5, %vm419_vm0 }
 0x23c   : > { %vm800_vm9 = vmxor %vm798_vm7, %vm420_vm3 }
 0x23d   : > { %vm801_vm10 = vmxor %vm799_vm8, %vm3231_vm6 }
 0x23e   : > { %vm802_vm11 = vmxor %vm800_vm9, %vm3231_vm6  ;;  %v803_v27 = vsel %vm801_vm10, %v759_v57, %v755_v54 }
 0x23f   : > { %v804_v63 = vsel %vm802_vm11, %v760_v58, %v756_v56  ;;  %v807_v28 = vadd.f32 %v805_v37, %v803_v27 }
 0x240   : > { %v808_v1 = vadd.f32 %v806_v38, %v804_v63 }
 0x241   : > { %v809_v33 = vsub.f32 %v3489_v45, %v807_v28  ;;  %v817_v34 = vsub.f32 %v3497_v49, %v807_v28  ;;  %v825_v39 = vsub.f32 %v3491_v46, %v807_v28  ;;  %v833_v40 = vsub.f32 %v3499_v50, %v807_v28 }
 0x242   : > { %v810_v41 = vsub.f32 %v3493_v47, %v808_v1  ;;  %v818_v42 = vsub.f32 %v3501_v51, %v808_v1  ;;  %v826_v43 = vsub.f32 %v3495_v48, %v808_v1  ;;  %v834_v44 = vsub.f32 %v3503_v52, %v808_v1 }
 0x243   : > { %v811_v53 = vmax.f32 %v809_v33, 0.0  ;;  %v819_v54 = vmax.f32 %v817_v34, 0.0  ;;  %v827_v55 = vmax.f32 %v825_v39, 0.0  ;;  %v835_v61 = vmax.f32 %v833_v40, 0.0 }
 0x244   : > { %v812_v56 = vmax.f32 %v810_v41, 0.0  ;;  %v820_v57 = vmax.f32 %v818_v42, 0.0  ;;  %v828_v58 = vmax.f32 %v826_v43, 0.0  ;;  %v836_v2 = vmax.f32 %v834_v44, 0.0 }
 0x245   : > { %v813_v59 = vmul.f32 %v811_v53, %v811_v53  ;;  %v821_v60 = vmul.f32 %v819_v54, %v819_v54  ;;  %v829_v4 = vmul.f32 %v827_v55, %v827_v55  ;;  %v837_v8 = vmul.f32 %v835_v61, %v835_v61 }
 0x246   : > { %v814_v62 = vmul.f32 %v812_v56, %v812_v56  ;;  %v822_v0 = vmul.f32 %v820_v57, %v820_v57  ;;  %v830_v6 = vmul.f32 %v828_v58, %v828_v58  ;;  %v838_v10 = vmul.f32 %v836_v2, %v836_v2 }
 0x247   : > { %v823_v3 = vadd.f32 %v821_v60, %v813_v59 }
 0x248   : > { %v824_v5 = vadd.f32 %v822_v0, %v814_v62 }
 0x249   : > { %v831_v7 = vadd.f32 %v829_v4, %v823_v3  ;;  %v901_v3 = vmul.f32 0.5, %v853_v18 }
 0x24a   : > { %v832_v9 = vadd.f32 %v830_v6, %v824_v5  ;;  %v902_v5 = vmul.f32 0.5, %v854_v21 }
 0x24b   : > { %v839_v11 = vadd.f32 %v837_v8, %v831_v7 }
 0x24c   : > { %v840_v12 = vadd.f32 %v838_v10, %v832_v9 }
 0x24d   : > { %v841_v13 = vrot.slane %v839_v11, 4 }
 0x24e   : > { %v842_v14 = vrot.slane %v840_v12, 4 }
 0x24f   : > { %v843_v15 = vadd.f32 %v841_v13, %v839_v11 }
 0x250   : > { %v844_v16 = vadd.f32 %v842_v14, %v840_v12 }
 0x251   : > { %vm845_vm12 = vcmp.ge.f32.partialorder %v843_v15, 1.0 }
 0x252   : > { %vm846_vm13 = vcmp.ge.f32.partialorder %v844_v16, 1.0  ;;  %vm847_vm14 = vmxor %vm845_vm12, %vm419_vm0 }
 0x253   : > { %vm848_vm15 = vmxor %vm846_vm13, %vm420_vm3 }
 0x254   : > { %vm849_vm1 = vmxor %vm847_vm14, %vm3231_vm6 }
 0x255   : > { %vm850_vm2 = vmxor %vm848_vm15, %vm3231_vm6  ;;  %v851_v19 = vsel %vm849_vm1, %v807_v28, %v803_v27 }
 0x256   : > { %v852_v22 = vsel %vm850_vm2, %v808_v1, %v804_v63  ;;  %v855_v23 = vadd.f32 %v853_v18, %v851_v19 }
 0x257   : > { %v856_v24 = vadd.f32 %v854_v21, %v852_v22 }
 0x258   : > { %v857_v25 = vsub.f32 %v3489_v45, %v855_v23  ;;  %v865_v26 = vsub.f32 %v3497_v49, %v855_v23  ;;  %v873_v29 = vsub.f32 %v3491_v46, %v855_v23  ;;  %v881_v30 = vsub.f32 %v3499_v50, %v855_v23 }
 0x259   : > { %v858_v31 = vsub.f32 %v3493_v47, %v856_v24  ;;  %v866_v32 = vsub.f32 %v3501_v51, %v856_v24  ;;  %v874_v35 = vsub.f32 %v3495_v48, %v856_v24  ;;  %v882_v36 = vsub.f32 %v3503_v52, %v856_v24 }
 0x25a   : > { %v859_v37 = vmax.f32 %v857_v25, 0.0  ;;  %v867_v27 = vmax.f32 %v865_v26, 0.0  ;;  %v875_v38 = vmax.f32 %v873_v29, 0.0  ;;  %v883_v39 = vmax.f32 %v881_v30, 0.0 }
 0x25b   : > { %v860_v63 = vmax.f32 %v858_v31, 0.0  ;;  %v868_v28 = vmax.f32 %v866_v32, 0.0  ;;  %v876_v1 = vmax.f32 %v874_v35, 0.0  ;;  %v884_v42 = vmax.f32 %v882_v36, 0.0 }
 0x25c   : > { %v861_v33 = vmul.f32 %v859_v37, %v859_v37  ;;  %v869_v34 = vmul.f32 %v867_v27, %v867_v27  ;;  %v877_v44 = vmul.f32 %v875_v38, %v875_v38  ;;  %v885_v56 = vmul.f32 %v883_v39, %v883_v39 }
 0x25d   : > { %v862_v40 = vmul.f32 %v860_v63, %v860_v63  ;;  %v870_v41 = vmul.f32 %v868_v28, %v868_v28  ;;  %v878_v54 = vmul.f32 %v876_v1, %v876_v1  ;;  %v886_v58 = vmul.f32 %v884_v42, %v884_v42 }
 0x25e   : > { %v871_v43 = vadd.f32 %v869_v34, %v861_v33 }
 0x25f   : > { %v872_v53 = vadd.f32 %v870_v41, %v862_v40 }
 0x260   : > { %v879_v55 = vadd.f32 %v877_v44, %v871_v43  ;;  %v949_v43 = vmul.f32 0.5, %v901_v3 }
 0x261   : > { %v880_v57 = vadd.f32 %v878_v54, %v872_v53  ;;  %v950_v53 = vmul.f32 0.5, %v902_v5 }
 0x262   : > { %v887_v59 = vadd.f32 %v885_v56, %v879_v55 }
 0x263   : > { %v888_v60 = vadd.f32 %v886_v58, %v880_v57 }
 0x264   : > { %v889_v61 = vrot.slane %v887_v59, 4 }
 0x265   : > { %v890_v62 = vrot.slane %v888_v60, 4 }
 0x266   : > { %v891_v0 = vadd.f32 %v889_v61, %v887_v59 }
 0x267   : > { %v892_v2 = vadd.f32 %v890_v62, %v888_v60 }
 0x268   : > { %vm893_vm4 = vcmp.ge.f32.partialorder %v891_v0, 1.0 }
 0x269   : > { %vm894_vm5 = vcmp.ge.f32.partialorder %v892_v2, 1.0  ;;  %vm895_vm7 = vmxor %vm893_vm4, %vm419_vm0 }
 0x26a   : > { %vm896_vm8 = vmxor %vm894_vm5, %vm420_vm3 }
 0x26b   : > { %vm897_vm9 = vmxor %vm895_vm7, %vm3231_vm6 }
 0x26c   : > { %vm898_vm10 = vmxor %vm896_vm8, %vm3231_vm6  ;;  %v899_v4 = vsel %vm897_vm9, %v855_v23, %v851_v19 }
 0x26d   : > { %v900_v6 = vsel %vm898_vm10, %v856_v24, %v852_v22  ;;  %v903_v7 = vadd.f32 %v901_v3, %v899_v4 }
 0x26e   : > { %v904_v8 = vadd.f32 %v902_v5, %v900_v6 }
 0x26f   : > { %v905_v9 = vsub.f32 %v3489_v45, %v903_v7  ;;  %v913_v10 = vsub.f32 %v3497_v49, %v903_v7  ;;  %v921_v11 = vsub.f32 %v3491_v46, %v903_v7  ;;  %v929_v12 = vsub.f32 %v3499_v50, %v903_v7 }
 0x270   : > { %v906_v13 = vsub.f32 %v3493_v47, %v904_v8  ;;  %v914_v14 = vsub.f32 %v3501_v51, %v904_v8  ;;  %v922_v15 = vsub.f32 %v3495_v48, %v904_v8  ;;  %v930_v16 = vsub.f32 %v3503_v52, %v904_v8 }
 0x271   : > { %v907_v18 = vmax.f32 %v905_v9, 0.0  ;;  %v915_v19 = vmax.f32 %v913_v10, 0.0  ;;  %v923_v21 = vmax.f32 %v921_v11, 0.0  ;;  %v931_v29 = vmax.f32 %v929_v12, 0.0 }
 0x272   : > { %v908_v22 = vmax.f32 %v906_v13, 0.0  ;;  %v916_v23 = vmax.f32 %v914_v14, 0.0  ;;  %v924_v24 = vmax.f32 %v922_v15, 0.0  ;;  %v932_v32 = vmax.f32 %v930_v16, 0.0 }
 0x273   : > { %v909_v25 = vmul.f32 %v907_v18, %v907_v18  ;;  %v917_v26 = vmul.f32 %v915_v19, %v915_v19  ;;  %v925_v36 = vmul.f32 %v923_v21, %v923_v21  ;;  %v933_v63 = vmul.f32 %v931_v29, %v931_v29 }
 0x274   : > { %v910_v30 = vmul.f32 %v908_v22, %v908_v22  ;;  %v918_v31 = vmul.f32 %v916_v23, %v916_v23  ;;  %v926_v27 = vmul.f32 %v924_v24, %v924_v24  ;;  %v934_v1 = vmul.f32 %v932_v32, %v932_v32 }
 0x275   : > { %v919_v35 = vadd.f32 %v917_v26, %v909_v25 }
 0x276   : > { %v920_v37 = vadd.f32 %v918_v31, %v910_v30 }
 0x277   : > { %v927_v38 = vadd.f32 %v925_v36, %v919_v35  ;;  %v997_v35 = vmul.f32 0.5, %v949_v43 }
 0x278   : > { %v928_v28 = vadd.f32 %v926_v27, %v920_v37  ;;  %v998_v37 = vmul.f32 0.5, %v950_v53 }
 0x279   : > { %v935_v33 = vadd.f32 %v933_v63, %v927_v38 }
 0x27a   : > { %v936_v34 = vadd.f32 %v934_v1, %v928_v28 }
 0x27b   : > { %v937_v39 = vrot.slane %v935_v33, 4 }
 0x27c   : > { %v938_v40 = vrot.slane %v936_v34, 4 }
 0x27d   : > { %v939_v41 = vadd.f32 %v937_v39, %v935_v33 }
 0x27e   : > { %v940_v42 = vadd.f32 %v938_v40, %v936_v34 }
 0x27f   : > { %vm941_vm11 = vcmp.ge.f32.partialorder %v939_v41, 1.0 }
 0x280   : > { %vm942_vm12 = vcmp.ge.f32.partialorder %v940_v42, 1.0  ;;  %vm943_vm13 = vmxor %vm941_vm11, %vm419_vm0 }
 0x281   : > { %vm944_vm14 = vmxor %vm942_vm12, %vm420_vm3 }
 0x282   : > { %vm945_vm15 = vmxor %vm943_vm13, %vm3231_vm6 }
 0x283   : > { %vm946_vm1 = vmxor %vm944_vm14, %vm3231_vm6  ;;  %v947_v44 = vsel %vm945_vm15, %v903_v7, %v899_v4 }
 0x284   : > { %v948_v54 = vsel %vm946_vm1, %v904_v8, %v900_v6  ;;  %v951_v55 = vadd.f32 %v949_v43, %v947_v44 }
 0x285   : > { %v952_v56 = vadd.f32 %v950_v53, %v948_v54 }
 0x286   : > { %v953_v57 = vsub.f32 %v3489_v45, %v951_v55  ;;  %v961_v58 = vsub.f32 %v3497_v49, %v951_v55  ;;  %v969_v59 = vsub.f32 %v3491_v46, %v951_v55  ;;  %v977_v60 = vsub.f32 %v3499_v50, %v951_v55 }
 0x287   : > { %v954_v61 = vsub.f32 %v3493_v47, %v952_v56  ;;  %v962_v62 = vsub.f32 %v3501_v51, %v952_v56  ;;  %v970_v0 = vsub.f32 %v3495_v48, %v952_v56  ;;  %v978_v2 = vsub.f32 %v3503_v52, %v952_v56 }
 0x288   : > { %v955_v3 = vmax.f32 %v953_v57, 0.0  ;;  %v963_v4 = vmax.f32 %v961_v58, 0.0  ;;  %v971_v5 = vmax.f32 %v969_v59, 0.0  ;;  %v979_v11 = vmax.f32 %v977_v60, 0.0 }
 0x289   : > { %v956_v6 = vmax.f32 %v954_v61, 0.0  ;;  %v964_v7 = vmax.f32 %v962_v62, 0.0  ;;  %v972_v8 = vmax.f32 %v970_v0, 0.0  ;;  %v980_v14 = vmax.f32 %v978_v2, 0.0 }
 0x28a   : > { %v957_v9 = vmul.f32 %v955_v3, %v955_v3  ;;  %v965_v10 = vmul.f32 %v963_v4, %v963_v4  ;;  %v973_v16 = vmul.f32 %v971_v5, %v971_v5  ;;  %v981_v22 = vmul.f32 %v979_v11, %v979_v11 }
 0x28b   : > { %v958_v12 = vmul.f32 %v956_v6, %v956_v6  ;;  %v966_v13 = vmul.f32 %v964_v7, %v964_v7  ;;  %v974_v19 = vmul.f32 %v972_v8, %v972_v8  ;;  %v982_v24 = vmul.f32 %v980_v14, %v980_v14 }
 0x28c   : > { %v967_v15 = vadd.f32 %v965_v10, %v957_v9 }
 0x28d   : > { %v968_v18 = vadd.f32 %v966_v13, %v958_v12 }
 0x28e   : > { %v975_v21 = vadd.f32 %v973_v16, %v967_v15  ;;  %v1045_v15 = vmul.f32 0.5, %v997_v35 }
 0x28f   : > { %v976_v23 = vadd.f32 %v974_v19, %v968_v18  ;;  %v1046_v18 = vmul.f32 0.5, %v998_v37 }
 0x290   : > { %v983_v25 = vadd.f32 %v981_v22, %v975_v21 }
 0x291   : > { %v984_v26 = vadd.f32 %v982_v24, %v976_v23 }
 0x292   : > { %v985_v29 = vrot.slane %v983_v25, 4 }
 0x293   : > { %v986_v30 = vrot.slane %v984_v26, 4 }
 0x294   : > { %v987_v31 = vadd.f32 %v985_v29, %v983_v25 }
 0x295   : > { %v988_v32 = vadd.f32 %v986_v30, %v984_v26 }
 0x296   : > { %vm989_vm2 = vcmp.ge.f32.partialorder %v987_v31, 1.0 }
 0x297   : > { %vm990_vm4 = vcmp.ge.f32.partialorder %v988_v32, 1.0  ;;  %vm991_vm5 = vmxor %vm989_vm2, %vm419_vm0 }
 0x298   : > { %vm992_vm7 = vmxor %vm990_vm4, %vm420_vm3 }
 0x299   : > { %vm993_vm8 = vmxor %vm991_vm5, %vm3231_vm6 }
 0x29a   : > { %vm994_vm9 = vmxor %vm992_vm7, %vm3231_vm6  ;;  %v995_v36 = vsel %vm993_vm8, %v951_v55, %v947_v44 }
 0x29b   : > { %v996_v27 = vsel %vm994_vm9, %v952_v56, %v948_v54  ;;  %v999_v38 = vadd.f32 %v997_v35, %v995_v36 }
 0x29c   : > { %v1000_v63 = vadd.f32 %v998_v37, %v996_v27 }
 0x29d   : > { %v1001_v28 = vsub.f32 %v3489_v45, %v999_v38  ;;  %v1009_v1 = vsub.f32 %v3497_v49, %v999_v38  ;;  %v1017_v33 = vsub.f32 %v3491_v46, %v999_v38  ;;  %v1025_v34 = vsub.f32 %v3499_v50, %v999_v38 }
 0x29e   : > { %v1002_v39 = vsub.f32 %v3493_v47, %v1000_v63  ;;  %v1010_v40 = vsub.f32 %v3501_v51, %v1000_v63  ;;  %v1018_v41 = vsub.f32 %v3495_v48, %v1000_v63  ;;  %v1026_v42 = vsub.f32 %v3503_v52, %v1000_v63 }
 0x29f   : > { %v1003_v43 = vmax.f32 %v1001_v28, 0.0  ;;  %v1011_v44 = vmax.f32 %v1009_v1, 0.0  ;;  %v1019_v53 = vmax.f32 %v1017_v33, 0.0  ;;  %v1027_v59 = vmax.f32 %v1025_v34, 0.0 }
 0x2a0   : > { %v1004_v54 = vmax.f32 %v1002_v39, 0.0  ;;  %v1012_v55 = vmax.f32 %v1010_v40, 0.0  ;;  %v1020_v56 = vmax.f32 %v1018_v41, 0.0  ;;  %v1028_v62 = vmax.f32 %v1026_v42, 0.0 }
 0x2a1   : > { %v1005_v57 = vmul.f32 %v1003_v43, %v1003_v43  ;;  %v1013_v58 = vmul.f32 %v1011_v44, %v1011_v44  ;;  %v1021_v2 = vmul.f32 %v1019_v53, %v1019_v53  ;;  %v1029_v6 = vmul.f32 %v1027_v59, %v1027_v59 }
 0x2a2   : > { %v1006_v60 = vmul.f32 %v1004_v54, %v1004_v54  ;;  %v1014_v61 = vmul.f32 %v1012_v55, %v1012_v55  ;;  %v1022_v4 = vmul.f32 %v1020_v56, %v1020_v56  ;;  %v1030_v8 = vmul.f32 %v1028_v62, %v1028_v62 }
 0x2a3   : > { %v1015_v0 = vadd.f32 %v1013_v58, %v1005_v57 }
 0x2a4   : > { %v1016_v3 = vadd.f32 %v1014_v61, %v1006_v60 }
 0x2a5   : > { %v1023_v5 = vadd.f32 %v1021_v2, %v1015_v0  ;;  %v1093_v0 = vmul.f32 0.5, %v1045_v15 }
 0x2a6   : > { %v1024_v7 = vadd.f32 %v1022_v4, %v1016_v3  ;;  %v1094_v3 = vmul.f32 0.5, %v1046_v18 }
 0x2a7   : > { %v1031_v9 = vadd.f32 %v1029_v6, %v1023_v5 }
 0x2a8   : > { %v1032_v10 = vadd.f32 %v1030_v8, %v1024_v7 }
 0x2a9   : > { %v1033_v11 = vrot.slane %v1031_v9, 4 }
 0x2aa   : > { %v1034_v12 = vrot.slane %v1032_v10, 4 }
 0x2ab   : > { %v1035_v13 = vadd.f32 %v1033_v11, %v1031_v9 }
 0x2ac   : > { %v1036_v14 = vadd.f32 %v1034_v12, %v1032_v10 }
 0x2ad   : > { %vm1037_vm10 = vcmp.ge.f32.partialorder %v1035_v13, 1.0 }
 0x2ae   : > { %vm1038_vm11 = vcmp.ge.f32.partialorder %v1036_v14, 1.0  ;;  %vm1039_vm12 = vmxor %vm1037_vm10, %vm419_vm0 }
 0x2af   : > { %vm1040_vm13 = vmxor %vm1038_vm11, %vm420_vm3 }
 0x2b0   : > { %vm1041_vm14 = vmxor %vm1039_vm12, %vm3231_vm6 }
 0x2b1   : > { %vm1042_vm15 = vmxor %vm1040_vm13, %vm3231_vm6  ;;  %v1043_v16 = vsel %vm1041_vm14, %v999_v38, %v995_v36 }
 0x2b2   : > { %v1044_v19 = vsel %vm1042_vm15, %v1000_v63, %v996_v27  ;;  %v1047_v21 = vadd.f32 %v1045_v15, %v1043_v16 }
 0x2b3   : > { %v1048_v22 = vadd.f32 %v1046_v18, %v1044_v19 }
 0x2b4   : > { %v1049_v23 = vsub.f32 %v3489_v45, %v1047_v21  ;;  %v1057_v24 = vsub.f32 %v3497_v49, %v1047_v21  ;;  %v1065_v25 = vsub.f32 %v3491_v46, %v1047_v21  ;;  %v1073_v26 = vsub.f32 %v3499_v50, %v1047_v21 }
 0x2b5   : > { %v1050_v29 = vsub.f32 %v3493_v47, %v1048_v22  ;;  %v1058_v30 = vsub.f32 %v3501_v51, %v1048_v22  ;;  %v1066_v31 = vsub.f32 %v3495_v48, %v1048_v22  ;;  %v1074_v32 = vsub.f32 %v3503_v52, %v1048_v22 }
 0x2b6   : > { %v1051_v35 = vmax.f32 %v1049_v23, 0.0  ;;  %v1059_v36 = vmax.f32 %v1057_v24, 0.0  ;;  %v1067_v37 = vmax.f32 %v1065_v25, 0.0  ;;  %v1075_v33 = vmax.f32 %v1073_v26, 0.0 }
 0x2b7   : > { %v1052_v27 = vmax.f32 %v1050_v29, 0.0  ;;  %v1060_v38 = vmax.f32 %v1058_v30, 0.0  ;;  %v1068_v63 = vmax.f32 %v1066_v31, 0.0  ;;  %v1076_v40 = vmax.f32 %v1074_v32, 0.0 }
 0x2b8   : > { %v1053_v28 = vmul.f32 %v1051_v35, %v1051_v35  ;;  %v1061_v1 = vmul.f32 %v1059_v36, %v1059_v36  ;;  %v1069_v42 = vmul.f32 %v1067_v37, %v1067_v37  ;;  %v1077_v54 = vmul.f32 %v1075_v33, %v1075_v33 }
 0x2b9   : > { %v1054_v34 = vmul.f32 %v1052_v27, %v1052_v27  ;;  %v1062_v39 = vmul.f32 %v1060_v38, %v1060_v38  ;;  %v1070_v44 = vmul.f32 %v1068_v63, %v1068_v63  ;;  %v1078_v56 = vmul.f32 %v1076_v40, %v1076_v40 }
 0x2ba   : > { %v1063_v41 = vadd.f32 %v1061_v1, %v1053_v28 }
 0x2bb   : > { %v1064_v43 = vadd.f32 %v1062_v39, %v1054_v34 }
 0x2bc   : > { %v1071_v53 = vadd.f32 %v1069_v42, %v1063_v41  ;;  %v1141_v41 = vmul.f32 0.5, %v1093_v0 }
 0x2bd   : > { %v1072_v55 = vadd.f32 %v1070_v44, %v1064_v43  ;;  %v1142_v43 = vmul.f32 0.5, %v1094_v3 }
 0x2be   : > { %v1079_v57 = vadd.f32 %v1077_v54, %v1071_v53 }
 0x2bf   : > { %v1080_v58 = vadd.f32 %v1078_v56, %v1072_v55 }
 0x2c0   : > { %v1081_v59 = vrot.slane %v1079_v57, 4 }
 0x2c1   : > { %v1082_v60 = vrot.slane %v1080_v58, 4 }
 0x2c2   : > { %v1083_v61 = vadd.f32 %v1081_v59, %v1079_v57 }
 0x2c3   : > { %v1084_v62 = vadd.f32 %v1082_v60, %v1080_v58 }
 0x2c4   : > { %vm1085_vm1 = vcmp.ge.f32.partialorder %v1083_v61, 1.0 }
 0x2c5   : > { %vm1086_vm2 = vcmp.ge.f32.partialorder %v1084_v62, 1.0  ;;  %vm1087_vm4 = vmxor %vm1085_vm1, %vm419_vm0 }
 0x2c6   : > { %vm1088_vm5 = vmxor %vm1086_vm2, %vm420_vm3 }
 0x2c7   : > { %vm1089_vm7 = vmxor %vm1087_vm4, %vm3231_vm6 }
 0x2c8   : > { %vm1090_vm8 = vmxor %vm1088_vm5, %vm3231_vm6  ;;  %v1091_v2 = vsel %vm1089_vm7, %v1047_v21, %v1043_v16 }
 0x2c9   : > { %v1092_v4 = vsel %vm1090_vm8, %v1048_v22, %v1044_v19  ;;  %v1095_v5 = vadd.f32 %v1093_v0, %v1091_v2 }
 0x2ca   : > { %v1096_v6 = vadd.f32 %v1094_v3, %v1092_v4 }
 0x2cb   : > { %v1097_v7 = vsub.f32 %v3489_v45, %v1095_v5  ;;  %v1105_v8 = vsub.f32 %v3497_v49, %v1095_v5  ;;  %v1113_v9 = vsub.f32 %v3491_v46, %v1095_v5  ;;  %v1121_v10 = vsub.f32 %v3499_v50, %v1095_v5 }
 0x2cc   : > { %v1098_v11 = vsub.f32 %v3493_v47, %v1096_v6  ;;  %v1106_v12 = vsub.f32 %v3501_v51, %v1096_v6  ;;  %v1114_v13 = vsub.f32 %v3495_v48, %v1096_v6  ;;  %v1122_v14 = vsub.f32 %v3503_v52, %v1096_v6 }
 0x2cd   : > { %v1099_v15 = vmax.f32 %v1097_v7, 0.0  ;;  %v1107_v16 = vmax.f32 %v1105_v8, 0.0  ;;  %v1115_v18 = vmax.f32 %v1113_v9, 0.0  ;;  %v1123_v25 = vmax.f32 %v1121_v10, 0.0 }
 0x2ce   : > { %v1100_v19 = vmax.f32 %v1098_v11, 0.0  ;;  %v1108_v21 = vmax.f32 %v1106_v12, 0.0  ;;  %v1116_v22 = vmax.f32 %v1114_v13, 0.0  ;;  %v1124_v30 = vmax.f32 %v1122_v14, 0.0 }
 0x2cf   : > { %v1101_v23 = vmul.f32 %v1099_v15, %v1099_v15  ;;  %v1109_v24 = vmul.f32 %v1107_v16, %v1107_v16  ;;  %v1117_v32 = vmul.f32 %v1115_v18, %v1115_v18  ;;  %v1125_v27 = vmul.f32 %v1123_v25, %v1123_v25 }
 0x2d0   : > { %v1102_v26 = vmul.f32 %v1100_v19, %v1100_v19  ;;  %v1110_v29 = vmul.f32 %v1108_v21, %v1108_v21  ;;  %v1118_v36 = vmul.f32 %v1116_v22, %v1116_v22  ;;  %v1126_v63 = vmul.f32 %v1124_v30, %v1124_v30 }
 0x2d1   : > { %v1111_v31 = vadd.f32 %v1109_v24, %v1101_v23 }
 0x2d2   : > { %v1112_v35 = vadd.f32 %v1110_v29, %v1102_v26 }
 0x2d3   : > { %v1119_v37 = vadd.f32 %v1117_v32, %v1111_v31  ;;  %v1189_v31 = vmul.f32 0.5, %v1141_v41 }
 0x2d4   : > { %v1120_v38 = vadd.f32 %v1118_v36, %v1112_v35  ;;  %v1190_v35 = vmul.f32 0.5, %v1142_v43 }
 0x2d5   : > { %v1127_v28 = vadd.f32 %v1125_v27, %v1119_v37 }
 0x2d6   : > { %v1128_v1 = vadd.f32 %v1126_v63, %v1120_v38 }
 0x2d7   : > { %v1129_v33 = vrot.slane %v1127_v28, 4 }
 0x2d8   : > { %v1130_v34 = vrot.slane %v1128_v1, 4 }
 0x2d9   : > { %v1131_v39 = vadd.f32 %v1129_v33, %v1127_v28 }
 0x2da   : > { %v1132_v40 = vadd.f32 %v1130_v34, %v1128_v1 }
 0x2db   : > { %vm1133_vm9 = vcmp.ge.f32.partialorder %v1131_v39, 1.0 }
 0x2dc   : > { %vm1134_vm10 = vcmp.ge.f32.partialorder %v1132_v40, 1.0  ;;  %vm1135_vm11 = vmxor %vm1133_vm9, %vm419_vm0 }
 0x2dd   : > { %vm1136_vm12 = vmxor %vm1134_vm10, %vm420_vm3 }
 0x2de   : > { %vm1137_vm13 = vmxor %vm1135_vm11, %vm3231_vm6 }
 0x2df   : > { %vm1138_vm14 = vmxor %vm1136_vm12, %vm3231_vm6  ;;  %v1139_v42 = vsel %vm1137_vm13, %v1095_v5, %v1091_v2 }
 0x2e0   : > { %v1140_v44 = vsel %vm1138_vm14, %v1096_v6, %v1092_v4  ;;  %v1143_v53 = vadd.f32 %v1141_v41, %v1139_v42 }
 0x2e1   : > { %v1144_v54 = vadd.f32 %v1142_v43, %v1140_v44 }
 0x2e2   : > { %v1145_v55 = vsub.f32 %v3489_v45, %v1143_v53  ;;  %v1153_v56 = vsub.f32 %v3497_v49, %v1143_v53  ;;  %v1161_v57 = vsub.f32 %v3491_v46, %v1143_v53  ;;  %v1169_v58 = vsub.f32 %v3499_v50, %v1143_v53 }
 0x2e3   : > { %v1146_v59 = vsub.f32 %v3493_v47, %v1144_v54  ;;  %v1154_v60 = vsub.f32 %v3501_v51, %v1144_v54  ;;  %v1162_v61 = vsub.f32 %v3495_v48, %v1144_v54  ;;  %v1170_v62 = vsub.f32 %v3503_v52, %v1144_v54 }
 0x2e4   : > { %v1147_v0 = vmax.f32 %v1145_v55, 0.0  ;;  %v1155_v2 = vmax.f32 %v1153_v56, 0.0  ;;  %v1163_v3 = vmax.f32 %v1161_v57, 0.0  ;;  %v1171_v9 = vmax.f32 %v1169_v58, 0.0 }
 0x2e5   : > { %v1148_v4 = vmax.f32 %v1146_v59, 0.0  ;;  %v1156_v5 = vmax.f32 %v1154_v60, 0.0  ;;  %v1164_v6 = vmax.f32 %v1162_v61, 0.0  ;;  %v1172_v12 = vmax.f32 %v1170_v62, 0.0 }
 0x2e6   : > { %v1149_v7 = vmul.f32 %v1147_v0, %v1147_v0  ;;  %v1157_v8 = vmul.f32 %v1155_v2, %v1155_v2  ;;  %v1165_v14 = vmul.f32 %v1163_v3, %v1163_v3  ;;  %v1173_v19 = vmul.f32 %v1171_v9, %v1171_v9 }
 0x2e7   : > { %v1150_v10 = vmul.f32 %v1148_v4, %v1148_v4  ;;  %v1158_v11 = vmul.f32 %v1156_v5, %v1156_v5  ;;  %v1166_v16 = vmul.f32 %v1164_v6, %v1164_v6  ;;  %v1174_v22 = vmul.f32 %v1172_v12, %v1172_v12 }
 0x2e8   : > { %v1159_v13 = vadd.f32 %v1157_v8, %v1149_v7 }
 0x2e9   : > { %v1160_v15 = vadd.f32 %v1158_v11, %v1150_v10 }
 0x2ea   : > { %v1167_v18 = vadd.f32 %v1165_v14, %v1159_v13  ;;  %v1237_v13 = vmul.f32 0.5, %v1189_v31 }
 0x2eb   : > { %v1168_v21 = vadd.f32 %v1166_v16, %v1160_v15  ;;  %v1238_v15 = vmul.f32 0.5, %v1190_v35 }
 0x2ec   : > { %v1175_v23 = vadd.f32 %v1173_v19, %v1167_v18 }
 0x2ed   : > { %v1176_v24 = vadd.f32 %v1174_v22, %v1168_v21 }
 0x2ee   : > { %v1177_v25 = vrot.slane %v1175_v23, 4 }
 0x2ef   : > { %v1178_v26 = vrot.slane %v1176_v24, 4 }
 0x2f0   : > { %v1179_v29 = vadd.f32 %v1177_v25, %v1175_v23 }
 0x2f1   : > { %v1180_v30 = vadd.f32 %v1178_v26, %v1176_v24 }
 0x2f2   : > { %vm1181_vm15 = vcmp.ge.f32.partialorder %v1179_v29, 1.0 }
 0x2f3   : > { %vm1182_vm1 = vcmp.ge.f32.partialorder %v1180_v30, 1.0  ;;  %vm1183_vm2 = vmxor %vm1181_vm15, %vm419_vm0 }
 0x2f4   : > { %vm1184_vm4 = vmxor %vm1182_vm1, %vm420_vm3 }
 0x2f5   : > { %vm1185_vm5 = vmxor %vm1183_vm2, %vm3231_vm6 }
 0x2f6   : > { %vm1186_vm7 = vmxor %vm1184_vm4, %vm3231_vm6  ;;  %v1187_v32 = vsel %vm1185_vm5, %v1143_v53, %v1139_v42 }
 0x2f7   : > { %v1188_v36 = vsel %vm1186_vm7, %v1144_v54, %v1140_v44  ;;  %v1191_v37 = vadd.f32 %v1189_v31, %v1187_v32 }
 0x2f8   : > { %v1192_v27 = vadd.f32 %v1190_v35, %v1188_v36 }
 0x2f9   : > { %v1193_v38 = vsub.f32 %v3489_v45, %v1191_v37  ;;  %v1201_v63 = vsub.f32 %v3497_v49, %v1191_v37  ;;  %v1209_v28 = vsub.f32 %v3491_v46, %v1191_v37  ;;  %v1217_v1 = vsub.f32 %v3499_v50, %v1191_v37 }
 0x2fa   : > { %v1194_v33 = vsub.f32 %v3493_v47, %v1192_v27  ;;  %v1202_v34 = vsub.f32 %v3501_v51, %v1192_v27  ;;  %v1210_v39 = vsub.f32 %v3495_v48, %v1192_v27  ;;  %v1218_v40 = vsub.f32 %v3503_v52, %v1192_v27 }
 0x2fb   : > { %v1195_v41 = vmax.f32 %v1193_v38, 0.0  ;;  %v1203_v42 = vmax.f32 %v1201_v63, 0.0  ;;  %v1211_v43 = vmax.f32 %v1209_v28, 0.0  ;;  %v1219_v57 = vmax.f32 %v1217_v1, 0.0 }
 0x2fc   : > { %v1196_v44 = vmax.f32 %v1194_v33, 0.0  ;;  %v1204_v53 = vmax.f32 %v1202_v34, 0.0  ;;  %v1212_v54 = vmax.f32 %v1210_v39, 0.0  ;;  %v1220_v60 = vmax.f32 %v1218_v40, 0.0 }
 0x2fd   : > { %v1197_v55 = vmul.f32 %v1195_v41, %v1195_v41  ;;  %v1205_v56 = vmul.f32 %v1203_v42, %v1203_v42  ;;  %v1213_v62 = vmul.f32 %v1211_v43, %v1211_v43  ;;  %v1221_v4 = vmul.f32 %v1219_v57, %v1219_v57 }
 0x2fe   : > { %v1198_v58 = vmul.f32 %v1196_v44, %v1196_v44  ;;  %v1206_v59 = vmul.f32 %v1204_v53, %v1204_v53  ;;  %v1214_v2 = vmul.f32 %v1212_v54, %v1212_v54  ;;  %v1222_v6 = vmul.f32 %v1220_v60, %v1220_v60 }
 0x2ff   : > { %v1207_v61 = vadd.f32 %v1205_v56, %v1197_v55 }
 0x300   : > { %v1208_v0 = vadd.f32 %v1206_v59, %v1198_v58 }
 0x301   : > { %v1215_v3 = vadd.f32 %v1213_v62, %v1207_v61  ;;  %v1285_v61 = vmul.f32 0.5, %v1237_v13 }
 0x302   : > { %v1216_v5 = vadd.f32 %v1214_v2, %v1208_v0  ;;  %v1286_v0 = vmul.f32 0.5, %v1238_v15 }
 0x303   : > { %v1223_v7 = vadd.f32 %v1221_v4, %v1215_v3 }
 0x304   : > { %v1224_v8 = vadd.f32 %v1222_v6, %v1216_v5 }
 0x305   : > { %v1225_v9 = vrot.slane %v1223_v7, 4 }
 0x306   : > { %v1226_v10 = vrot.slane %v1224_v8, 4 }
 0x307   : > { %v1227_v11 = vadd.f32 %v1225_v9, %v1223_v7 }
 0x308   : > { %v1228_v12 = vadd.f32 %v1226_v10, %v1224_v8 }
 0x309   : > { %vm1229_vm8 = vcmp.ge.f32.partialorder %v1227_v11, 1.0 }
 0x30a   : > { %vm1230_vm9 = vcmp.ge.f32.partialorder %v1228_v12, 1.0  ;;  %vm1231_vm10 = vmxor %vm1229_vm8, %vm419_vm0 }
 0x30b   : > { %vm1232_vm11 = vmxor %vm1230_vm9, %vm420_vm3 }
 0x30c   : > { %vm1233_vm12 = vmxor %vm1231_vm10, %vm3231_vm6 }
 0x30d   : > { %vm1234_vm13 = vmxor %vm1232_vm11, %vm3231_vm6  ;;  %v1235_v14 = vsel %vm1233_vm12, %v1191_v37, %v1187_v32 }
 0x30e   : > { %v1236_v16 = vsel %vm1234_vm13, %v1192_v27, %v1188_v36  ;;  %v1239_v18 = vadd.f32 %v1237_v13, %v1235_v14 }
 0x30f   : > { %v1240_v19 = vadd.f32 %v1238_v15, %v1236_v16 }
 0x310   : > { %v1241_v21 = vsub.f32 %v3489_v45, %v1239_v18  ;;  %v1249_v22 = vsub.f32 %v3497_v49, %v1239_v18  ;;  %v1257_v23 = vsub.f32 %v3491_v46, %v1239_v18  ;;  %v1265_v24 = vsub.f32 %v3499_v50, %v1239_v18 }
 0x311   : > { %v1242_v25 = vsub.f32 %v3493_v47, %v1240_v19  ;;  %v1250_v26 = vsub.f32 %v3501_v51, %v1240_v19  ;;  %v1258_v29 = vsub.f32 %v3495_v48, %v1240_v19  ;;  %v1266_v30 = vsub.f32 %v3503_v52, %v1240_v19 }
 0x312   : > { %v1243_v31 = vmax.f32 %v1241_v21, 0.0  ;;  %v1251_v32 = vmax.f32 %v1249_v22, 0.0  ;;  %v1259_v35 = vmax.f32 %v1257_v23, 0.0  ;;  %v1267_v28 = vmax.f32 %v1265_v24, 0.0 }
 0x313   : > { %v1244_v36 = vmax.f32 %v1242_v25, 0.0  ;;  %v1252_v37 = vmax.f32 %v1250_v26, 0.0  ;;  %v1260_v27 = vmax.f32 %v1258_v29, 0.0  ;;  %v1268_v34 = vmax.f32 %v1266_v30, 0.0 }
 0x314   : > { %v1245_v38 = vmul.f32 %v1243_v31, %v1243_v31  ;;  %v1253_v63 = vmul.f32 %v1251_v32, %v1251_v32  ;;  %v1261_v40 = vmul.f32 %v1259_v35, %v1259_v35  ;;  %v1269_v44 = vmul.f32 %v1267_v28, %v1267_v28 }
 0x315   : > { %v1246_v1 = vmul.f32 %v1244_v36, %v1244_v36  ;;  %v1254_v33 = vmul.f32 %v1252_v37, %v1252_v37  ;;  %v1262_v42 = vmul.f32 %v1260_v27, %v1260_v27  ;;  %v1270_v54 = vmul.f32 %v1268_v34, %v1268_v34 }
 0x316   : > { %v1255_v39 = vadd.f32 %v1253_v63, %v1245_v38 }
 0x317   : > { %v1256_v41 = vadd.f32 %v1254_v33, %v1246_v1 }
 0x318   : > { %v1263_v43 = vadd.f32 %v1261_v40, %v1255_v39  ;;  %v1333_v39 = vmul.f32 0.5, %v1285_v61 }
 0x319   : > { %v1264_v53 = vadd.f32 %v1262_v42, %v1256_v41  ;;  %v1334_v41 = vmul.f32 0.5, %v1286_v0 }
 0x31a   : > { %v1271_v55 = vadd.f32 %v1269_v44, %v1263_v43 }
 0x31b   : > { %v1272_v56 = vadd.f32 %v1270_v54, %v1264_v53 }
 0x31c   : > { %v1273_v57 = vrot.slane %v1271_v55, 4 }
 0x31d   : > { %v1274_v58 = vrot.slane %v1272_v56, 4 }
 0x31e   : > { %v1275_v59 = vadd.f32 %v1273_v57, %v1271_v55 }
 0x31f   : > { %v1276_v60 = vadd.f32 %v1274_v58, %v1272_v56 }
 0x320   : > { %vm1277_vm14 = vcmp.ge.f32.partialorder %v1275_v59, 1.0 }
 0x321   : > { %vm1278_vm15 = vcmp.ge.f32.partialorder %v1276_v60, 1.0  ;;  %vm1279_vm1 = vmxor %vm1277_vm14, %vm419_vm0 }
 0x322   : > { %vm1280_vm2 = vmxor %vm1278_vm15, %vm420_vm3 }
 0x323   : > { %vm1281_vm4 = vmxor %vm1279_vm1, %vm3231_vm6 }
 0x324   : > { %vm1282_vm5 = vmxor %vm1280_vm2, %vm3231_vm6  ;;  %v1283_v62 = vsel %vm1281_vm4, %v1239_v18, %v1235_v14 }
 0x325   : > { %v1284_v2 = vsel %vm1282_vm5, %v1240_v19, %v1236_v16  ;;  %v1287_v3 = vadd.f32 %v1285_v61, %v1283_v62 }
 0x326   : > { %v1288_v4 = vadd.f32 %v1286_v0, %v1284_v2 }
 0x327   : > { %v1289_v5 = vsub.f32 %v3489_v45, %v1287_v3  ;;  %v1297_v6 = vsub.f32 %v3497_v49, %v1287_v3  ;;  %v1305_v7 = vsub.f32 %v3491_v46, %v1287_v3  ;;  %v1313_v8 = vsub.f32 %v3499_v50, %v1287_v3 }
 0x328   : > { %v1290_v9 = vsub.f32 %v3493_v47, %v1288_v4  ;;  %v1298_v10 = vsub.f32 %v3501_v51, %v1288_v4  ;;  %v1306_v11 = vsub.f32 %v3495_v48, %v1288_v4  ;;  %v1314_v12 = vsub.f32 %v3503_v52, %v1288_v4 }
 0x329   : > { %v1291_v13 = vmax.f32 %v1289_v5, 0.0  ;;  %v1299_v14 = vmax.f32 %v1297_v6, 0.0  ;;  %v1307_v15 = vmax.f32 %v1305_v7, 0.0  ;;  %v1315_v23 = vmax.f32 %v1313_v8, 0.0 }
 0x32a   : > { %v1292_v16 = vmax.f32 %v1290_v9, 0.0  ;;  %v1300_v18 = vmax.f32 %v1298_v10, 0.0  ;;  %v1308_v19 = vmax.f32 %v1306_v11, 0.0  ;;  %v1316_v26 = vmax.f32 %v1314_v12, 0.0 }
 0x32b   : > { %v1293_v21 = vmul.f32 %v1291_v13, %v1291_v13  ;;  %v1301_v22 = vmul.f32 %v1299_v14, %v1299_v14  ;;  %v1309_v30 = vmul.f32 %v1307_v15, %v1307_v15  ;;  %v1317_v36 = vmul.f32 %v1315_v23, %v1315_v23 }
 0x32c   : > { %v1294_v24 = vmul.f32 %v1292_v16, %v1292_v16  ;;  %v1302_v25 = vmul.f32 %v1300_v18, %v1300_v18  ;;  %v1310_v32 = vmul.f32 %v1308_v19, %v1308_v19  ;;  %v1318_v27 = vmul.f32 %v1316_v26, %v1316_v26 }
 0x32d   : > { %v1303_v29 = vadd.f32 %v1301_v22, %v1293_v21 }
 0x32e   : > { %v1304_v31 = vadd.f32 %v1302_v25, %v1294_v24 }
 0x32f   : > { %v1311_v35 = vadd.f32 %v1309_v30, %v1303_v29  ;;  %v1381_v29 = vmul.f32 0.5, %v1333_v39 }
 0x330   : > { %v1312_v37 = vadd.f32 %v1310_v32, %v1304_v31  ;;  %v1382_v31 = vmul.f32 0.5, %v1334_v41 }
 0x331   : > { %v1319_v38 = vadd.f32 %v1317_v36, %v1311_v35 }
 0x332   : > { %v1320_v63 = vadd.f32 %v1318_v27, %v1312_v37 }
 0x333   : > { %v1321_v28 = vrot.slane %v1319_v38, 4 }
 0x334   : > { %v1322_v1 = vrot.slane %v1320_v63, 4 }
 0x335   : > { %v1323_v33 = vadd.f32 %v1321_v28, %v1319_v38 }
 0x336   : > { %v1324_v34 = vadd.f32 %v1322_v1, %v1320_v63 }
 0x337   : > { %vm1325_vm7 = vcmp.ge.f32.partialorder %v1323_v33, 1.0 }
 0x338   : > { %vm1326_vm8 = vcmp.ge.f32.partialorder %v1324_v34, 1.0  ;;  %vm1327_vm9 = vmxor %vm1325_vm7, %vm419_vm0 }
 0x339   : > { %vm1328_vm10 = vmxor %vm1326_vm8, %vm420_vm3 }
 0x33a   : > { %vm1329_vm11 = vmxor %vm1327_vm9, %vm3231_vm6 }
 0x33b   : > { %vm1330_vm12 = vmxor %vm1328_vm10, %vm3231_vm6  ;;  %v1331_v40 = vsel %vm1329_vm11, %v1287_v3, %v1283_v62 }
 0x33c   : > { %v1332_v42 = vsel %vm1330_vm12, %v1288_v4, %v1284_v2  ;;  %v1335_v43 = vadd.f32 %v1333_v39, %v1331_v40 }
 0x33d   : > { %v1336_v44 = vadd.f32 %v1334_v41, %v1332_v42 }
 0x33e   : > { %v1337_v53 = vsub.f32 %v3489_v45, %v1335_v43  ;;  %v1345_v54 = vsub.f32 %v3497_v49, %v1335_v43  ;;  %v1353_v55 = vsub.f32 %v3491_v46, %v1335_v43  ;;  %v1361_v56 = vsub.f32 %v3499_v50, %v1335_v43 }
 0x33f   : > { %v1338_v57 = vsub.f32 %v3493_v47, %v1336_v44  ;;  %v1346_v58 = vsub.f32 %v3501_v51, %v1336_v44  ;;  %v1354_v59 = vsub.f32 %v3495_v48, %v1336_v44  ;;  %v1362_v60 = vsub.f32 %v3503_v52, %v1336_v44 }
 0x340   : > { %v1339_v61 = vmax.f32 %v1337_v53, 0.0  ;;  %v1347_v62 = vmax.f32 %v1345_v54, 0.0  ;;  %v1355_v0 = vmax.f32 %v1353_v55, 0.0  ;;  %v1363_v7 = vmax.f32 %v1361_v56, 0.0 }
 0x341   : > { %v1340_v2 = vmax.f32 %v1338_v57, 0.0  ;;  %v1348_v3 = vmax.f32 %v1346_v58, 0.0  ;;  %v1356_v4 = vmax.f32 %v1354_v59, 0.0  ;;  %v1364_v10 = vmax.f32 %v1362_v60, 0.0 }
 0x342   : > { %v1341_v5 = vmul.f32 %v1339_v61, %v1339_v61  ;;  %v1349_v6 = vmul.f32 %v1347_v62, %v1347_v62  ;;  %v1357_v12 = vmul.f32 %v1355_v0, %v1355_v0  ;;  %v1365_v16 = vmul.f32 %v1363_v7, %v1363_v7 }
 0x343   : > { %v1342_v8 = vmul.f32 %v1340_v2, %v1340_v2  ;;  %v1350_v9 = vmul.f32 %v1348_v3, %v1348_v3  ;;  %v1358_v14 = vmul.f32 %v1356_v4, %v1356_v4  ;;  %v1366_v19 = vmul.f32 %v1364_v10, %v1364_v10 }
 0x344   : > { %v1351_v11 = vadd.f32 %v1349_v6, %v1341_v5 }
 0x345   : > { %v1352_v13 = vadd.f32 %v1350_v9, %v1342_v8 }
 0x346   : > { %v1359_v15 = vadd.f32 %v1357_v12, %v1351_v11  ;;  %v1429_v11 = vmul.f32 0.5, %v1381_v29 }
 0x347   : > { %v1360_v18 = vadd.f32 %v1358_v14, %v1352_v13  ;;  %v1430_v13 = vmul.f32 0.5, %v1382_v31 }
 0x348   : > { %v1367_v21 = vadd.f32 %v1365_v16, %v1359_v15 }
 0x349   : > { %v1368_v22 = vadd.f32 %v1366_v19, %v1360_v18 }
 0x34a   : > { %v1369_v23 = vrot.slane %v1367_v21, 4 }
 0x34b   : > { %v1370_v24 = vrot.slane %v1368_v22, 4 }
 0x34c   : > { %v1371_v25 = vadd.f32 %v1369_v23, %v1367_v21 }
 0x34d   : > { %v1372_v26 = vadd.f32 %v1370_v24, %v1368_v22 }
 0x34e   : > { %vm1373_vm13 = vcmp.ge.f32.partialorder %v1371_v25, 1.0 }
 0x34f   : > { %vm1374_vm14 = vcmp.ge.f32.partialorder %v1372_v26, 1.0  ;;  %vm1375_vm15 = vmxor %vm1373_vm13, %vm419_vm0 }
 0x350   : > { %vm1376_vm1 = vmxor %vm1374_vm14, %vm420_vm3 }
 0x351   : > { %vm1377_vm2 = vmxor %vm1375_vm15, %vm3231_vm6 }
 0x352   : > { %vm1378_vm4 = vmxor %vm1376_vm1, %vm3231_vm6  ;;  %v1379_v30 = vsel %vm1377_vm2, %v1335_v43, %v1331_v40 }
 0x353   : > { %v1380_v32 = vsel %vm1378_vm4, %v1336_v44, %v1332_v42  ;;  %v1383_v35 = vadd.f32 %v1381_v29, %v1379_v30 }
 0x354   : > { %v1384_v36 = vadd.f32 %v1382_v31, %v1380_v32 }
 0x355   : > { %v1385_v37 = vsub.f32 %v3489_v45, %v1383_v35  ;;  %v1393_v27 = vsub.f32 %v3497_v49, %v1383_v35  ;;  %v1401_v38 = vsub.f32 %v3491_v46, %v1383_v35  ;;  %v1409_v63 = vsub.f32 %v3499_v50, %v1383_v35 }
 0x356   : > { %v1386_v28 = vsub.f32 %v3493_v47, %v1384_v36  ;;  %v1394_v1 = vsub.f32 %v3501_v51, %v1384_v36  ;;  %v1402_v33 = vsub.f32 %v3495_v48, %v1384_v36  ;;  %v1410_v34 = vsub.f32 %v3503_v52, %v1384_v36 }
 0x357   : > { %v1387_v39 = vmax.f32 %v1385_v37, 0.0  ;;  %v1395_v40 = vmax.f32 %v1393_v27, 0.0  ;;  %v1403_v41 = vmax.f32 %v1401_v38, 0.0  ;;  %v1411_v55 = vmax.f32 %v1409_v63, 0.0 }
 0x358   : > { %v1388_v42 = vmax.f32 %v1386_v28, 0.0  ;;  %v1396_v43 = vmax.f32 %v1394_v1, 0.0  ;;  %v1404_v44 = vmax.f32 %v1402_v33, 0.0  ;;  %v1412_v58 = vmax.f32 %v1410_v34, 0.0 }
 0x359   : > { %v1389_v53 = vmul.f32 %v1387_v39, %v1387_v39  ;;  %v1397_v54 = vmul.f32 %v1395_v40, %v1395_v40  ;;  %v1405_v60 = vmul.f32 %v1403_v41, %v1403_v41  ;;  %v1413_v2 = vmul.f32 %v1411_v55, %v1411_v55 }
 0x35a   : > { %v1390_v56 = vmul.f32 %v1388_v42, %v1388_v42  ;;  %v1398_v57 = vmul.f32 %v1396_v43, %v1396_v43  ;;  %v1406_v62 = vmul.f32 %v1404_v44, %v1404_v44  ;;  %v1414_v4 = vmul.f32 %v1412_v58, %v1412_v58 }
 0x35b   : > { %v1399_v59 = vadd.f32 %v1397_v54, %v1389_v53 }
 0x35c   : > { %v1400_v61 = vadd.f32 %v1398_v57, %v1390_v56 }
 0x35d   : > { %v1407_v0 = vadd.f32 %v1405_v60, %v1399_v59  ;;  %v1477_v59 = vmul.f32 0.5, %v1429_v11 }
 0x35e   : > { %v1408_v3 = vadd.f32 %v1406_v62, %v1400_v61  ;;  %v1478_v61 = vmul.f32 0.5, %v1430_v13 }
 0x35f   : > { %v1415_v5 = vadd.f32 %v1413_v2, %v1407_v0 }
 0x360   : > { %v1416_v6 = vadd.f32 %v1414_v4, %v1408_v3 }
 0x361   : > { %v1417_v7 = vrot.slane %v1415_v5, 4 }
 0x362   : > { %v1418_v8 = vrot.slane %v1416_v6, 4 }
 0x363   : > { %v1419_v9 = vadd.f32 %v1417_v7, %v1415_v5 }
 0x364   : > { %v1420_v10 = vadd.f32 %v1418_v8, %v1416_v6 }
 0x365   : > { %vm1421_vm5 = vcmp.ge.f32.partialorder %v1419_v9, 1.0 }
 0x366   : > { %vm1422_vm7 = vcmp.ge.f32.partialorder %v1420_v10, 1.0  ;;  %vm1423_vm8 = vmxor %vm1421_vm5, %vm419_vm0 }
 0x367   : > { %vm1424_vm9 = vmxor %vm1422_vm7, %vm420_vm3 }
 0x368   : > { %vm1425_vm10 = vmxor %vm1423_vm8, %vm3231_vm6 }
 0x369   : > { %vm1426_vm11 = vmxor %vm1424_vm9, %vm3231_vm6  ;;  %v1427_v12 = vsel %vm1425_vm10, %v1383_v35, %v1379_v30 }
 0x36a   : > { %v1428_v14 = vsel %vm1426_vm11, %v1384_v36, %v1380_v32  ;;  %v1431_v15 = vadd.f32 %v1429_v11, %v1427_v12 }
 0x36b   : > { %v1432_v16 = vadd.f32 %v1430_v13, %v1428_v14 }
 0x36c   : > { %v1433_v18 = vsub.f32 %v3489_v45, %v1431_v15  ;;  %v1441_v19 = vsub.f32 %v3497_v49, %v1431_v15  ;;  %v1449_v21 = vsub.f32 %v3491_v46, %v1431_v15  ;;  %v1457_v22 = vsub.f32 %v3499_v50, %v1431_v15 }
 0x36d   : > { %v1434_v23 = vsub.f32 %v3493_v47, %v1432_v16  ;;  %v1442_v24 = vsub.f32 %v3501_v51, %v1432_v16  ;;  %v1450_v25 = vsub.f32 %v3495_v48, %v1432_v16  ;;  %v1458_v26 = vsub.f32 %v3503_v52, %v1432_v16 }
 0x36e   : > { %v1435_v29 = vmax.f32 %v1433_v18, 0.0  ;;  %v1443_v30 = vmax.f32 %v1441_v19, 0.0  ;;  %v1451_v31 = vmax.f32 %v1449_v21, 0.0  ;;  %v1459_v38 = vmax.f32 %v1457_v22, 0.0 }
 0x36f   : > { %v1436_v32 = vmax.f32 %v1434_v23, 0.0  ;;  %v1444_v35 = vmax.f32 %v1442_v24, 0.0  ;;  %v1452_v36 = vmax.f32 %v1450_v25, 0.0  ;;  %v1460_v1 = vmax.f32 %v1458_v26, 0.0 }
 0x370   : > { %v1437_v37 = vmul.f32 %v1435_v29, %v1435_v29  ;;  %v1445_v27 = vmul.f32 %v1443_v30, %v1443_v30  ;;  %v1453_v34 = vmul.f32 %v1451_v31, %v1451_v31  ;;  %v1461_v42 = vmul.f32 %v1459_v38, %v1459_v38 }
 0x371   : > { %v1438_v63 = vmul.f32 %v1436_v32, %v1436_v32  ;;  %v1446_v28 = vmul.f32 %v1444_v35, %v1444_v35  ;;  %v1454_v40 = vmul.f32 %v1452_v36, %v1452_v36  ;;  %v1462_v44 = vmul.f32 %v1460_v1, %v1460_v1 }
 0x372   : > { %v1447_v33 = vadd.f32 %v1445_v27, %v1437_v37 }
 0x373   : > { %v1448_v39 = vadd.f32 %v1446_v28, %v1438_v63 }
 0x374   : > { %v1455_v41 = vadd.f32 %v1453_v34, %v1447_v33  ;;  %v1525_v33 = vmul.f32 0.5, %v1477_v59 }
 0x375   : > { %v1456_v43 = vadd.f32 %v1454_v40, %v1448_v39  ;;  %v1526_v39 = vmul.f32 0.5, %v1478_v61 }
 0x376   : > { %v1463_v53 = vadd.f32 %v1461_v42, %v1455_v41 }
 0x377   : > { %v1464_v54 = vadd.f32 %v1462_v44, %v1456_v43 }
 0x378   : > { %v1465_v55 = vrot.slane %v1463_v53, 4 }
 0x379   : > { %v1466_v56 = vrot.slane %v1464_v54, 4 }
 0x37a   : > { %v1467_v57 = vadd.f32 %v1465_v55, %v1463_v53 }
 0x37b   : > { %v1468_v58 = vadd.f32 %v1466_v56, %v1464_v54 }
 0x37c   : > { %vm1469_vm12 = vcmp.ge.f32.partialorder %v1467_v57, 1.0 }
 0x37d   : > { %vm1470_vm13 = vcmp.ge.f32.partialorder %v1468_v58, 1.0  ;;  %vm1471_vm14 = vmxor %vm1469_vm12, %vm419_vm0 }
 0x37e   : > { %vm1472_vm15 = vmxor %vm1470_vm13, %vm420_vm3 }
 0x37f   : > { %vm1473_vm1 = vmxor %vm1471_vm14, %vm3231_vm6 }
 0x380   : > { %vm1474_vm2 = vmxor %vm1472_vm15, %vm3231_vm6  ;;  %v1475_v60 = vsel %vm1473_vm1, %v1431_v15, %v1427_v12 }
 0x381   : > { %v1476_v62 = vsel %vm1474_vm2, %v1432_v16, %v1428_v14  ;;  %v1479_v0 = vadd.f32 %v1477_v59, %v1475_v60 }
 0x382   : > { %v1480_v2 = vadd.f32 %v1478_v61, %v1476_v62 }
 0x383   : > { %v1481_v3 = vsub.f32 %v3489_v45, %v1479_v0  ;;  %v1489_v4 = vsub.f32 %v3497_v49, %v1479_v0  ;;  %v1497_v5 = vsub.f32 %v3491_v46, %v1479_v0  ;;  %v1505_v6 = vsub.f32 %v3499_v50, %v1479_v0 }
 0x384   : > { %v1482_v7 = vsub.f32 %v3493_v47, %v1480_v2  ;;  %v1490_v8 = vsub.f32 %v3501_v51, %v1480_v2  ;;  %v1498_v9 = vsub.f32 %v3495_v48, %v1480_v2  ;;  %v1506_v10 = vsub.f32 %v3503_v52, %v1480_v2 }
 0x385   : > { %v1483_v11 = vmax.f32 %v1481_v3, 0.0  ;;  %v1491_v12 = vmax.f32 %v1489_v4, 0.0  ;;  %v1499_v13 = vmax.f32 %v1497_v5, 0.0  ;;  %v1507_v21 = vmax.f32 %v1505_v6, 0.0 }
 0x386   : > { %v1484_v14 = vmax.f32 %v1482_v7, 0.0  ;;  %v1492_v15 = vmax.f32 %v1490_v8, 0.0  ;;  %v1500_v16 = vmax.f32 %v1498_v9, 0.0  ;;  %v1508_v24 = vmax.f32 %v1506_v10, 0.0 }
 0x387   : > { %v1485_v18 = vmul.f32 %v1483_v11, %v1483_v11  ;;  %v1493_v19 = vmul.f32 %v1491_v12, %v1491_v12  ;;  %v1501_v26 = vmul.f32 %v1499_v13, %v1499_v13  ;;  %v1509_v32 = vmul.f32 %v1507_v21, %v1507_v21 }
 0x388   : > { %v1486_v22 = vmul.f32 %v1484_v14, %v1484_v14  ;;  %v1494_v23 = vmul.f32 %v1492_v15, %v1492_v15  ;;  %v1502_v30 = vmul.f32 %v1500_v16, %v1500_v16  ;;  %v1510_v36 = vmul.f32 %v1508_v24, %v1508_v24  ;;  %v1576_v14 = vpop.permute.xlu0 %1575  ;;  %v1594_v15 = vpop.permute.xlu1 %1593 }
 0x389   : > { %v1495_v25 = vadd.f32 %v1493_v19, %v1485_v18  ;;  %v1617_v13 = vlaneseq }
 0x38a   : > { %v1496_v29 = vadd.f32 %v1494_v23, %v1486_v22 }
 0x38b   : > { %v1503_v31 = vadd.f32 %v1501_v26, %v1495_v25  ;;  %v1618_v16 = vshrl.u32 %v1617_v13, 7  ;;  %v3972_v13 = vld [vmem:[%s3403_s6 + $0x60] sm:$0xff] }
 0x38c   : > { %v1504_v35 = vadd.f32 %v1502_v30, %v1496_v29  ;;  %v1585_v18 = vpop.permute.xlu0 %1584  ;;  %v1603_v19 = vpop.permute.xlu1 %1602 }
 0x38d   : > { %v1511_v37 = vadd.f32 %v1509_v32, %v1503_v31  ;;  %v3875_v21 = vsub.s32 0, %v1618_v16  ;;  %v3877_v22 = vsub.s32 4, %v1618_v16  ;;  %v3879_v23 = vsub.s32 1, %v1618_v16 }
 0x38e   : > { %v1512_v27 = vadd.f32 %v1510_v36, %v1504_v35  ;;  %v3881_v24 = vsub.s32 5, %v1618_v16  ;;  %v3883_v26 = vsub.s32 2, %v1618_v16  ;;  %v3885_v29 = vsub.s32 6, %v1618_v16 }
 0x38f   : > { %v1513_v38 = vrot.slane %v1511_v37, 4  ;;  %5041 = vst [vmem:[#allocation11_spill] sm:$0xff] %v3875_v21  ;;  %5042 = vst [vmem:[#allocation12_spill] sm:$0xff] %v3877_v22  ;;  %v3887_v30 = vsub.s32 3, %v1618_v16  ;;  %v3889_v31 = vsub.s32 7, %v1618_v16 }
 0x390   : > { %v1514_v63 = vrot.slane %v1512_v27, 4  ;;  %5043 = vst [vmem:[#allocation13_spill] sm:$0xff] %v3879_v23  ;;  %5044 = vst [vmem:[#allocation14_spill] sm:$0xff] %v3881_v24 }
 0x391   : > { %v1515_v28 = vadd.f32 %v1513_v38, %v1511_v37  ;;  %5045 = vst [vmem:[#allocation15_spill] sm:$0xff] %v3883_v26  ;;  %5046 = vst [vmem:[#allocation16_spill] sm:$0xff] %v3885_v29 }
 0x392   : > { %v1516_v1 = vadd.f32 %v1514_v63, %v1512_v27  ;;  %5047 = vst [vmem:[#allocation17_spill] sm:$0xff] %v3887_v30  ;;  %5048 = vst [vmem:[#allocation18_spill] sm:$0xff] %v3889_v31 }
 0x393   : > { %vm1517_vm4 = vcmp.ge.f32.partialorder %v1515_v28, 1.0 }
 0x394   : > { %vm1518_vm5 = vcmp.ge.f32.partialorder %v1516_v1, 1.0  ;;  %vm1519_vm7 = vmxor %vm1517_vm4, %vm419_vm0 }
 0x395   : > { %vm1520_vm8 = vmxor %vm1518_vm5, %vm420_vm3 }
 0x396   : > { %vm1521_vm9 = vmxor %vm1519_vm7, %vm3231_vm6 }
 0x397   : > { %vm1522_vm10 = vmxor %vm1520_vm8, %vm3231_vm6  ;;  %v1523_v34 = vsel %vm1521_vm9, %v1479_v0, %v1475_v60 }
 0x398   : > { %v1524_v40 = vsel %vm1522_vm10, %v1480_v2, %v1476_v62  ;;  %v1527_v41 = vadd.f32 %v1525_v33, %v1523_v34 }
 0x399   : > { %v1528_v42 = vadd.f32 %v1526_v39, %v1524_v40 }
 0x39a   : > { %v1529_v43 = vsub.f32 %v3489_v45, %v1527_v41  ;;  %v1537_v44 = vsub.f32 %v3497_v49, %v1527_v41  ;;  %v1545_v17 = vsub.f32 %v3491_v46, %v1527_v41  ;;  %v1553_v53 = vsub.f32 %v3499_v50, %v1527_v41 }
 0x39b   : > { %v1530_v20 = vsub.f32 %v3493_v47, %v1528_v42  ;;  %v1538_v54 = vsub.f32 %v3501_v51, %v1528_v42  ;;  %v1546_v55 = vsub.f32 %v3495_v48, %v1528_v42  ;;  %v1554_v56 = vsub.f32 %v3503_v52, %v1528_v42 }
 0x39c   : > { %v1531_v57 = vmax.f32 %v1529_v43, 0.0  ;;  %v1539_v58 = vmax.f32 %v1537_v44, 0.0  ;;  %v1547_v59 = vmax.f32 %v1545_v17, 0.0  ;;  %v1555_v0 = vmax.f32 %v1553_v53, 0.0 }
 0x39d   : > { %v1532_v60 = vmax.f32 %v1530_v20, 0.0  ;;  %v1540_v61 = vmax.f32 %v1538_v54, 0.0  ;;  %v1548_v45 = vmax.f32 %v1546_v55, 0.0  ;;  %v1556_v50 = vmax.f32 %v1554_v56, 0.0 }
 0x39e   : > { %v1533_v62 = vmul.f32 %v1531_v57, %v1531_v57  ;;  %v1541_v49 = vmul.f32 %v1539_v58, %v1539_v58  ;;  %v1549_v47 = vmul.f32 %v1547_v59, %v1547_v59  ;;  %v1557_v48 = vmul.f32 %v1555_v0, %v1555_v0  ;;  %v3924_v59 = vld [vmem:[%s3403_s6] sm:$0xff]  ;;  %v3936_v0 = vld [vmem:[%s3403_s6 + $0x30] sm:$0xff] }
 0x39f   : > { %v1534_v46 = vmul.f32 %v1532_v60, %v1532_v60  ;;  %v1542_v2 = vmul.f32 %v1540_v61, %v1540_v61  ;;  %v1550_v51 = vmul.f32 %v1548_v45, %v1548_v45  ;;  %v1558_v52 = vmul.f32 %v1556_v50, %v1556_v50  ;;  %v3928_v61 = vld [vmem:[%s3403_s6 + $0x10] sm:$0xff] }
 0x3a0   : > { %v1543_v3 = vadd.f32 %v1541_v49, %v1533_v62 }
 0x3a1   : > { %v1544_v4 = vadd.f32 %v1542_v2, %v1534_v46 }
 0x3a2   : > { %v1551_v5 = vadd.f32 %v1549_v47, %v1543_v3  ;;  %v3944_v3 = vld [vmem:[%s3403_s6 + $0x18] sm:$0xff] }
 0x3a3   : > { %v1552_v6 = vadd.f32 %v1550_v51, %v1544_v4  ;;  %v3948_v4 = vld [vmem:[%s3403_s6 + $0x28] sm:$0xff] }
 0x3a4   : > { %v1559_v7 = vadd.f32 %v1557_v48, %v1551_v5  ;;  %v3952_v5 = vld [vmem:[%s3403_s6 + $0x38] sm:$0xff] }
 0x3a5   : > { %v1560_v8 = vadd.f32 %v1558_v52, %v1552_v6  ;;  %v3956_v6 = vld [vmem:[%s3403_s6 + $0x40] sm:$0xff] }
 0x3a6   : > { %v1561_v9 = vrot.slane %v1559_v7, 4 }
 0x3a7   : > { %v1562_v10 = vrot.slane %v1560_v8, 4 }
 0x3a8   : > { %v1563_v11 = vadd.f32 %v1561_v9, %v1559_v7  ;;  %v3960_v7 = vld [vmem:[%s3403_s6 + $0x48] sm:$0xff]  ;;  %v3964_v9 = vld [vmem:[%s3403_s6 + $0x50] sm:$0xff] }
 0x3a9   : > { %v1564_v12 = vadd.f32 %v1562_v10, %v1560_v8 }
 0x3aa   : > { %3003 = vrcp.f32 %v1563_v11  ;;  %v3968_v11 = vld [vmem:[%s3403_s6 + $0x58] sm:$0xff] }
 0x3ab   : > { %3005 = vrcp.f32 %v1564_v12 }
 0x3b4   : > { %v3004_v25 = vpop.eup %3003 }
 0x3b5   : > { %v3006_v32 = vpop.eup %3005  ;;  %v1578_v35 = vmul.f32 %v3004_v25, %v1576_v14  ;;  %v1596_v36 = vmul.f32 %v3004_v25, %v1594_v15  ;;  %v1587_v37 = vmul.f32 %v3004_v25, %v1585_v18  ;;  %v1605_v27 = vmul.f32 %v3004_v25, %v1603_v19  ;;  %v3984_v25 = vld [vmem:[%s3403_s6 + $0x78] sm:$0xff] }
 0x3b6   : > { %v1579_v38 = vmul.f32 %v3006_v32, %v1576_v14  ;;  %v1597_v63 = vmul.f32 %v3006_v32, %v1594_v15  ;;  %v1588_v28 = vmul.f32 %v3006_v32, %v1585_v18  ;;  %v1606_v1 = vmul.f32 %v3006_v32, %v1603_v19  ;;  %v3976_v15 = vld [vmem:[%s3403_s6 + $0x68] sm:$0xff]  ;;  %v3980_v18 = vld [vmem:[%s3403_s6 + $0x70] sm:$0xff] }
 0x3b7   : > { %v3891_v33 = vmul.f32 %v1578_v35, %v1533_v62  ;;  %v3893_v34 = vmul.f32 %v1596_v36, %v1549_v47  ;;  %v3895_v39 = vmul.f32 %v1587_v37, %v1541_v49  ;;  %v3897_v40 = vmul.f32 %v1605_v27, %v1557_v48  ;;  %v3932_v62 = vld [vmem:[%s3403_s6 + $0x20] sm:$0xff] }
 0x3b8   : > { %v3899_v41 = vmul.f32 %v1579_v38, %v1534_v46  ;;  %v3901_v42 = vmul.f32 %v1597_v63, %v1550_v51  ;;  %v3903_v43 = vmul.f32 %v1588_v28, %v1542_v2  ;;  %v3905_v44 = vmul.f32 %v1606_v1, %v1558_v52  ;;  %v3940_v2 = vld [vmem:[%s3403_s6 + $0x8] sm:$0xff] }
 0x3b9   : > { %5049 = vst [vmem:[#allocation19_spill] sm:$0xff] %v3895_v39  ;;  %5050 = vst [vmem:[#allocation20_spill] sm:$0xff] %v3897_v40  ;;  %v1620_v17 = vrot.slane %v3891_v33, %v3875_v21  ;;  %v1652_v53 = vrot.slane %v3891_v33, %v3877_v22  ;;  %v1892_v20 = vrot.slane %v3891_v33, %v3879_v23 }
 0x3ba   : > { %5051 = vst [vmem:[#allocation21_spill] sm:$0xff] %v3903_v43  ;;  %5052 = vst [vmem:[#allocation22_spill] sm:$0xff] %v3905_v44  ;;  %v1924_v54 = vrot.slane %v3891_v33, %v3881_v24  ;;  %v1624_v55 = vrot.slane %v3899_v41, %v3875_v21  ;;  %v1656_v56 = vrot.slane %v3899_v41, %v3877_v22 }
 0x3bb   : > { %v1896_v57 = vrot.slane %v3899_v41, %v3879_v23  ;;  %v1928_v58 = vrot.slane %v3899_v41, %v3881_v24  ;;  %v1625_v60 = vmul.f32 %v3924_v59, %v1620_v17  ;;  %v1627_v45 = vmul.f32 %v3928_v61, %v1620_v17 }
 0x3bc   : > { %v1629_v49 = vmul.f32 %v3932_v62, %v1620_v17  ;;  %v1631_v46 = vmul.f32 %v3936_v0, %v1620_v17  ;;  %v1626_v50 = vmul.f32 %v3940_v2, %v1624_v55  ;;  %v1628_v47 = vmul.f32 %v3944_v3, %v1624_v55 }
 0x3bd   : > { %v1630_v51 = vmul.f32 %v3948_v4, %v1624_v55  ;;  %v1632_v48 = vmul.f32 %v3952_v5, %v1624_v55  ;;  %v1657_v52 = vmul.f32 %v3956_v6, %v1652_v53  ;;  %v1658_v8 = vmul.f32 %v3960_v7, %v1656_v56 }
 0x3be   : > { %v1659_v10 = vmul.f32 %v3964_v9, %v1652_v53  ;;  %v1660_v12 = vmul.f32 %v3968_v11, %v1656_v56  ;;  %v1661_v14 = vmul.f32 %v3972_v13, %v1652_v53  ;;  %v1662_v16 = vmul.f32 %v3976_v15, %v1656_v56 }
 0x3bf   : > { %v1663_v19 = vmul.f32 %v3980_v18, %v1652_v53  ;;  %v1664_v32 = vmul.f32 %v3984_v25, %v1656_v56  ;;  %v3987_v35 = vadd.f32 %v1657_v52, %v1625_v60  ;;  %v3989_v36 = vadd.f32 %v1658_v8, %v1626_v50 }
 0x3c0   : > { %v3991_v37 = vadd.f32 %v1659_v10, %v1627_v45  ;;  %v3993_v27 = vadd.f32 %v1660_v12, %v1628_v47  ;;  %v3995_v38 = vadd.f32 %v1661_v14, %v1629_v49  ;;  %v3997_v63 = vadd.f32 %v1662_v16, %v1630_v51 }
 0x3c1   : > { %v3999_v28 = vadd.f32 %v1663_v19, %v1631_v46  ;;  %v4001_v1 = vadd.f32 %v1664_v32, %v1632_v48  ;;  %v1897_v17 = vmul.f32 %v3924_v59, %v1892_v20  ;;  %v1898_v53 = vmul.f32 %v3940_v2, %v1896_v57 }
 0x3c2   : > { %v1899_v55 = vmul.f32 %v3928_v61, %v1892_v20  ;;  %v1900_v56 = vmul.f32 %v3944_v3, %v1896_v57  ;;  %v1901_v60 = vmul.f32 %v3932_v62, %v1892_v20  ;;  %v1902_v45 = vmul.f32 %v3948_v4, %v1896_v57 }
 0x3c3   : > { %5053 = vst [vmem:[#allocation23_spill] sm:$0xff] %v3999_v28  ;;  %5054 = vst [vmem:[#allocation24_spill] sm:$0xff] %v4001_v1  ;;  %v1903_v49 = vmul.f32 %v3936_v0, %v1892_v20  ;;  %v1904_v50 = vmul.f32 %v3952_v5, %v1896_v57  ;;  %v1929_v46 = vmul.f32 %v3956_v6, %v1924_v54 }
 0x3c4   : > { %v1930_v47 = vmul.f32 %v3960_v7, %v1928_v58  ;;  %v1931_v51 = vmul.f32 %v3964_v9, %v1924_v54  ;;  %v1932_v48 = vmul.f32 %v3968_v11, %v1928_v58  ;;  %v1933_v52 = vmul.f32 %v3972_v13, %v1924_v54 }
 0x3c5   : > { %v1934_v8 = vmul.f32 %v3976_v15, %v1928_v58  ;;  %v1935_v10 = vmul.f32 %v3980_v18, %v1924_v54  ;;  %v1936_v12 = vmul.f32 %v3984_v25, %v1928_v58  ;;  %v4019_v14 = vadd.f32 %v1929_v46, %v1897_v17 }
 0x3c6   : > { %v4021_v20 = vadd.f32 %v1930_v47, %v1898_v53  ;;  %v4023_v57 = vadd.f32 %v1931_v51, %v1899_v55  ;;  %v4025_v16 = vadd.f32 %v1932_v48, %v1900_v56  ;;  %v4027_v19 = vadd.f32 %v1933_v52, %v1901_v60 }
 0x3c7   : > { %5055 = vst [vmem:[#allocation25_spill] sm:$0xff] %v4019_v14  ;;  %v4029_v32 = vadd.f32 %v1934_v8, %v1902_v45  ;;  %v4031_v44 = vadd.f32 %v1935_v10, %v1903_v49  ;;  %v4033_v40 = vadd.f32 %v1936_v12, %v1904_v50  ;;  %v2172_v54 = vrot.slane %v3891_v33, %v3883_v26 }
 0x3c8   : > { %5056 = vst [vmem:[#allocation26_spill] sm:$0xff] %v4021_v20  ;;  %5057 = vst [vmem:[#allocation27_spill] sm:$0xff] %v4023_v57  ;;  %v2176_v58 = vrot.slane %v3899_v41, %v3883_v26  ;;  %v2204_v17 = vrot.slane %v3891_v33, %v3885_v29  ;;  %v2208_v53 = vrot.slane %v3899_v41, %v3885_v29 }
 0x3c9   : > { %5058 = vst [vmem:[#allocation28_spill] sm:$0xff] %v4025_v16  ;;  %5059 = vst [vmem:[#allocation29_spill] sm:$0xff] %v4027_v19  ;;  %v2452_v55 = vrot.slane %v3891_v33, %v3887_v30  ;;  %v2456_v56 = vrot.slane %v3899_v41, %v3887_v30  ;;  %v2484_v60 = vrot.slane %v3891_v33, %v3889_v31 }
 0x3ca   : > { %5060 = vst [vmem:[#allocation30_spill] sm:$0xff] %v4029_v32  ;;  %5061 = vst [vmem:[#allocation31_spill] sm:$0xff] %v4031_v44  ;;  %v2488_v45 = vrot.slane %v3899_v41, %v3889_v31  ;;  %v2177_v49 = vmul.f32 %v3924_v59, %v2172_v54  ;;  %v2178_v50 = vmul.f32 %v3940_v2, %v2176_v58 }
 0x3cb   : > { %5062 = vst [vmem:[#allocation32_spill] sm:$0xff] %v4033_v40  ;;  %v2179_v46 = vmul.f32 %v3928_v61, %v2172_v54  ;;  %v2180_v47 = vmul.f32 %v3944_v3, %v2176_v58  ;;  %v2181_v51 = vmul.f32 %v3932_v62, %v2172_v54  ;;  %v2182_v48 = vmul.f32 %v3948_v4, %v2176_v58 }
 0x3cc   : > { %v2183_v52 = vmul.f32 %v3936_v0, %v2172_v54  ;;  %v2184_v8 = vmul.f32 %v3952_v5, %v2176_v58  ;;  %v2209_v33 = vmul.f32 %v3956_v6, %v2204_v17  ;;  %v2210_v41 = vmul.f32 %v3960_v7, %v2208_v53 }
 0x3cd   : > { %v2211_v10 = vmul.f32 %v3964_v9, %v2204_v17  ;;  %v2212_v12 = vmul.f32 %v3968_v11, %v2208_v53  ;;  %v2213_v40 = vmul.f32 %v3972_v13, %v2204_v17  ;;  %v2214_v44 = vmul.f32 %v3976_v15, %v2208_v53 }
 0x3ce   : > { %v2215_v32 = vmul.f32 %v3980_v18, %v2204_v17  ;;  %v2216_v19 = vmul.f32 %v3984_v25, %v2208_v53  ;;  %v4067_v16 = vadd.f32 %v2209_v33, %v2177_v49  ;;  %v4069_v54 = vadd.f32 %v2210_v41, %v2178_v50 }
 0x3cf   : > { %v4071_v58 = vadd.f32 %v2211_v10, %v2179_v46  ;;  %v4073_v57 = vadd.f32 %v2212_v12, %v2180_v47  ;;  %v4075_v20 = vadd.f32 %v2213_v40, %v2181_v51  ;;  %v4077_v14 = vadd.f32 %v2214_v44, %v2182_v48  ;;  %v4131_v47 = vld [vmem:[%s3403_s6 + $0x128] sm:$0xff]  ;;  %v4134_v51 = vld [vmem:[%s3403_s6 + $0x130] sm:$0xff]  ;;  %v4137_v48 = vld [vmem:[%s3403_s6 + $0x138] sm:$0xff] }
 0x3d0   : > { %5063 = vst [vmem:[#allocation33_spill] sm:$0xff] %v4067_v16  ;;  %5064 = vst [vmem:[#allocation34_spill] sm:$0xff] %v4069_v54  ;;  %v4079_v1 = vadd.f32 %v2215_v32, %v2183_v52  ;;  %v4081_v28 = vadd.f32 %v2216_v19, %v2184_v8  ;;  %v2457_v17 = vmul.f32 %v3924_v59, %v2452_v55  ;;  %v4140_v52 = vld [vmem:[%s3403_s6 + $0x140] sm:$0xff]  ;;  %v4143_v8 = vld [vmem:[%s3403_s6 + $0x148] sm:$0xff] }
 0x3d1   : > { %5065 = vst [vmem:[#allocation35_spill] sm:$0xff] %v4071_v58  ;;  %5066 = vst [vmem:[#allocation36_spill] sm:$0xff] %v4073_v57  ;;  %v2458_v53 = vmul.f32 %v3940_v2, %v2456_v56  ;;  %v2459_v49 = vmul.f32 %v3928_v61, %v2452_v55  ;;  %v2460_v50 = vmul.f32 %v3944_v3, %v2456_v56 }
 0x3d2   : > { %5067 = vst [vmem:[#allocation37_spill] sm:$0xff] %v4075_v20  ;;  %5068 = vst [vmem:[#allocation38_spill] sm:$0xff] %v4077_v14  ;;  %v2461_v46 = vmul.f32 %v3932_v62, %v2452_v55  ;;  %v2462_v40 = vmul.f32 %v3948_v4, %v2456_v56  ;;  %v2463_v44 = vmul.f32 %v3936_v0, %v2452_v55 }
 0x3d3   : > { %5069 = vst [vmem:[#allocation39_spill] sm:$0xff] %v4079_v1  ;;  %5070 = vst [vmem:[#allocation40_spill] sm:$0xff] %v4081_v28  ;;  %v2464_v19 = vmul.f32 %v3952_v5, %v2456_v56  ;;  %v2489_v59 = vmul.f32 %v3956_v6, %v2484_v60  ;;  %v2490_v32 = vmul.f32 %v3960_v7, %v2488_v45  ;;  %v4100_v5 = vld [vmem:[%s3403_s6 + $0x100] sm:$0xff] }
 0x3d4   : > { %v2491_v2 = vmul.f32 %v3964_v9, %v2484_v60  ;;  %v2492_v61 = vmul.f32 %v3968_v11, %v2488_v45  ;;  %v2493_v3 = vmul.f32 %v3972_v13, %v2484_v60  ;;  %v2494_v62 = vmul.f32 %v3976_v15, %v2488_v45  ;;  %v4111_v13 = vld [vmem:[%s3403_s6 + $0x108] sm:$0xff]  ;;  %v4114_v15 = vld [vmem:[%s3403_s6 + $0x110] sm:$0xff] }
 0x3d5   : > { %v2495_v0 = vmul.f32 %v3980_v18, %v2484_v60  ;;  %v2496_v4 = vmul.f32 %v3984_v25, %v2488_v45  ;;  %v4102_v6 = vadd.f32 %v2489_v59, %v2457_v17  ;;  %v4104_v7 = vadd.f32 %v2490_v32, %v2458_v53  ;;  %v4117_v18 = vld [vmem:[%s3403_s6 + $0x118] sm:$0xff]  ;;  %v4128_v45 = vld [vmem:[%s3403_s6 + $0x120] sm:$0xff]  ;;  %v4154_v17 = vld [vmem:[%s3403_s6 + $0x150] sm:$0xff] }
 0x3d6   : > { %v4106_v9 = vadd.f32 %v2491_v2, %v2459_v49  ;;  %v4108_v11 = vadd.f32 %v2492_v61, %v2460_v50  ;;  %v4119_v25 = vadd.f32 %v2493_v3, %v2461_v46  ;;  %v4121_v55 = vadd.f32 %v2494_v62, %v2462_v40  ;;  %v4157_v53 = vld [vmem:[%s3403_s6 + $0x158] sm:$0xff]  ;;  %v4160_v49 = vld [vmem:[%s3403_s6 + $0x160] sm:$0xff]  ;;  %v4174_v59 = vld [vmem:[%s3403_s6 + $0x170] sm:$0xff] }
 0x3d7   : > { %5071 = vst [vmem:[#allocation41_spill] sm:$0xff] %v4102_v6  ;;  %5072 = vst [vmem:[#allocation42_spill] sm:$0xff] %v4104_v7  ;;  %v4123_v56 = vadd.f32 %v2495_v0, %v2463_v44  ;;  %v4125_v60 = vadd.f32 %v2496_v4, %v2464_v19  ;;  %v1748_v33 = vrot.slane %v3893_v34, %v3875_v21  ;;  %v4171_v19 = vld [vmem:[%s3403_s6 + $0x168] sm:$0xff]  ;;  %v4177_v32 = vld [vmem:[%s3403_s6 + $0x178] sm:$0xff] }
 0x3d8   : > { %5073 = vst [vmem:[#allocation43_spill] sm:$0xff] %v4106_v9  ;;  %5074 = vst [vmem:[#allocation44_spill] sm:$0xff] %v4108_v11  ;;  %v1752_v41 = vrot.slane %v3901_v42, %v3875_v21  ;;  %v1780_v10 = vrot.slane %v3893_v34, %v3877_v22  ;;  %v1784_v12 = vrot.slane %v3901_v42, %v3877_v22 }
 0x3d9   : > { %5075 = vst [vmem:[#allocation45_spill] sm:$0xff] %v4119_v25  ;;  %5076 = vst [vmem:[#allocation46_spill] sm:$0xff] %v4121_v55  ;;  %v2020_v50 = vrot.slane %v3893_v34, %v3879_v23  ;;  %v2024_v46 = vrot.slane %v3901_v42, %v3879_v23  ;;  %v2052_v40 = vrot.slane %v3893_v34, %v3881_v24 }
 0x3da   : > { %5077 = vst [vmem:[#allocation47_spill] sm:$0xff] %v4123_v56  ;;  %5078 = vst [vmem:[#allocation48_spill] sm:$0xff] %v4125_v60  ;;  %v2056_v44 = vrot.slane %v3901_v42, %v3881_v24  ;;  %v4180_v2 = vmul.f32 %v1748_v33, %v4100_v5  ;;  %v4183_v61 = vmul.f32 %v1752_v41, %v4111_v13 }
 0x3db   : > { %v4186_v3 = vmul.f32 %v1748_v33, %v4114_v15  ;;  %v4189_v62 = vmul.f32 %v1752_v41, %v4117_v18  ;;  %v4192_v0 = vmul.f32 %v1748_v33, %v4128_v45  ;;  %v4195_v4 = vmul.f32 %v1752_v41, %v4131_v47 }
 0x3dc   : > { %v4198_v60 = vmul.f32 %v1748_v33, %v4134_v51  ;;  %v4201_v56 = vmul.f32 %v1752_v41, %v4137_v48  ;;  %v4204_v55 = vmul.f32 %v1780_v10, %v4140_v52  ;;  %v4207_v25 = vmul.f32 %v1784_v12, %v4143_v8 }
 0x3dd   : > { %v4210_v11 = vmul.f32 %v1780_v10, %v4154_v17  ;;  %v4213_v9 = vmul.f32 %v1784_v12, %v4157_v53  ;;  %v4216_v7 = vmul.f32 %v1780_v10, %v4160_v49  ;;  %v4219_v33 = vmul.f32 %v1784_v12, %v4171_v19 }
 0x3de   : > { %5079 = vst [vmem:[#allocation49_spill] sm:$0xff] %v4204_v55  ;;  %5080 = vst [vmem:[#allocation50_spill] sm:$0xff] %v4207_v25  ;;  %v4222_v41 = vmul.f32 %v1780_v10, %v4174_v59  ;;  %v4225_v55 = vmul.f32 %v1784_v12, %v4177_v32  ;;  %v4228_v25 = vmul.f32 %v2020_v50, %v4100_v5 }
 0x3df   : > { %5081 = vst [vmem:[#allocation51_spill] sm:$0xff] %v4210_v11  ;;  %5082 = vst [vmem:[#allocation52_spill] sm:$0xff] %v4213_v9  ;;  %v4231_v11 = vmul.f32 %v2024_v46, %v4111_v13  ;;  %v4234_v9 = vmul.f32 %v2020_v50, %v4114_v15  ;;  %v4243_v10 = vmul.f32 %v2024_v46, %v4131_v47 }
 0x3e0   : > { %5083 = vst [vmem:[#allocation53_spill] sm:$0xff] %v4216_v7  ;;  %5084 = vst [vmem:[#allocation54_spill] sm:$0xff] %v4219_v33  ;;  %v4237_v7 = vmul.f32 %v2024_v46, %v4117_v18  ;;  %v4240_v33 = vmul.f32 %v2020_v50, %v4128_v45  ;;  %v4246_v12 = vmul.f32 %v2020_v50, %v4134_v51 }
 0x3e1   : > { %5085 = vst [vmem:[#allocation55_spill] sm:$0xff] %v4222_v41  ;;  %5086 = vst [vmem:[#allocation56_spill] sm:$0xff] %v4225_v55  ;;  %v4249_v55 = vmul.f32 %v2024_v46, %v4137_v48  ;;  %v4252_v41 = vmul.f32 %v2052_v40, %v4140_v52  ;;  %v4255_v6 = vmul.f32 %v2056_v44, %v4143_v8 }
 0x3e2   : > { %v4258_v28 = vmul.f32 %v2052_v40, %v4154_v17  ;;  %v4261_v1 = vmul.f32 %v2056_v44, %v4157_v53  ;;  %v4264_v14 = vmul.f32 %v2052_v40, %v4160_v49  ;;  %v4267_v50 = vmul.f32 %v2056_v44, %v4171_v19 }
 0x3e3   : > { %5087 = vst [vmem:[#allocation57_spill] sm:$0xff] %v4249_v55  ;;  %5088 = vst [vmem:[#allocation58_spill] sm:$0xff] %v4252_v41  ;;  %v4270_v46 = vmul.f32 %v2052_v40, %v4174_v59  ;;  %v4273_v41 = vmul.f32 %v2056_v44, %v4177_v32  ;;  %v2584_v40 = vrot.slane %v3901_v42, %v3887_v30 }
 0x3e4   : > { %5089 = vst [vmem:[#allocation59_spill] sm:$0xff] %v4255_v6  ;;  %5090 = vst [vmem:[#allocation60_spill] sm:$0xff] %v4258_v28  ;;  %v2300_v6 = vrot.slane %v3893_v34, %v3883_v26  ;;  %v2304_v28 = vrot.slane %v3901_v42, %v3883_v26  ;;  %v2612_v44 = vrot.slane %v3893_v34, %v3889_v31 }
 0x3e5   : > { %5091 = vst [vmem:[#allocation61_spill] sm:$0xff] %v4261_v1  ;;  %5092 = vst [vmem:[#allocation62_spill] sm:$0xff] %v4264_v14  ;;  %v2332_v1 = vrot.slane %v3893_v34, %v3885_v29  ;;  %v2336_v14 = vrot.slane %v3901_v42, %v3885_v29  ;;  %v5129_v29 = vld [vmem:[#allocation24_spill] sm:$0xff] }
 0x3e6   : > { %5093 = vst [vmem:[#allocation63_spill] sm:$0xff] %v4267_v50  ;;  %5094 = vst [vmem:[#allocation64_spill] sm:$0xff] %v4270_v46  ;;  %v2580_v50 = vrot.slane %v3893_v34, %v3887_v30  ;;  %v4292_v46 = vmul.f32 %v2300_v6, %v4100_v5  ;;  %v4295_v20 = vmul.f32 %v2304_v28, %v4111_v13  ;;  %v5128_v30 = vld [vmem:[#allocation23_spill] sm:$0xff] }
 0x3e7   : > { %5095 = vst [vmem:[#allocation65_spill] sm:$0xff] %v4273_v41  ;;  %v2616_v41 = vrot.slane %v3901_v42, %v3889_v31  ;;  %v4298_v57 = vmul.f32 %v2300_v6, %v4114_v15  ;;  %v4301_v58 = vmul.f32 %v2304_v28, %v4117_v18  ;;  %v4304_v54 = vmul.f32 %v2300_v6, %v4128_v45 }
 0x3e8   : > { %5096 = vst [vmem:[#allocation66_spill] sm:$0xff] %v4292_v46  ;;  %5097 = vst [vmem:[#allocation67_spill] sm:$0xff] %v4295_v20  ;;  %v4307_v34 = vmul.f32 %v2304_v28, %v4131_v47  ;;  %v4310_v42 = vmul.f32 %v2300_v6, %v4134_v51  ;;  %v4313_v46 = vmul.f32 %v2304_v28, %v4137_v48 }
 0x3e9   : > { %5098 = vst [vmem:[#allocation68_spill] sm:$0xff] %v4298_v57  ;;  %5099 = vst [vmem:[#allocation69_spill] sm:$0xff] %v4301_v58  ;;  %v4316_v20 = vmul.f32 %v2332_v1, %v4140_v52  ;;  %v4319_v57 = vmul.f32 %v2336_v14, %v4143_v8  ;;  %v4322_v58 = vmul.f32 %v2332_v1, %v4154_v17 }
 0x3ea   : > { %5100 = vst [vmem:[#allocation70_spill] sm:$0xff] %v4304_v54  ;;  %5101 = vst [vmem:[#allocation71_spill] sm:$0xff] %v4307_v34  ;;  %v4325_v54 = vmul.f32 %v2336_v14, %v4157_v53  ;;  %v4328_v34 = vmul.f32 %v2332_v1, %v4160_v49  ;;  %v4331_v6 = vmul.f32 %v2336_v14, %v4171_v19 }
 0x3eb   : > { %5102 = vst [vmem:[#allocation72_spill] sm:$0xff] %v4310_v42  ;;  %5103 = vst [vmem:[#allocation73_spill] sm:$0xff] %v4313_v46  ;;  %v4334_v28 = vmul.f32 %v2332_v1, %v4174_v59  ;;  %v4352_v1 = vmul.f32 %v2580_v50, %v4128_v45  ;;  %v4370_v45 = vmul.f32 %v2612_v44, %v4154_v17  ;;  %v4394_v17 = vld [vmem:[%s3403_s6 + $0x88] sm:$0xff] }
 0x3ec   : > { %5104 = vst [vmem:[#allocation74_spill] sm:$0xff] %v4316_v20  ;;  %5105 = vst [vmem:[#allocation75_spill] sm:$0xff] %v4319_v57  ;;  %v4337_v20 = vmul.f32 %v2336_v14, %v4177_v32  ;;  %v4340_v57 = vmul.f32 %v2580_v50, %v4100_v5  ;;  %v4355_v14 = vmul.f32 %v2584_v40, %v4131_v47 }
 0x3ed   : > { %5106 = vst [vmem:[#allocation76_spill] sm:$0xff] %v4322_v58  ;;  %5107 = vst [vmem:[#allocation77_spill] sm:$0xff] %v4325_v54  ;;  %v4343_v58 = vmul.f32 %v2584_v40, %v4111_v13  ;;  %v4346_v54 = vmul.f32 %v2580_v50, %v4114_v15  ;;  %v4358_v5 = vmul.f32 %v2580_v50, %v4134_v51  ;;  %v4379_v51 = vld [vmem:[%s3403_s6 + $0x90] sm:$0xff] }
 0x3ee   : > { %5108 = vst [vmem:[#allocation78_spill] sm:$0xff] %v4328_v34  ;;  %5109 = vst [vmem:[#allocation79_spill] sm:$0xff] %v4331_v6  ;;  %v4349_v34 = vmul.f32 %v2584_v40, %v4117_v18  ;;  %v4361_v13 = vmul.f32 %v2584_v40, %v4137_v48  ;;  %v4364_v15 = vmul.f32 %v2612_v44, %v4140_v52  ;;  %v4400_v40 = vld [vmem:[%s3403_s6 + $0xa0] sm:$0xff] }
 0x3ef   : > { %5110 = vst [vmem:[#allocation80_spill] sm:$0xff] %v4334_v28  ;;  %5111 = vst [vmem:[#allocation81_spill] sm:$0xff] %v4337_v20  ;;  %v4367_v18 = vmul.f32 %v2616_v41, %v4143_v8  ;;  %v4373_v47 = vmul.f32 %v2616_v41, %v4157_v53  ;;  %v4376_v20 = vld [vmem:[%s3403_s6 + $0x80] sm:$0xff]  ;;  %v4382_v48 = vmul.f32 %v2612_v44, %v4160_v49  ;;  %v4397_v53 = vld [vmem:[%s3403_s6 + $0x98] sm:$0xff] }
 0x3f0   : > { %5112 = vst [vmem:[#allocation82_spill] sm:$0xff] %v4340_v57  ;;  %5113 = vst [vmem:[#allocation83_spill] sm:$0xff] %v4343_v58  ;;  %v4385_v50 = vmul.f32 %v2616_v41, %v4171_v19  ;;  %v4388_v52 = vmul.f32 %v2612_v44, %v4174_v59  ;;  %v4391_v8 = vmul.f32 %v2616_v41, %v4177_v32  ;;  %v4406_v49 = vld [vmem:[%s3403_s6 + $0xb0] sm:$0xff]  ;;  %v4409_v19 = vld [vmem:[%s3403_s6 + $0xb8] sm:$0xff] }
 0x3f1   : > { %5114 = vst [vmem:[#allocation84_spill] sm:$0xff] %v4346_v54  ;;  %5115 = vst [vmem:[#allocation85_spill] sm:$0xff] %v4349_v34  ;;  %v1684_v59 = vrot.slane %v3895_v39, %v3875_v21  ;;  %v1688_v32 = vrot.slane %v3903_v43, %v3875_v21  ;;  %v1716_v41 = vrot.slane %v3895_v39, %v3877_v22  ;;  %v4445_v21 = vld [vmem:[%s3403_s6 + $0xd8] sm:$0xff]  ;;  %v4455_v34 = vld [vmem:[%s3403_s6 + $0xe8] sm:$0xff] }
 0x3f2   : > { %5116 = vst [vmem:[#allocation86_spill] sm:$0xff] %v4352_v1  ;;  %5117 = vst [vmem:[#allocation87_spill] sm:$0xff] %v4355_v14  ;;  %v1720_v44 = vrot.slane %v3903_v43, %v3877_v22  ;;  %v4442_v22 = vld [vmem:[%s3403_s6 + $0xd0] sm:$0xff]  ;;  %v4461_v58 = vld [vmem:[%s3403_s6 + $0xf8] sm:$0xff] }
 0x3f3   : > { %5118 = vst [vmem:[#allocation88_spill] sm:$0xff] %v4358_v5  ;;  %5119 = vst [vmem:[#allocation89_spill] sm:$0xff] %v4361_v13  ;;  %v1690_v28 = vmul.f32 %v1688_v32, %v4394_v17  ;;  %v1691_v6 = vmul.f32 %v1684_v59, %v4379_v51  ;;  %v4448_v13 = vld [vmem:[%s3403_s6 + $0xe0] sm:$0xff]  ;;  %v1695_v14 = vmul.f32 %v1684_v59, %v4406_v49  ;;  %v4458_v54 = vld [vmem:[%s3403_s6 + $0xf0] sm:$0xff] }
 0x3f4   : > { %5120 = vst [vmem:[#allocation90_spill] sm:$0xff] %v4364_v15  ;;  %5121 = vst [vmem:[#allocation91_spill] sm:$0xff] %v4367_v18  ;;  %v4435_v18 = vld [vmem:[%s3403_s6 + $0xc8] sm:$0xff]  ;;  %v1689_v15 = vmul.f32 %v1684_v59, %v4376_v20  ;;  %v1696_v1 = vmul.f32 %v1688_v32, %v4409_v19 }
 0x3f5   : > { %5122 = vst [vmem:[#allocation92_spill] sm:$0xff] %v4370_v45  ;;  %5123 = vst [vmem:[#allocation93_spill] sm:$0xff] %v4373_v47  ;;  %v4403_v47 = vld [vmem:[%s3403_s6 + $0xa8] sm:$0xff]  ;;  %v4432_v45 = vld [vmem:[%s3403_s6 + $0xc0] sm:$0xff]  ;;  %v1698_v46 = vadd.f32 %v1690_v28, %v3989_v36  ;;  %v1699_v42 = vadd.f32 %v1691_v6, %v3991_v37  ;;  %v1722_v26 = vmul.f32 %v1720_v44, %v4435_v18 }
 0x3f6   : > { %5124 = vst [vmem:[#allocation94_spill] sm:$0xff] %v4382_v48  ;;  %5125 = vst [vmem:[#allocation95_spill] sm:$0xff] %v4385_v50  ;;  %v4425_v50 = vrot.slane %v3895_v39, %v3881_v24  ;;  %v4429_v48 = vrot.slane %v3903_v43, %v3881_v24  ;;  %v1693_v24 = vmul.f32 %v1684_v59, %v4400_v40 }
 0x3f7   : > { %5126 = vst [vmem:[#allocation96_spill] sm:$0xff] %v4388_v52  ;;  %5127 = vst [vmem:[#allocation97_spill] sm:$0xff] %v4391_v8  ;;  %v1956_v8 = vrot.slane %v3895_v39, %v3879_v23  ;;  %v1960_v52 = vrot.slane %v3903_v43, %v3879_v23  ;;  %v1692_v23 = vmul.f32 %v1688_v32, %v4397_v53 }
 0x3f8   : > { %v1694_v5 = vmul.f32 %v1688_v32, %v4403_v47  ;;  %v1697_v57 = vadd.f32 %v1689_v15, %v3987_v35  ;;  %v1701_v31 = vadd.f32 %v1693_v24, %v3995_v38  ;;  %v1703_v32 = vadd.f32 %v1695_v14, %v5128_v30 }
 0x3f9   : > { %v1700_v16 = vadd.f32 %v1692_v23, %v3993_v27  ;;  %v1704_v43 = vadd.f32 %v1696_v1, %v5129_v29  ;;  %v1721_v39 = vmul.f32 %v1716_v41, %v4432_v45  ;;  %v1723_v35 = vmul.f32 %v1716_v41, %v4442_v22 }
 0x3fa   : > { %v1702_v59 = vadd.f32 %v1694_v5, %v3997_v63  ;;  %v1724_v36 = vmul.f32 %v1720_v44, %v4445_v21  ;;  %v1725_v37 = vmul.f32 %v1716_v41, %v4448_v13  ;;  %v1726_v23 = vmul.f32 %v1720_v44, %v4455_v34 }
 0x3fb   : > { %v1727_v24 = vmul.f32 %v1716_v41, %v4458_v54  ;;  %v1728_v27 = vmul.f32 %v1720_v44, %v4461_v58  ;;  %v1729_v38 = vadd.f32 %v1721_v39, %v1697_v57  ;;  %v1730_v30 = vadd.f32 %v1722_v26, %v1698_v46  ;;  %v5132_v44 = vld [vmem:[#allocation27_spill] sm:$0xff] }
 0x3fc   : > { %v1731_v63 = vadd.f32 %v1723_v35, %v1699_v42  ;;  %v1732_v29 = vadd.f32 %v1724_v36, %v1700_v16  ;;  %v1733_v6 = vadd.f32 %v1725_v37, %v1701_v31  ;;  %v1734_v28 = vadd.f32 %v1726_v23, %v1702_v59  ;;  %v5134_v36 = vld [vmem:[#allocation29_spill] sm:$0xff]  ;;  %v5135_v23 = vld [vmem:[#allocation30_spill] sm:$0xff] }
 0x3fd   : > { %v1735_v1 = vadd.f32 %v1727_v24, %v1703_v32  ;;  %v1736_v14 = vadd.f32 %v1728_v27, %v1704_v43  ;;  %v4480_v5 = vadd.f32 %v4180_v2, %v1729_v38  ;;  %v4483_v15 = vadd.f32 %v4183_v61, %v1730_v30  ;;  %v5133_v32 = vld [vmem:[#allocation28_spill] sm:$0xff]  ;;  %v5136_v27 = vld [vmem:[#allocation31_spill] sm:$0xff] }
 0x3fe   : > { %v4486_v55 = vadd.f32 %v4186_v3, %v1731_v63  ;;  %v4489_v41 = vadd.f32 %v4189_v62, %v1732_v29  ;;  %v4492_v26 = vadd.f32 %v4192_v0, %v1733_v6  ;;  %v4495_v31 = vadd.f32 %v4195_v4, %v1734_v28  ;;  %v5130_v4 = vld [vmem:[#allocation25_spill] sm:$0xff]  ;;  %v5137_v30 = vld [vmem:[#allocation32_spill] sm:$0xff] }
 0x3ff   : > { %v4498_v39 = vadd.f32 %v4198_v60, %v1735_v1  ;;  %v4501_v43 = vadd.f32 %v4201_v56, %v1736_v14  ;;  %v1961_v57 = vmul.f32 %v1956_v8, %v4376_v20  ;;  %v1962_v16 = vmul.f32 %v1960_v52, %v4394_v17  ;;  %v5131_v56 = vld [vmem:[#allocation26_spill] sm:$0xff] }
 0x400   : > { %v1963_v2 = vmul.f32 %v1956_v8, %v4379_v51  ;;  %v1964_v61 = vmul.f32 %v1960_v52, %v4397_v53  ;;  %v1965_v3 = vmul.f32 %v1956_v8, %v4400_v40  ;;  %v1966_v62 = vmul.f32 %v1960_v52, %v4403_v47 }
 0x401   : > { %v1967_v0 = vmul.f32 %v1956_v8, %v4406_v49  ;;  %v1968_v60 = vmul.f32 %v1960_v52, %v4409_v19  ;;  %v1969_v46 = vadd.f32 %v1961_v57, %v5130_v4  ;;  %v1970_v42 = vadd.f32 %v1962_v16, %v5131_v56 }
 0x402   : > { %v1971_v59 = vadd.f32 %v1963_v2, %v5132_v44  ;;  %v1972_v35 = vadd.f32 %v1964_v61, %v5133_v32  ;;  %v1973_v37 = vadd.f32 %v1965_v3, %v5134_v36  ;;  %v1974_v24 = vadd.f32 %v1966_v62, %v5135_v23 }
 0x403   : > { %v1975_v38 = vadd.f32 %v1967_v0, %v5136_v27  ;;  %v1976_v63 = vadd.f32 %v1968_v60, %v5137_v30  ;;  %v1993_v8 = vmul.f32 %v4425_v50, %v4432_v45  ;;  %v1994_v52 = vmul.f32 %v4429_v48, %v4435_v18  ;;  %v5149_v27 = vld [vmem:[#allocation18_spill] sm:$0xff] }
 0x404   : > { %v1995_v29 = vmul.f32 %v4425_v50, %v4442_v22  ;;  %v1996_v6 = vmul.f32 %v4429_v48, %v4445_v21  ;;  %v1997_v28 = vmul.f32 %v4425_v50, %v4448_v13  ;;  %v1998_v1 = vmul.f32 %v4429_v48, %v4455_v34 }
 0x405   : > { %v1999_v14 = vmul.f32 %v4425_v50, %v4458_v54  ;;  %v2000_v57 = vmul.f32 %v4429_v48, %v4461_v58  ;;  %v2001_v16 = vadd.f32 %v1993_v8, %v1969_v46  ;;  %v2002_v2 = vadd.f32 %v1994_v52, %v1970_v42 }
 0x406   : > { %v2003_v61 = vadd.f32 %v1995_v29, %v1971_v59  ;;  %v2004_v3 = vadd.f32 %v1996_v6, %v1972_v35  ;;  %v2005_v62 = vadd.f32 %v1997_v28, %v1973_v37  ;;  %v2006_v0 = vadd.f32 %v1998_v1, %v1974_v24  ;;  %v5145_v35 = vld [vmem:[#allocation19_spill] sm:$0xff] }
 0x407   : > { %v2007_v60 = vadd.f32 %v1999_v14, %v1975_v38  ;;  %v2008_v4 = vadd.f32 %v2000_v57, %v1976_v63  ;;  %v4536_v56 = vadd.f32 %v4228_v25, %v2001_v16  ;;  %v4539_v44 = vadd.f32 %v4231_v11, %v2002_v2  ;;  %v5142_v25 = vld [vmem:[#allocation57_spill] sm:$0xff]  ;;  %v5144_v11 = vld [vmem:[#allocation15_spill] sm:$0xff]  ;;  %v5151_v2 = vld [vmem:[#allocation34_spill] sm:$0xff] }
 0x408   : > { %v4542_v32 = vadd.f32 %v4234_v9, %v2003_v61  ;;  %v4545_v50 = vadd.f32 %v4237_v7, %v2004_v3  ;;  %v4548_v48 = vadd.f32 %v4240_v33, %v2005_v62  ;;  %v4551_v46 = vadd.f32 %v4243_v10, %v2006_v0  ;;  %v5146_v9 = vld [vmem:[#allocation21_spill] sm:$0xff]  ;;  %v5147_v7 = vld [vmem:[#allocation16_spill] sm:$0xff]  ;;  %v5152_v3 = vld [vmem:[#allocation35_spill] sm:$0xff] }
 0x409   : > { %v4554_v42 = vadd.f32 %v4246_v12, %v2007_v60  ;;  %v4557_v59 = vadd.f32 %v5142_v25, %v2008_v4  ;;  %v2236_v36 = vrot.slane %v5145_v35, %v5144_v11  ;;  %v2240_v37 = vrot.slane %v5146_v9, %v5144_v11  ;;  %v5148_v10 = vld [vmem:[#allocation17_spill] sm:$0xff]  ;;  %v5153_v0 = vld [vmem:[#allocation36_spill] sm:$0xff] }
 0x40a   : > { %5138 = vst [vmem:[#allocation23_spill] sm:$0xff] %v4545_v50  ;;  %5139 = vst [vmem:[#allocation24_spill] sm:$0xff] %v4548_v48  ;;  %v2268_v23 = vrot.slane %v5145_v35, %v5147_v7  ;;  %v2272_v33 = vrot.slane %v5146_v9, %v5147_v7  ;;  %v2516_v24 = vrot.slane %v5145_v35, %v5148_v10  ;;  %v5150_v57 = vld [vmem:[#allocation33_spill] sm:$0xff]  ;;  %v5157_v7 = vld [vmem:[#allocation40_spill] sm:$0xff] }
 0x40b   : > { %5140 = vst [vmem:[#allocation25_spill] sm:$0xff] %v4551_v46  ;;  %5141 = vst [vmem:[#allocation26_spill] sm:$0xff] %v4554_v42  ;;  %v2520_v12 = vrot.slane %v5146_v9, %v5148_v10  ;;  %v4573_v38 = vrot.slane %v5145_v35, %v5149_v27  ;;  %v4577_v30 = vrot.slane %v5146_v9, %v5149_v27  ;;  %v5154_v4 = vld [vmem:[#allocation37_spill] sm:$0xff]  ;;  %v5155_v35 = vld [vmem:[#allocation38_spill] sm:$0xff] }
 0x40c   : > { %5143 = vst [vmem:[#allocation27_spill] sm:$0xff] %v4557_v59  ;;  %v2241_v63 = vmul.f32 %v2236_v36, %v4376_v20  ;;  %v2242_v8 = vmul.f32 %v2240_v37, %v4394_v17  ;;  %v2243_v52 = vmul.f32 %v2236_v36, %v4379_v51  ;;  %v2244_v29 = vmul.f32 %v2240_v37, %v4397_v53  ;;  %v5156_v27 = vld [vmem:[#allocation39_spill] sm:$0xff]  ;;  %v5160_v46 = vld [vmem:[#allocation68_spill] sm:$0xff] }
 0x40d   : > { %v2245_v6 = vmul.f32 %v2236_v36, %v4400_v40  ;;  %v2246_v28 = vmul.f32 %v2240_v37, %v4403_v47  ;;  %v2247_v1 = vmul.f32 %v2236_v36, %v4406_v49  ;;  %v2248_v14 = vmul.f32 %v2240_v37, %v4409_v19  ;;  %v5159_v59 = vld [vmem:[#allocation67_spill] sm:$0xff] }
 0x40e   : > { %v2249_v16 = vadd.f32 %v2241_v63, %v5150_v57  ;;  %v2250_v61 = vadd.f32 %v2242_v8, %v5151_v2  ;;  %v2251_v62 = vadd.f32 %v2243_v52, %v5152_v3  ;;  %v2252_v60 = vadd.f32 %v2244_v29, %v5153_v0 }
 0x40f   : > { %v2253_v25 = vadd.f32 %v2245_v6, %v5154_v4  ;;  %v2254_v9 = vadd.f32 %v2246_v28, %v5155_v35  ;;  %v2255_v10 = vadd.f32 %v2247_v1, %v5156_v27  ;;  %v2256_v11 = vadd.f32 %v2248_v14, %v5157_v7  ;;  %v5158_v4 = vld [vmem:[#allocation66_spill] sm:$0xff] }
 0x410   : > { %v2273_v36 = vmul.f32 %v2268_v23, %v4432_v45  ;;  %v2274_v37 = vmul.f32 %v2272_v33, %v4435_v18  ;;  %v2275_v63 = vmul.f32 %v2268_v23, %v4442_v22  ;;  %v2276_v8 = vmul.f32 %v2272_v33, %v4445_v21 }
 0x411   : > { %v2277_v52 = vmul.f32 %v2268_v23, %v4448_v13  ;;  %v2278_v29 = vmul.f32 %v2272_v33, %v4455_v34  ;;  %v2279_v6 = vmul.f32 %v2268_v23, %v4458_v54  ;;  %v2280_v28 = vmul.f32 %v2272_v33, %v4461_v58  ;;  %v5161_v23 = vld [vmem:[#allocation69_spill] sm:$0xff]  ;;  %v5162_v33 = vld [vmem:[#allocation70_spill] sm:$0xff] }
 0x412   : > { %v2281_v57 = vadd.f32 %v2273_v36, %v2249_v16  ;;  %v2282_v27 = vadd.f32 %v2274_v37, %v2250_v61  ;;  %v2283_v1 = vadd.f32 %v2275_v63, %v2251_v62  ;;  %v2284_v7 = vadd.f32 %v2276_v8, %v2252_v60  ;;  %v5163_v61 = vld [vmem:[#allocation71_spill] sm:$0xff]  ;;  %v5165_v60 = vld [vmem:[#allocation73_spill] sm:$0xff] }
 0x413   : > { %v2285_v14 = vadd.f32 %v2277_v52, %v2253_v25  ;;  %v2286_v2 = vadd.f32 %v2278_v29, %v2254_v9  ;;  %v2287_v3 = vadd.f32 %v2279_v6, %v2255_v10  ;;  %v2288_v0 = vadd.f32 %v2280_v28, %v2256_v11  ;;  %v5164_v10 = vld [vmem:[#allocation72_spill] sm:$0xff]  ;;  %v5166_v29 = vld [vmem:[#allocation41_spill] sm:$0xff]  ;;  %v5167_v28 = vld [vmem:[#allocation42_spill] sm:$0xff] }
 0x414   : > { %v4604_v35 = vadd.f32 %v5158_v4, %v2281_v57  ;;  %v4607_v42 = vadd.f32 %v5159_v59, %v2282_v27  ;;  %v4610_v48 = vadd.f32 %v5160_v46, %v2283_v1  ;;  %v4613_v50 = vadd.f32 %v5161_v23, %v2284_v7  ;;  %v5168_v27 = vld [vmem:[#allocation43_spill] sm:$0xff]  ;;  %v5169_v1 = vld [vmem:[#allocation44_spill] sm:$0xff]  ;;  %v5170_v7 = vld [vmem:[#allocation45_spill] sm:$0xff] }
 0x415   : > { %v4616_v16 = vadd.f32 %v5162_v33, %v2285_v14  ;;  %v4619_v62 = vadd.f32 %v5163_v61, %v2286_v2  ;;  %v4622_v11 = vadd.f32 %v5164_v10, %v2287_v3  ;;  %v4625_v25 = vadd.f32 %v5165_v60, %v2288_v0  ;;  %v5171_v14 = vld [vmem:[#allocation46_spill] sm:$0xff]  ;;  %v5172_v2 = vld [vmem:[#allocation47_spill] sm:$0xff]  ;;  %v5173_v3 = vld [vmem:[#allocation48_spill] sm:$0xff] }
 0x416   : > { %v2521_v59 = vmul.f32 %v2516_v24, %v4376_v20  ;;  %v2522_v46 = vmul.f32 %v2520_v12, %v4394_v17  ;;  %v2523_v9 = vmul.f32 %v2516_v24, %v4379_v51  ;;  %v2524_v36 = vmul.f32 %v2520_v12, %v4397_v53 }
 0x417   : > { %v2525_v37 = vmul.f32 %v2516_v24, %v4400_v40  ;;  %v2526_v63 = vmul.f32 %v2520_v12, %v4403_v47  ;;  %v2527_v8 = vmul.f32 %v2516_v24, %v4406_v49  ;;  %v2528_v52 = vmul.f32 %v2520_v12, %v4409_v19 }
 0x418   : > { %v2529_v6 = vadd.f32 %v2521_v59, %v5166_v29  ;;  %v2530_v57 = vadd.f32 %v2522_v46, %v5167_v28  ;;  %v2531_v20 = vadd.f32 %v2523_v9, %v5168_v27  ;;  %v2532_v17 = vadd.f32 %v2524_v36, %v5169_v1  ;;  %v5174_v59 = vld [vmem:[#allocation82_spill] sm:$0xff]  ;;  %v5175_v46 = vld [vmem:[#allocation83_spill] sm:$0xff]  ;;  %v4687_v27 = vld [vmem:[%s3403_s6 + $0x190] sm:$0xff] }
 0x419   : > { %v2533_v51 = vadd.f32 %v2525_v37, %v5170_v7  ;;  %v2534_v53 = vadd.f32 %v2526_v63, %v5171_v14  ;;  %v2535_v40 = vadd.f32 %v2527_v8, %v5172_v2  ;;  %v2536_v47 = vadd.f32 %v2528_v52, %v5173_v3  ;;  %v5178_v36 = vld [vmem:[#allocation86_spill] sm:$0xff]  ;;  %v5179_v63 = vld [vmem:[#allocation87_spill] sm:$0xff]  ;;  %v5181_v52 = vld [vmem:[#allocation88_spill] sm:$0xff] }
 0x41a   : > { %v2553_v49 = vmul.f32 %v4573_v38, %v4432_v45  ;;  %v2554_v19 = vmul.f32 %v4577_v30, %v4435_v18  ;;  %v2555_v24 = vmul.f32 %v4573_v38, %v4442_v22  ;;  %v2556_v12 = vmul.f32 %v4577_v30, %v4445_v21  ;;  %v4701_v3 = vld [vmem:[%s3403_s6 + $0x198] sm:$0xff] }
 0x41b   : > { %v2557_v0 = vmul.f32 %v4573_v38, %v4448_v13  ;;  %v2558_v4 = vmul.f32 %v4577_v30, %v4455_v34  ;;  %v2559_v23 = vmul.f32 %v4573_v38, %v4458_v54  ;;  %v2560_v45 = vmul.f32 %v4577_v30, %v4461_v58  ;;  %v5176_v58 = vld [vmem:[#allocation84_spill] sm:$0xff]  ;;  %v5177_v30 = vld [vmem:[#allocation85_spill] sm:$0xff] }
 0x41c   : > { %v2561_v33 = vadd.f32 %v2553_v49, %v2529_v6  ;;  %v2562_v18 = vadd.f32 %v2554_v19, %v2530_v57  ;;  %v2563_v22 = vadd.f32 %v2555_v24, %v2531_v20  ;;  %v2564_v61 = vadd.f32 %v2556_v12, %v2532_v17  ;;  %v5183_v6 = vld [vmem:[#allocation89_spill] sm:$0xff]  ;;  %v4684_v57 = vld [vmem:[%s3403_s6 + $0x180] sm:$0xff]  ;;  %v5186_v17 = vld [vmem:[#allocation50_spill] sm:$0xff] }
 0x41d   : > { %v2565_v10 = vadd.f32 %v2557_v0, %v2533_v51  ;;  %v2566_v21 = vadd.f32 %v2558_v4, %v2534_v53  ;;  %v2567_v60 = vadd.f32 %v2559_v23, %v2535_v40  ;;  %v2568_v13 = vadd.f32 %v2560_v45, %v2536_v47  ;;  %v5185_v20 = vld [vmem:[#allocation49_spill] sm:$0xff]  ;;  %v5187_v51 = vld [vmem:[#allocation51_spill] sm:$0xff]  ;;  %v5188_v53 = vld [vmem:[#allocation52_spill] sm:$0xff] }
 0x41e   : > { %v4660_v34 = vadd.f32 %v5174_v59, %v2561_v33  ;;  %v4663_v54 = vadd.f32 %v5175_v46, %v2562_v18  ;;  %v4666_v38 = vadd.f32 %v5176_v58, %v2563_v22  ;;  %v4669_v9 = vadd.f32 %v5177_v30, %v2564_v61  ;;  %v4698_v40 = vld [vmem:[%s3403_s6 + $0x188] sm:$0xff]  ;;  %v4704_v47 = vld [vmem:[%s3403_s6 + $0x1a0] sm:$0xff]  ;;  %v5189_v49 = vld [vmem:[#allocation53_spill] sm:$0xff] }
 0x41f   : > { %v4672_v37 = vadd.f32 %v5178_v36, %v2565_v10  ;;  %v4675_v8 = vadd.f32 %v5179_v63, %v2566_v21  ;;  %v4678_v29 = vadd.f32 %v5181_v52, %v2567_v60  ;;  %v4681_v28 = vadd.f32 %v5183_v6, %v2568_v13  ;;  %v4715_v4 = vld [vmem:[%s3403_s6 + $0x1a8] sm:$0xff]  ;;  %v4721_v23 = vld [vmem:[%s3403_s6 + $0x1b8] sm:$0xff]  ;;  %v5193_v45 = vld [vmem:[#allocation11_spill] sm:$0xff] }
 0x420   : > { %v1793_v1 = vadd.f32 %v5185_v20, %v4480_v5  ;;  %v1794_v7 = vadd.f32 %v5186_v17, %v4483_v15  ;;  %v1795_v14 = vadd.f32 %v5187_v51, %v4486_v55  ;;  %v1796_v2 = vadd.f32 %v5188_v53, %v4489_v41  ;;  %v5190_v5 = vld [vmem:[#allocation54_spill] sm:$0xff]  ;;  %v5191_v15 = vld [vmem:[#allocation55_spill] sm:$0xff]  ;;  %v5192_v55 = vld [vmem:[#allocation56_spill] sm:$0xff] }
 0x421   : > { %5180 = vst [vmem:[#allocation28_spill] sm:$0xff] %v4675_v8  ;;  %5182 = vst [vmem:[#allocation29_spill] sm:$0xff] %v4678_v29  ;;  %v1797_v19 = vadd.f32 %v5189_v49, %v4492_v26  ;;  %v1798_v24 = vadd.f32 %v5190_v5, %v4495_v31  ;;  %v1799_v12 = vadd.f32 %v5191_v15, %v4498_v39  ;;  %v4718_v41 = vld [vmem:[%s3403_s6 + $0x1b0] sm:$0xff]  ;;  %v5194_v33 = vld [vmem:[#allocation20_spill] sm:$0xff] }
 0x422   : > { %5184 = vst [vmem:[#allocation30_spill] sm:$0xff] %v4681_v28  ;;  %v1800_v0 = vadd.f32 %v5192_v55, %v4501_v43  ;;  %v1812_v18 = vrot.slane %v5194_v33, %v5193_v45  ;;  %v5195_v26 = vld [vmem:[#allocation22_spill] sm:$0xff]  ;;  %v5196_v61 = vld [vmem:[#allocation12_spill] sm:$0xff]  ;;  %v5198_v21 = vld [vmem:[#allocation59_spill] sm:$0xff] }
 0x423   : > { %v1816_v22 = vrot.slane %v5195_v26, %v5193_v45  ;;  %v1836_v31 = vrot.slane %v5194_v33, %v5196_v61  ;;  %v1840_v39 = vrot.slane %v5195_v26, %v5196_v61  ;;  %v5197_v43 = vld [vmem:[#allocation58_spill] sm:$0xff]  ;;  %v4737_v60 = vadd.f32 %v5198_v21, %v4539_v44  ;;  %v5199_v13 = vld [vmem:[#allocation60_spill] sm:$0xff]  ;;  %v5200_v46 = vld [vmem:[#allocation23_spill] sm:$0xff] }
 0x424   : > { %v4733_v10 = vadd.f32 %v5197_v43, %v4536_v56  ;;  %v4741_v59 = vadd.f32 %v5199_v13, %v4542_v32  ;;  %v5201_v58 = vld [vmem:[#allocation61_spill] sm:$0xff]  ;;  %v1817_v36 = vmul.f32 %v1812_v18, %v4684_v57  ;;  %v1819_v56 = vmul.f32 %v1812_v18, %v4687_v27  ;;  %v3087_v61 = vld [vmem:[%s3403_s6 + $0x1c0] sm:$0xff]  ;;  %v3088_v21 = vld [vmem:[%s3403_s6 + $0x1c8] sm:$0xff] }
 0x425   : > { %v4745_v30 = vadd.f32 %v5201_v58, %v5200_v46  ;;  %v1818_v63 = vmul.f32 %v1816_v22, %v4698_v40  ;;  %v1820_v52 = vmul.f32 %v1816_v22, %v4701_v3  ;;  %v1821_v44 = vmul.f32 %v1812_v18, %v4704_v47  ;;  %v3090_v58 = vld [vmem:[%s3403_s6 + $0x1d8] sm:$0xff] }
 0x426   : > { %v1822_v32 = vmul.f32 %v1816_v22, %v4715_v4  ;;  %v1823_v6 = vmul.f32 %v1812_v18, %v4718_v41  ;;  %v1824_v20 = vmul.f32 %v1816_v22, %v4721_v23  ;;  %v1825_v17 = vadd.f32 %v1817_v36, %v1793_v1  ;;  %v3089_v18 = vld [vmem:[%s3403_s6 + $0x1d0] sm:$0xff]  ;;  %v3091_v1 = vld [vmem:[%s3403_s6 + $0x1e0] sm:$0xff]  ;;  %v5203_v28 = vld [vmem:[#allocation62_spill] sm:$0xff] }
 0x427   : > { %v1826_v51 = vadd.f32 %v1818_v63, %v1794_v7  ;;  %v1827_v53 = vadd.f32 %v1819_v56, %v1795_v14  ;;  %v1828_v49 = vadd.f32 %v1820_v52, %v1796_v2  ;;  %v1829_v5 = vadd.f32 %v1821_v44, %v1797_v19  ;;  %v3092_v7 = vld [vmem:[%s3403_s6 + $0x1e8] sm:$0xff]  ;;  %v3093_v63 = vld [vmem:[%s3403_s6 + $0x1f0] sm:$0xff]  ;;  %v3094_v19 = vld [vmem:[%s3403_s6 + $0x1f8] sm:$0xff] }
 0x428   : > { %v1830_v15 = vadd.f32 %v1822_v32, %v1798_v24  ;;  %v1831_v55 = vadd.f32 %v1823_v6, %v1799_v12  ;;  %v1832_v45 = vadd.f32 %v1824_v20, %v1800_v0  ;;  %v1841_v43 = vmul.f32 %v3087_v61, %v1836_v31 }
 0x429   : > { %v1842_v13 = vmul.f32 %v3088_v21, %v1840_v39  ;;  %v1843_v46 = vmul.f32 %v3089_v18, %v1836_v31  ;;  %v1844_v22 = vmul.f32 %v3090_v58, %v1840_v39  ;;  %v1845_v36 = vmul.f32 %v3091_v1, %v1836_v31  ;;  %v5202_v58 = vld [vmem:[#allocation24_spill] sm:$0xff] }
 0x42a   : > { %v1846_v14 = vmul.f32 %v3092_v7, %v1840_v39  ;;  %v1847_v2 = vmul.f32 %v3093_v63, %v1836_v31  ;;  %v1848_v56 = vmul.f32 %v3094_v19, %v1840_v39  ;;  %v1849_v24 = vadd.f32 %v1841_v43, %v1825_v17  ;;  %v5204_v31 = vld [vmem:[#allocation25_spill] sm:$0xff]  ;;  %v5205_v63 = vld [vmem:[#allocation63_spill] sm:$0xff] }
 0x42b   : > { %v1850_v12 = vadd.f32 %v1842_v13, %v1826_v51  ;;  %v1851_v52 = vadd.f32 %v1843_v46, %v1827_v53  ;;  %v1852_v0 = vadd.f32 %v1844_v22, %v1828_v49  ;;  %v1853_v44 = vadd.f32 %v1845_v36, %v1829_v5  ;;  %v5206_v53 = vld [vmem:[#allocation26_spill] sm:$0xff]  ;;  %v5207_v49 = vld [vmem:[#allocation64_spill] sm:$0xff]  ;;  %v5210_v43 = vld [vmem:[#allocation13_spill] sm:$0xff] }
 0x42c   : > { %v1854_v32 = vadd.f32 %v1846_v14, %v1830_v15  ;;  %v1855_v6 = vadd.f32 %v1847_v2, %v1831_v55  ;;  %v1856_v20 = vadd.f32 %v1848_v56, %v1832_v45  ;;  %v1857_v61 = vmul.f32 1.442695, %v1849_v24  ;;  %v5208_v15 = vld [vmem:[#allocation27_spill] sm:$0xff]  ;;  %v5209_v55 = vld [vmem:[#allocation65_spill] sm:$0xff]  ;;  %v5211_v46 = vld [vmem:[#allocation14_spill] sm:$0xff] }
 0x42d   : > { %v1859_v21 = vmul.f32 1.442695, %v1850_v12  ;;  %v1861_v18 = vmul.f32 1.442695, %v1851_v52  ;;  %v2069_v1 = vadd.f32 %v5203_v28, %v5202_v58  ;;  %v1863_v29 = vmul.f32 1.442695, %v1852_v0 }
 0x42e   : > { %v1865_v7 = vmul.f32 1.442695, %v1853_v44  ;;  %v1867_v8 = vmul.f32 1.442695, %v1854_v32  ;;  %v2070_v39 = vadd.f32 %v5205_v63, %v5204_v31  ;;  %3007 = vpow2.f32 %v1857_v61  ;;  %v5212_v14 = vld [vmem:[#allocation74_spill] sm:$0xff]  ;;  %v4787_v12 = vld [vmem:[%s3403_s6 + $0x1c0] sm:$0xff] }
 0x42f   : > { %v1869_v17 = vmul.f32 1.442695, %v1855_v6  ;;  %v1871_v51 = vmul.f32 1.442695, %v1856_v20  ;;  %v2071_v5 = vadd.f32 %v5207_v49, %v5206_v53  ;;  %3009 = vpow2.f32 %v1859_v21  ;;  %v4797_v44 = vld [vmem:[%s3403_s6 + $0x1d0] sm:$0xff]  ;;  %v4800_v32 = vld [vmem:[%s3403_s6 + $0x1d8] sm:$0xff] }
 0x430   : > { %v2072_v45 = vadd.f32 %v5209_v55, %v5208_v15  ;;  %v2084_v28 = vrot.slane %v5194_v33, %v5210_v43  ;;  %v2088_v13 = vrot.slane %v5195_v26, %v5210_v43  ;;  %3011 = vpow2.f32 %v1861_v18  ;;  %v4806_v21 = vld [vmem:[%s3403_s6 + $0x1e0] sm:$0xff]  ;;  %v4809_v18 = vld [vmem:[%s3403_s6 + $0x1e8] sm:$0xff]  ;;  %v4812_v58 = vld [vmem:[%s3403_s6 + $0x1f0] sm:$0xff] }
 0x431   : > { %v2116_v22 = vrot.slane %v5194_v33, %v5211_v46  ;;  %v2120_v36 = vrot.slane %v5195_v26, %v5211_v46  ;;  %v4781_v2 = vadd.f32 %v5212_v14, %v4604_v35  ;;  %3013 = vpow2.f32 %v1863_v29  ;;  %v4794_v29 = vld [vmem:[%s3403_s6 + $0x1c8] sm:$0xff] }
 0x432   : > { %v2089_v19 = vmul.f32 %v2084_v28, %v4684_v57  ;;  %v2090_v56 = vmul.f32 %v2088_v13, %v4698_v40  ;;  %v2091_v24 = vmul.f32 %v2084_v28, %v4687_v27  ;;  %3015 = vpow2.f32 %v1865_v7 }
 0x433   : > { %v2092_v52 = vmul.f32 %v2088_v13, %v4701_v3  ;;  %v2093_v0 = vmul.f32 %v2084_v28, %v4704_v47  ;;  %v2094_v35 = vmul.f32 %v2088_v13, %v4715_v4  ;;  %3017 = vpow2.f32 %v1867_v8  ;;  %v4818_v8 = vld [vmem:[%s3403_s6 + $0x1f8] sm:$0xff]  ;;  %s3232_s6 = smov [#allocation7]  }
 0x434   : > { %v2095_v6 = vmul.f32 %v2084_v28, %v4718_v41  ;;  %v2096_v20 = vmul.f32 %v2088_v13, %v4721_v23  ;;  %v2097_v61 = vadd.f32 %v2089_v19, %v4733_v10  ;;  %3019 = vpow2.f32 %v1869_v17  ;;  %s3157_s23 = sshll.u32 %s3232_s6, 4  ;;  %s3158_s23 = int_to_ptr.vmem [resolvable:$false] %s3157_s23 }
 0x435   : > { %v2098_v7 = vadd.f32 %v2090_v56, %v4737_v60  ;;  %v2099_v31 = vadd.f32 %v2091_v24, %v4741_v59  ;;  %v2100_v63 = vadd.f32 %v2092_v52, %v4745_v30  ;;  %3021 = vpow2.f32 %v1871_v51  ;;  %s3159_s26 = scalar_lea.vmem %s3158_s23, 8192  ;;  %p3160_p4 = scmp.lt.s32.totalorder %s4947_s8, %s3158_s23 }
 0x436   : > { %v2101_v53 = vadd.f32 %v2093_v0, %v2069_v1  ;;  %v2102_v49 = vadd.f32 %v2094_v35, %v2070_v39  ;;  %v2103_v10 = vadd.f32 %v2095_v6, %v2071_v5  ;;  %v2104_v15 = vadd.f32 %v2096_v20, %v2072_v45  ;;  %p3161_p0 = scmp.lt.s32.totalorder %s3159_s26, %s3153_s27 }
 0x437   : > { %v2121_v55 = vmul.f32 %v2116_v22, %v4787_v12  ;;  %v2122_v43 = vmul.f32 %v2120_v36, %v4794_v29  ;;  %v2123_v17 = vmul.f32 %v2116_v22, %v4797_v44  ;;  %v2124_v60 = vmul.f32 %v2120_v36, %v4800_v32 }
 0x438   : > { %v2125_v59 = vmul.f32 %v2116_v22, %v4806_v21  ;;  %v2126_v30 = vmul.f32 %v2120_v36, %v4809_v18  ;;  %v2127_v28 = vmul.f32 %v2116_v22, %v4812_v58  ;;  %v3008_v51 = vpop.eup %3007  ;;  %v2128_v1 = vmul.f32 %v2120_v36, %v4818_v8  ;;  %p3162_p5 = por %p3161_p0, %p3160_p4 }
 0x439   : > { %v2129_v39 = vadd.f32 %v2121_v55, %v2097_v61  ;;  %v2130_v5 = vadd.f32 %v2122_v43, %v2098_v7  ;;  %v2131_v45 = vadd.f32 %v2123_v17, %v2099_v31  ;;  %v3010_v13 = vpop.eup %3009  ;;  %1873 = vst [vmem:[%s4830_s30] sm:$0xff] %v3008_v51  ;;  %v2132_v46 = vadd.f32 %v2124_v60, %v2100_v63  ;;  %v5213_v7 = vld [vmem:[#allocation75_spill] sm:$0xff]  ;;  %v5215_v43 = vld [vmem:[#allocation77_spill] sm:$0xff]  ;;  %v5216_v60 = vld [vmem:[#allocation78_spill] sm:$0xff] }
 0x43a   : > { %v2133_v14 = vadd.f32 %v2125_v59, %v2101_v53  ;;  %v2134_v19 = vadd.f32 %v2126_v30, %v2102_v49  ;;  %v2135_v56 = vadd.f32 %v2127_v28, %v2103_v10  ;;  %v3012_v22 = vpop.eup %3011  ;;  %1874 = vst [vmem:[%s4830_s30 + $0x8] sm:$0xff] %v3010_v13  ;;  %v2136_v24 = vadd.f32 %v2128_v1, %v2104_v15  ;;  %v5214_v10 = vld [vmem:[#allocation76_spill] sm:$0xff]  ;;  %p3163_p11 = pnand %p3162_p5, %p3156_p1 }
 0x43b   : > { %v2137_v36 = vmul.f32 1.442695, %v2129_v39  ;;  %v2139_v52 = vmul.f32 1.442695, %v2130_v5  ;;  %v2141_v0 = vmul.f32 1.442695, %v2131_v45  ;;  %v3014_v35 = vpop.eup %3013  ;;  %v2346_v31 = vadd.f32 %v5213_v7, %v4607_v42 }
 0x43c   : > { %1875 = vst [vmem:[%s4830_s30 + $0x10] sm:$0xff] %v3012_v22  ;;  %v2143_v6 = vmul.f32 1.442695, %v2132_v46  ;;  %v2145_v20 = vmul.f32 1.442695, %v2133_v14  ;;  %v3016_v63 = vpop.eup %3015  ;;  %1876 = vst [vmem:[%s4830_s30 + $0x18] sm:$0xff] %v3014_v35  ;;  %v2347_v15 = vadd.f32 %v5214_v10, %v4610_v48  ;;  %v2348_v17 = vadd.f32 %v5215_v43, %v4613_v50 }
 0x43d   : > { %v2147_v61 = vmul.f32 1.442695, %v2134_v19  ;;  %3023 = vpow2.f32 %v2137_v36  ;;  %v2149_v53 = vmul.f32 1.442695, %v2135_v56  ;;  %v2151_v49 = vmul.f32 1.442695, %v2136_v24  ;;  %v3018_v55 = vpop.eup %3017 }
 0x43e   : > { %1877 = vst [vmem:[%s4830_s30 + $0x20] sm:$0xff] %v3016_v63  ;;  %3025 = vpow2.f32 %v2139_v52  ;;  %v2349_v59 = vadd.f32 %v5216_v60, %v4616_v16  ;;  %v5217_v42 = vld [vmem:[#allocation79_spill] sm:$0xff]  ;;  %v3020_v28 = vpop.eup %3019  ;;  %1878 = vst [vmem:[%s4830_s30 + $0x28] sm:$0xff] %v3018_v55  ;;  %v5218_v51 = vld [vmem:[#allocation80_spill] sm:$0xff] }
 0x43f   : > { %v2350_v30 = vadd.f32 %v5217_v42, %v4619_v62  ;;  %3027 = vpow2.f32 %v2141_v0  ;;  %v2351_v1 = vadd.f32 %v5218_v51, %v4622_v11  ;;  %v5219_v48 = vld [vmem:[#allocation81_spill] sm:$0xff]  ;;  %v5220_v5 = vld [vmem:[#allocation15_spill] sm:$0xff]  ;;  %v3022_v13 = vpop.eup %3021  ;;  %1879 = vst [vmem:[%s4830_s30 + $0x30] sm:$0xff] %v3020_v28  ;;  %v5221_v16 = vld [vmem:[#allocation16_spill] sm:$0xff] }
 0x440   : > { %v2352_v39 = vadd.f32 %v5219_v48, %v4625_v25  ;;  %v2364_v45 = vrot.slane %v5194_v33, %v5220_v5  ;;  %3029 = vpow2.f32 %v2143_v6  ;;  %v2368_v50 = vrot.slane %v5195_v26, %v5220_v5  ;;  %1880 = vst [vmem:[%s4830_s30 + $0x38] sm:$0xff] %v3022_v13 }
 0x441   : > { %v2396_v62 = vrot.slane %v5194_v33, %v5221_v16  ;;  %v2400_v46 = vrot.slane %v5195_v26, %v5221_v16  ;;  %3031 = vpow2.f32 %v2145_v20 }
 0x442   : > { %v2369_v11 = vmul.f32 %v2364_v45, %v4684_v57  ;;  %v2371_v25 = vmul.f32 %v2364_v45, %v4687_v27  ;;  %v2373_v14 = vmul.f32 %v2364_v45, %v4704_v47  ;;  %3033 = vpow2.f32 %v2147_v61 }
 0x443   : > { %v2370_v19 = vmul.f32 %v2368_v50, %v4698_v40  ;;  %v2372_v56 = vmul.f32 %v2368_v50, %v4701_v3  ;;  %v2374_v22 = vmul.f32 %v2368_v50, %v4715_v4  ;;  %3035 = vpow2.f32 %v2149_v53 }
 0x444   : > { %v2375_v24 = vmul.f32 %v2364_v45, %v4718_v41  ;;  %v2376_v36 = vmul.f32 %v2368_v50, %v4721_v23  ;;  %v2377_v52 = vadd.f32 %v2369_v11, %v4781_v2  ;;  %3037 = vpow2.f32 %v2151_v49 }
 0x445   : > { %v2378_v0 = vadd.f32 %v2370_v19, %v2346_v31  ;;  %v2379_v35 = vadd.f32 %v2371_v25, %v2347_v15  ;;  %v2380_v6 = vadd.f32 %v2372_v56, %v2348_v17  ;;  %v2381_v20 = vadd.f32 %v2373_v14, %v2349_v59  ;;  %v5223_v56 = vld [vmem:[#allocation91_spill] sm:$0xff] }
 0x446   : > { %v2382_v61 = vadd.f32 %v2374_v22, %v2350_v30  ;;  %v2383_v7 = vadd.f32 %v2375_v24, %v2351_v1  ;;  %v2384_v63 = vadd.f32 %v2376_v36, %v2352_v39  ;;  %v2401_v10 = vmul.f32 %v2396_v62, %v4787_v12 }
 0x447   : > { %v2402_v53 = vmul.f32 %v2400_v46, %v4794_v29  ;;  %v2403_v55 = vmul.f32 %v2396_v62, %v4797_v44  ;;  %v2404_v43 = vmul.f32 %v2400_v46, %v4800_v32  ;;  %v3024_v60 = vpop.eup %3023  ;;  %v2405_v2 = vmul.f32 %v2396_v62, %v4806_v21 }
 0x448   : > { %v2406_v31 = vmul.f32 %v2400_v46, %v4809_v18  ;;  %v2407_v49 = vmul.f32 %v2396_v62, %v4812_v58  ;;  %v2408_v15 = vmul.f32 %v2400_v46, %v4818_v8  ;;  %v3026_v17 = vpop.eup %3025  ;;  %2153 = vst [vmem:[%s4830_s30 + $0x40] sm:$0xff] %v3024_v60  ;;  %v2409_v59 = vadd.f32 %v2401_v10, %v2377_v52  ;;  %v5222_v62 = vld [vmem:[#allocation90_spill] sm:$0xff] }
 0x449   : > { %v2410_v42 = vadd.f32 %v2402_v53, %v2378_v0  ;;  %v2411_v30 = vadd.f32 %v2403_v55, %v2379_v35  ;;  %v2412_v28 = vadd.f32 %v2404_v43, %v2380_v6  ;;  %v3028_v51 = vpop.eup %3027  ;;  %2154 = vst [vmem:[%s4830_s30 + $0x48] sm:$0xff] %v3026_v17  ;;  %v2413_v1 = vadd.f32 %v2405_v2, %v2381_v20  ;;  %v5224_v0 = vld [vmem:[#allocation92_spill] sm:$0xff]  ;;  %v5229_v55 = vld [vmem:[#allocation29_spill] sm:$0xff]  ;;  %v5231_v2 = vld [vmem:[#allocation30_spill] sm:$0xff] }
 0x44a   : > { %v2414_v48 = vadd.f32 %v2406_v31, %v2382_v61  ;;  %v2415_v39 = vadd.f32 %v2407_v49, %v2383_v7  ;;  %v2416_v5 = vadd.f32 %v2408_v15, %v2384_v63  ;;  %v3030_v45 = vpop.eup %3029  ;;  %2155 = vst [vmem:[%s4830_s30 + $0x50] sm:$0xff] %v3028_v51  ;;  %v2417_v13 = vmul.f32 1.442695, %v2409_v59  ;;  %v5226_v61 = vld [vmem:[#allocation94_spill] sm:$0xff]  ;;  %v5227_v63 = vld [vmem:[#allocation28_spill] sm:$0xff]  ;;  %v5233_v49 = vld [vmem:[#allocation17_spill] sm:$0xff] }
 0x44b   : > { %v2419_v50 = vmul.f32 1.442695, %v2410_v42  ;;  %v2421_v16 = vmul.f32 1.442695, %v2411_v30  ;;  %v2625_v46 = vadd.f32 %v5222_v62, %v4660_v34  ;;  %v3032_v11 = vpop.eup %3031  ;;  %2156 = vst [vmem:[%s4830_s30 + $0x58] sm:$0xff] %v3030_v45  ;;  %v2626_v22 = vadd.f32 %v5223_v56, %v4663_v54  ;;  %v5225_v34 = vld [vmem:[#allocation93_spill] sm:$0xff] }
 0x44c   : > { %v2423_v25 = vmul.f32 1.442695, %v2412_v28  ;;  %v2425_v14 = vmul.f32 1.442695, %v2413_v1  ;;  %v2427_v19 = vmul.f32 1.442695, %v2414_v48  ;;  %v3034_v24 = vpop.eup %3033  ;;  %3039 = vpow2.f32 %v2417_v13 }
 0x44d   : > { %2157 = vst [vmem:[%s4830_s30 + $0x60] sm:$0xff] %v3032_v11  ;;  %v2429_v36 = vmul.f32 1.442695, %v2415_v39  ;;  %v2431_v52 = vmul.f32 1.442695, %v2416_v5  ;;  %v2627_v35 = vadd.f32 %v5224_v0, %v4666_v38  ;;  %v3036_v6 = vpop.eup %3035  ;;  %2158 = vst [vmem:[%s4830_s30 + $0x68] sm:$0xff] %v3034_v24  ;;  %3041 = vpow2.f32 %v2419_v50 }
 0x44e   : > { %v2628_v20 = vadd.f32 %v5225_v34, %v4669_v9  ;;  %v2629_v7 = vadd.f32 %v5226_v61, %v4672_v37  ;;  %v5228_v54 = vld [vmem:[#allocation95_spill] sm:$0xff]  ;;  %v3038_v53 = vpop.eup %3037  ;;  %2159 = vst [vmem:[%s4830_s30 + $0x70] sm:$0xff] %v3036_v6  ;;  %3043 = vpow2.f32 %v2421_v16  ;;  %v5230_v43 = vld [vmem:[#allocation96_spill] sm:$0xff]  ;;  %v5232_v38 = vld [vmem:[#allocation97_spill] sm:$0xff]  ;;  %v2644_v15 = vrot.slane %v5194_v33, %v5233_v49 }
 0x44f   : > { %v2630_v10 = vadd.f32 %v5228_v54, %v5227_v63  ;;  %v2631_v60 = vadd.f32 %v5230_v43, %v5229_v55  ;;  %v2632_v31 = vadd.f32 %v5232_v38, %v5231_v2  ;;  %2160 = vst [vmem:[%s4830_s30 + $0x78] sm:$0xff] %v3038_v53  ;;  %3045 = vpow2.f32 %v2423_v25  ;;  %v5234_v37 = vld [vmem:[#allocation18_spill] sm:$0xff] }
 0x450   : > { %v2648_v9 = vrot.slane %v5195_v26, %v5233_v49  ;;  %v2676_v17 = vrot.slane %v5194_v33, %v5234_v37  ;;  %v2680_v59 = vrot.slane %v5195_v26, %v5234_v37  ;;  %3047 = vpow2.f32 %v2425_v14 }
 0x451   : > { %v2649_v42 = vmul.f32 %v2644_v15, %v4684_v57  ;;  %v2651_v30 = vmul.f32 %v2644_v15, %v4687_v27  ;;  %v2653_v28 = vmul.f32 %v2644_v15, %v4704_v47  ;;  %3049 = vpow2.f32 %v2427_v19 }
 0x452   : > { %v2650_v51 = vmul.f32 %v2648_v9, %v4698_v40  ;;  %v2652_v1 = vmul.f32 %v2648_v9, %v4701_v3  ;;  %v2654_v48 = vmul.f32 %v2648_v9, %v4715_v4  ;;  %3051 = vpow2.f32 %v2429_v36 }
 0x453   : > { %v2655_v33 = vmul.f32 %v2644_v15, %v4718_v41  ;;  %v2656_v39 = vmul.f32 %v2648_v9, %v4721_v23  ;;  %v2657_v26 = vadd.f32 %v2649_v42, %v2625_v46  ;;  %3053 = vpow2.f32 %v2431_v52 }
 0x454   : > { %v2658_v5 = vadd.f32 %v2650_v51, %v2626_v22  ;;  %v2659_v57 = vadd.f32 %v2651_v30, %v2627_v35  ;;  %v2660_v27 = vadd.f32 %v2652_v1, %v2628_v20  ;;  %v2661_v45 = vadd.f32 %v2653_v28, %v2629_v7 }
 0x455   : > { %v2662_v47 = vadd.f32 %v2654_v48, %v2630_v10  ;;  %v2663_v13 = vadd.f32 %v2655_v33, %v2631_v60  ;;  %v2664_v50 = vadd.f32 %v2656_v39, %v2632_v31  ;;  %v2681_v40 = vmul.f32 %v2676_v17, %v4787_v12 }
 0x456   : > { %v2682_v3 = vmul.f32 %v2680_v59, %v4794_v29  ;;  %v2683_v4 = vmul.f32 %v2676_v17, %v4797_v44  ;;  %v2684_v41 = vmul.f32 %v2680_v59, %v4800_v32  ;;  %v3040_v23 = vpop.eup %3039  ;;  %v2685_v16 = vmul.f32 %v2676_v17, %v4806_v21 }
 0x457   : > { %v2686_v62 = vmul.f32 %v2680_v59, %v4809_v18  ;;  %v2687_v46 = vmul.f32 %v2676_v17, %v4812_v58  ;;  %v2688_v11 = vmul.f32 %v2680_v59, %v4818_v8  ;;  %v3042_v25 = vpop.eup %3041  ;;  %2433 = vst [vmem:[%s4830_s30 + $0x80] sm:$0xff] %v3040_v23  ;;  %v2689_v12 = vadd.f32 %v2681_v40, %v2657_v26 }
 0x458   : > { %v2690_v14 = vadd.f32 %v2682_v3, %v2658_v5  ;;  %v2691_v29 = vadd.f32 %v2683_v4, %v2659_v57  ;;  %v2692_v19 = vadd.f32 %v2684_v41, %v2660_v27  ;;  %v3044_v44 = vpop.eup %3043  ;;  %2434 = vst [vmem:[%s4830_s30 + $0x88] sm:$0xff] %v3042_v25  ;;  %v2693_v32 = vadd.f32 %v2685_v16, %v2661_v45 }
 0x459   : > { %v2694_v56 = vadd.f32 %v2686_v62, %v2662_v47  ;;  %v2695_v21 = vadd.f32 %v2687_v46, %v2663_v13  ;;  %v2696_v18 = vadd.f32 %v2688_v11, %v2664_v50  ;;  %v3046_v22 = vpop.eup %3045  ;;  %2435 = vst [vmem:[%s4830_s30 + $0x90] sm:$0xff] %v3044_v44  ;;  %v2697_v58 = vmul.f32 1.442695, %v2689_v12 }
 0x45a   : > { %v2699_v8 = vmul.f32 1.442695, %v2690_v14  ;;  %v2701_v24 = vmul.f32 1.442695, %v2691_v29  ;;  %v3048_v36 = vpop.eup %3047  ;;  %2436 = vst [vmem:[%s4830_s30 + $0x98] sm:$0xff] %v3046_v22 }
 0x45b   : > { %v2703_v52 = vmul.f32 1.442695, %v2692_v19  ;;  %v3050_v0 = vpop.eup %3049  ;;  %2437 = vst [vmem:[%s4830_s30 + $0xa0] sm:$0xff] %v3048_v36  ;;  %3055 = vpow2.f32 %v2697_v58  ;;  %v2705_v35 = vmul.f32 1.442695, %v2693_v32 }
 0x45c   : > { %v3052_v6 = vpop.eup %3051  ;;  %2438 = vst [vmem:[%s4830_s30 + $0xa8] sm:$0xff] %v3050_v0  ;;  %3057 = vpow2.f32 %v2699_v8  ;;  %v2707_v34 = vmul.f32 1.442695, %v2694_v56  ;;  %v2709_v61 = vmul.f32 1.442695, %v2695_v21 }
 0x45d   : > { %v3054_v20 = vpop.eup %3053  ;;  %2439 = vst [vmem:[%s4830_s30 + $0xb0] sm:$0xff] %v3052_v6  ;;  %3059 = vpow2.f32 %v2701_v24  ;;  %v2711_v7 = vmul.f32 1.442695, %v2696_v18 }
 0x45e   : > { %2440 = vst [vmem:[%s4830_s30 + $0xb8] sm:$0xff] %v3054_v20  ;;  %3061 = vpow2.f32 %v2703_v52 }
 0x45f   : > { %3063 = vpow2.f32 %v2705_v35 }
 0x460   : > { %3065 = vpow2.f32 %v2707_v34 }
 0x461   : > { %3067 = vpow2.f32 %v2709_v61 }
 0x462   : > { %3069 = vpow2.f32 %v2711_v7 }
 0x465   : > { %v3056_v63 = vpop.eup %3055 }
 0x466   : > { %v3058_v54 = vpop.eup %3057  ;;  %2713 = vst [vmem:[%s4830_s30 + $0xc0] sm:$0xff] %v3056_v63 }
 0x467   : > { %v3060_v10 = vpop.eup %3059  ;;  %2714 = vst [vmem:[%s4830_s30 + $0xc8] sm:$0xff] %v3058_v54 }
 0x468   : > { %v3062_v53 = vpop.eup %3061  ;;  %2715 = vst [vmem:[%s4830_s30 + $0xd0] sm:$0xff] %v3060_v10 }
 0x469   : > { %v3064_v55 = vpop.eup %3063  ;;  %2716 = vst [vmem:[%s4830_s30 + $0xd8] sm:$0xff] %v3062_v53 }
 0x46a   : > { %v3066_v43 = vpop.eup %3065  ;;  %2717 = vst [vmem:[%s4830_s30 + $0xe0] sm:$0xff] %v3064_v55 }
 0x46b   : > { %v3068_v60 = vpop.eup %3067  ;;  %2718 = vst [vmem:[%s4830_s30 + $0xe8] sm:$0xff] %v3066_v43 }
 0x46c   : > { %v3070_v2 = vpop.eup %3069  ;;  %2719 = vst [vmem:[%s4830_s30 + $0xf0] sm:$0xff] %v3068_v60 }
 0x46d   : > { %2720 = vst [vmem:[%s4830_s30 + $0xf8] sm:$0xff] %v3070_v2 }
 0x46e   : > { %3166 = shalt.err (!%p3163_p11)
}
 0x46f   : > { %s3167_s17 = scalar_lea.hbm %s4944_s20, 4096  ;;  %s3171_s29 = scalar_lea.hbm %s4997_s3, 8192 }
 0x470   : > { %p3168_p13 = scmp.ne.s32.totalorder %s4944_s20, %s3167_s17  ;;  %p3172_p12 = scmp.lt.u32.totalorder %s4944_s20, %s4997_s3 }
 0x471   : > { %p3173_p3 = scmp.lt.u32.totalorder %s3171_s29, %s3167_s17  ;;  %p3175_p8 = scmp.lt.u32.totalorder %s3167_s17, %s4944_s20 }
 0x472   : > { %p3169_p2 = pnand %p3168_p13, %p5235_p9 }
 0x473   : > { %p3174_p7 = por %p3173_p3, %p3172_p12 }
 0x474   : > { %p3170_p6 = pneg %p3169_p2 }
 0x475   : > { %p3176_p10 = por %p3175_p8, %p3174_p7 }
 0x477   : > { %p3177_p1 = pnand %p3176_p10, %p3170_p6 }
 0x479   : > { %3180 = shalt.err (!%p3177_p1)
}
 0x47a   : > { %s3233_s7 = smov 256   ;;  %s3234_s30 = smov 512  }
 0x47b   : > { %s3235_s5 = smov 16  }
 0x47c   : > { %2942 = dma.vmem_to_hbm [thread:$0]  (%p5235_p9), %s4947_s8, 4096, %s4944_s20, %s2722_s16, %s3233_s7, %s3234_s30, %s3235_s5  }
 0x47d PF: > { %s2750_s28 = sand.u32 1, %s3211_s12   ;;  %p5236_p4 = scmp.ne.s32.totalorder %s5031_s25, 0 }
 0x47e   : > { %p5237_p0 = scmp.ge.s32.totalorder %s3223_s15, 2  ;;  %s2751_s10 = scalar_lea.sflag [#allocation4], %s2750_s28 }
 0x480   : > { %p2953_p5 = pnand %p5237_p0, %p5236_p4 }
 0x482   : > { %3206 = dma.done.wait (!%p2953_p5), %s2751_s10, 4096  }
 0x483   : > { %3208 = vsyncadd (!%p2953_p5), %s2751_s10, 4294963200  ;;  %p17_p11 = scmp.ge.s32.totalorder %s3281_s18, 4   ;;  %s5238_s12 = smov %s3215_s13 }
 0x484   : > { %s5239_s13 = smov %s3219_s14  ;;  %s5240_s14 = smov %s3293_s21 }
 0x485   : > { %s5241_s15 = smov %s3281_s18  ;;  %19 = sbr.rel (!%p17_p11) target bundleno = 6 (0x6), region = 81 }
 0x48c   :  { %2756 = vsyncpa [#allocation3], 1 }
 0x48d   :  { %2758 = vsyncpa [#allocation3 + $0x1], 1 }
 0x48e   :  { %2759 = vsyncpa [#allocation6], 1 }
 0x48f   :  { %2760 = vsyncpa [#allocation4], 1 }
 0x490   :  { %2762 = vsyncpa [#allocation4 + $0x1], 1 }

</bundles_post_ra>
